<compile_context>
chip_gen: v7x
topology: tpu7x:2x2x1
jax: 0.10.0
libtpu: 0.0.40
codegen_flags: <defaults>
</compile_context>

<pallas_src>
import functools
import jax
import jax.numpy as jnp
from jax.experimental import pallas as pl
from jax.experimental.pallas import tpu as pltpu


# ----------------------------------------------------------------------------
# Fused kernel: 2-layer bidirectional LSTM + classifier head.
# x_ref is time-major [T, Bp, D]; weights are combined [D_in+H, 4H].
# ----------------------------------------------------------------------------
def _fused_lstm_kernel(x_ref,
                       w0f_ref, b0f_ref, w0b_ref, b0b_ref,
                       w1f_ref, b1f_ref, w1b_ref, b1b_ref,
                       wout_ref, bout_ref,
                       out_ref,
                       l0f_ref, l0b_ref, hf_ref, cf_ref, hb_ref, cb_ref):
    T, Bp, _ = x_ref.shape
    H = hf_ref.shape[-1]

    def cell(z, c_prev):
        # PyTorch gate order: i, f, g, o
        i = jax.nn.sigmoid(z[:, 0 * H:1 * H])
        f = jax.nn.sigmoid(z[:, 1 * H:2 * H])
        g = jnp.tanh(z[:, 2 * H:3 * H])
        o = jax.nn.sigmoid(z[:, 3 * H:4 * H])
        c = f * c_prev + i * g
        h = o * jnp.tanh(c)
        return h, c

    # Hoist weight / bias reads (and bias broadcasts) out of the time loops.
    w0f = w0f_ref[...]
    w0b = w0b_ref[...]
    w1f = w1f_ref[...]
    w1b = w1b_ref[...]
    b0f = jnp.broadcast_to(b0f_ref[...], (Bp, 4 * H))
    b0b = jnp.broadcast_to(b0b_ref[...], (Bp, 4 * H))
    b1f = jnp.broadcast_to(b1f_ref[...], (Bp, 4 * H))
    b1b = jnp.broadcast_to(b1b_ref[...], (Bp, 4 * H))

    zeros = jnp.zeros((Bp, H), jnp.float32)
    hf_ref[...] = zeros
    cf_ref[...] = zeros
    hb_ref[...] = zeros
    cb_ref[...] = zeros

    # ---------------- layer 0: forward + backward interleaved ----------------
    @pl.loop(0, T, unroll=True)
    def _(t):
        xf = x_ref[t]                  # [Bp, D]
        xb = x_ref[T - 1 - t]          # [Bp, D]
        zf = jnp.dot(jnp.concatenate([xf, hf_ref[...]], axis=-1), w0f,
                     preferred_element_type=jnp.float32) + b0f
        zb = jnp.dot(jnp.concatenate([xb, hb_ref[...]], axis=-1), w0b,
                     preferred_element_type=jnp.float32) + b0b
        hf, cf = cell(zf, cf_ref[...])
        hb, cb = cell(zb, cb_ref[...])
        hf_ref[...] = hf
        cf_ref[...] = cf
        hb_ref[...] = hb
        cb_ref[...] = cb
        l0f_ref[t] = hf                # layer-0 fwd output at time t
        l0b_ref[T - 1 - t] = hb        # layer-0 bwd output at original time T-1-t

    # ---------------- layer 1: forward direction --------------------------
    hf_ref[...] = zeros
    cf_ref[...] = zeros

    @pl.loop(0, T, unroll=True)
    def _(t):
        xt = jnp.concatenate([l0f_ref[t], l0b_ref[t], hf_ref[...]], axis=-1)
        z = jnp.dot(xt, w1f, preferred_element_type=jnp.float32) + b1f
        h, c = cell(z, cf_ref[...])
        hf_ref[...] = h
        cf_ref[...] = c

    # ---------------- layer 1: backward direction -------------------------
    # Only its output at the LAST original index is used by the head, and that
    # is exactly its first backward step from zero state on l0_out[T-1].
    x_last = jnp.concatenate([l0f_ref[T - 1], l0b_ref[T - 1], zeros], axis=-1)
    zb1 = jnp.dot(x_last, w1b, preferred_element_type=jnp.float32) + b1b
    h1b, _ = cell(zb1, zeros)

    # ---------------- head: Linear + log_softmax --------------------------
    last = jnp.concatenate([hf_ref[...], h1b], axis=-1)          # [Bp, 2H]
    logits = (jnp.dot(last, wout_ref[...], preferred_element_type=jnp.float32)
              + bout_ref[...])                                   # [Bp, O]
    m = jnp.max(logits, axis=1, keepdims=True)
    lse = m + jnp.log(jnp.sum(jnp.exp(logits - m), axis=1, keepdims=True))
    out_ref[...] = logits - lse


# ----------------------------------------------------------------------------
# Full model forward (single pallas_call; embedding gather is plain-JAX glue).
# ----------------------------------------------------------------------------
@jax.jit
def lstm_model_forward(sentence, params):
    # sentence: [B, T] int32 token ids.  (Fused kernel is fixed to 2 layers.)
    B, T = sentence.shape
    emb = jnp.take(params["embedding"], sentence, axis=0)        # [B, T, D]
    x = jnp.transpose(emb, (1, 0, 2)).astype(jnp.float32)        # [T, B, D]

    # Pad batch to a full sublane group (multiple of 8).
    Bp = ((B + 7) // 8) * 8
    x = jnp.pad(x, ((0, 0), (0, Bp - B), (0, 0)))

    w0f, b0f = params["lstm"][0]["fwd"]
    w0b, b0b = params["lstm"][0]["bwd"]
    w1f, b1f = params["lstm"][1]["fwd"]
    w1b, b1b = params["lstm"][1]["bwd"]
    wout, bout = params["w_out_t"], params["b_out"]

    H = w0f.shape[1] // 4
    O = wout.shape[1]
    vmem = pl.BlockSpec(memory_space=pltpu.MemorySpace.VMEM)

    out = pl.pallas_call(
        _fused_lstm_kernel,
        out_shape=jax.ShapeDtypeStruct((Bp, O), jnp.float32),
        in_specs=[vmem] * 11,
        out_specs=vmem,
        scratch_shapes=[
            pltpu.VMEM((T, Bp, H), jnp.float32),   # layer-0 fwd outputs
            pltpu.VMEM((T, Bp, H), jnp.float32),   # layer-0 bwd outputs
            pltpu.VMEM((Bp, H), jnp.float32),      # h (fwd / layer-1 fwd)
            pltpu.VMEM((Bp, H), jnp.float32),      # c (fwd / layer-1 fwd)
            pltpu.VMEM((Bp, H), jnp.float32),      # h (layer-0 bwd)
            pltpu.VMEM((Bp, H), jnp.float32),      # c (layer-0 bwd)
        ],
    )(x, w0f, b0f, w0b, b0b, w1f, b1f, w1b, b1b, wout, bout)

    return out[:B]                                               # [B, output_dim]


# ----------------------------------------------------------------------------
# Pure-JAX reference (correctness check)
# ----------------------------------------------------------------------------
def _ref_lstm_layer(x, w, b):
    # x: [T, B, D_in]; w: [D_in+H, 4H]; b: [1, 4H]
    T, B, _ = x.shape
    H = w.shape[1] // 4

    def step(carry, xt):
        h, c = carry
        z = jnp.concatenate([xt, h], axis=-1) @ w + b
        i = jax.nn.sigmoid(z[:, :H])
        f = jax.nn.sigmoid(z[:, H:2 * H])
        g = jnp.tanh(z[:, 2 * H:3 * H])
        o = jax.nn.sigmoid(z[:, 3 * H:])
        c = f * c + i * g
        h = o * jnp.tanh(c)
        return (h, c), h

    init = (jnp.zeros((B, H), jnp.float32), jnp.zeros((B, H), jnp.float32))
    _, hs = jax.lax.scan(step, init, x)
    return hs


def ref_forward(sentence, params):
    emb = jnp.take(params["embedding"], sentence, axis=0)
    x = jnp.transpose(emb, (1, 0, 2)).astype(jnp.float32)
    for lp in params["lstm"]:
        fwd = _ref_lstm_layer(x, *lp["fwd"])
        bwd = _ref_lstm_layer(x[::-1], *lp["bwd"])[::-1]
        x = jnp.concatenate([fwd, bwd], axis=-1)
    logits = x[-1] @ params["w_out_t"] + params["b_out"]
    return jax.nn.log_softmax(logits, axis=1)


# ----------------------------------------------------------------------------
# Deterministic parameter init (shapes match nn.Embedding / nn.LSTM / nn.Linear)
# ----------------------------------------------------------------------------
def init_params(key, vocab_size, embedding_dim, hidden_dim, output_dim, n_layers):
    H = hidden_dim
    k_lstm = 1.0 / jnp.sqrt(H)
    keys = jax.random.split(key, 2 + n_layers * 2)

    params = {}
    params["embedding"] = jax.random.normal(
        keys[0], (vocab_size, embedding_dim), jnp.float32)

    lstm_layers = []
    for layer in range(n_layers):
        d_in = embedding_dim if layer == 0 else 2 * H
        layer_params = {}
        for d_idx, dname in enumerate(("fwd", "bwd")):
            kk = jax.random.split(keys[2 + layer * 2 + d_idx], 4)
            w_ih = jax.random.uniform(kk[0], (4 * H, d_in), jnp.float32, -k_lstm, k_lstm)
            w_hh = jax.random.uniform(kk[1], (4 * H, H), jnp.float32, -k_lstm, k_lstm)
            b_ih = jax.random.uniform(kk[2], (4 * H,), jnp.float32, -k_lstm, k_lstm)
            b_hh = jax.random.uniform(kk[3], (4 * H,), jnp.float32, -k_lstm, k_lstm)
            w_comb = jnp.concatenate([w_ih.T, w_hh.T], axis=0)    # [d_in+H, 4H]
            layer_params[dname] = (w_comb, (b_ih + b_hh).reshape(1, 4 * H))
        lstm_layers.append(layer_params)
    params["lstm"] = lstm_layers

    k_lin = 1.0 / jnp.sqrt(2 * H)
    kk = jax.random.split(keys[1], 2)
    w_out = jax.random.uniform(kk[0], (output_dim, 2 * H), jnp.float32, -k_lin, k_lin)
    b_out = jax.random.uniform(kk[1], (output_dim,), jnp.float32, -k_lin, k_lin)
    params["w_out_t"] = w_out.T                                   # [2H, output_dim]
    params["b_out"] = b_out.reshape(1, output_dim)                # [1, output_dim]
    return params


if __name__ == "__main__":
    vocab_size = 50
    embedding_dim = 16
    hidden_dim = 32
    output_dim = 5
    n_layers = 2
    batch = 2
    seq_len = 8

    key = jax.random.PRNGKey(0)
    k_param, k_tokens = jax.random.split(key)
    params = init_params(k_param, vocab_size, embedding_dim, hidden_dim,
                         output_dim, n_layers)
    sentence = jax.random.randint(k_tokens, (batch, seq_len), 0, vocab_size,
                                  dtype=jnp.int32)

    out = lstm_model_forward(sentence, params)
    out = jax.block_until_ready(out)

    ref = ref_forward(sentence, params)
    assert out.shape == (batch, output_dim)
    assert jnp.allclose(out, ref, atol=1e-5, rtol=1e-5), (out, ref)

    print("KERNEL_OK")
</pallas_src>

<mosaic_0001>
module attributes {stable_mosaic.version = 11 : i64} {
  func.func @_fused_lstm_kernel(%arg0: memref<8x8x16xf32, #tpu.memory_space<vmem>>, %arg1: memref<48x128xf32, #tpu.memory_space<vmem>>, %arg2: memref<1x128xf32, #tpu.memory_space<vmem>>, %arg3: memref<48x128xf32, #tpu.memory_space<vmem>>, %arg4: memref<1x128xf32, #tpu.memory_space<vmem>>, %arg5: memref<96x128xf32, #tpu.memory_space<vmem>>, %arg6: memref<1x128xf32, #tpu.memory_space<vmem>>, %arg7: memref<96x128xf32, #tpu.memory_space<vmem>>, %arg8: memref<1x128xf32, #tpu.memory_space<vmem>>, %arg9: memref<64x5xf32, #tpu.memory_space<vmem>>, %arg10: memref<1x5xf32, #tpu.memory_space<vmem>>, %arg11: memref<8x5xf32, #tpu.memory_space<vmem>>, %arg12: memref<8x8x32xf32, #tpu.memory_space<vmem>>, %arg13: memref<8x8x32xf32, #tpu.memory_space<vmem>>, %arg14: memref<8x32xf32, #tpu.memory_space<vmem>>, %arg15: memref<8x32xf32, #tpu.memory_space<vmem>>, %arg16: memref<8x32xf32, #tpu.memory_space<vmem>>, %arg17: memref<8x32xf32, #tpu.memory_space<vmem>>) attributes {dimension_semantics = [], scalar_prefetch = 0 : i64, scratch_operands = 6 : i64, tpu.core_type = #tpu.core_type<tc>} {
    %c0 = arith.constant 0 : index
    %c0_0 = arith.constant 0 : index
    %0 = vector.load %arg1[%c0, %c0_0] : memref<48x128xf32, #tpu.memory_space<vmem>>, vector<48x128xf32>
    %c0_1 = arith.constant 0 : index
    %c0_2 = arith.constant 0 : index
    %1 = vector.load %arg3[%c0_1, %c0_2] : memref<48x128xf32, #tpu.memory_space<vmem>>, vector<48x128xf32>
    %c0_3 = arith.constant 0 : index
    %c0_4 = arith.constant 0 : index
    %2 = vector.load %arg5[%c0_3, %c0_4] : memref<96x128xf32, #tpu.memory_space<vmem>>, vector<96x128xf32>
    %c0_5 = arith.constant 0 : index
    %c0_6 = arith.constant 0 : index
    %3 = vector.load %arg7[%c0_5, %c0_6] : memref<96x128xf32, #tpu.memory_space<vmem>>, vector<96x128xf32>
    %c0_7 = arith.constant 0 : index
    %c0_8 = arith.constant 0 : index
    %4 = vector.load %arg2[%c0_7, %c0_8] : memref<1x128xf32, #tpu.memory_space<vmem>>, vector<1x128xf32>
    %5 = vector.shape_cast %4 : vector<1x128xf32> to vector<1x128xf32>
    %6 = vector.broadcast %5 : vector<1x128xf32> to vector<8x128xf32>
    %c0_9 = arith.constant 0 : index
    %c0_10 = arith.constant 0 : index
    %7 = vector.load %arg4[%c0_9, %c0_10] : memref<1x128xf32, #tpu.memory_space<vmem>>, vector<1x128xf32>
    %8 = vector.shape_cast %7 : vector<1x128xf32> to vector<1x128xf32>
    %9 = vector.broadcast %8 : vector<1x128xf32> to vector<8x128xf32>
    %c0_11 = arith.constant 0 : index
    %c0_12 = arith.constant 0 : index
    %10 = vector.load %arg6[%c0_11, %c0_12] : memref<1x128xf32, #tpu.memory_space<vmem>>, vector<1x128xf32>
    %11 = vector.shape_cast %10 : vector<1x128xf32> to vector<1x128xf32>
    %12 = vector.broadcast %11 : vector<1x128xf32> to vector<8x128xf32>
    %c0_13 = arith.constant 0 : index
    %c0_14 = arith.constant 0 : index
    %13 = vector.load %arg8[%c0_13, %c0_14] : memref<1x128xf32, #tpu.memory_space<vmem>>, vector<1x128xf32>
    %14 = vector.shape_cast %13 : vector<1x128xf32> to vector<1x128xf32>
    %15 = vector.broadcast %14 : vector<1x128xf32> to vector<8x128xf32>
    %cst = arith.constant 0.000000e+00 : f32
    %16 = vector.broadcast %cst : f32 to vector<8x32xf32>
    %c0_15 = arith.constant 0 : index
    %c0_16 = arith.constant 0 : index
    %17 = vector.load %arg14[%c0_15, %c0_16] : memref<8x32xf32, #tpu.memory_space<vmem>>, vector<8x32xf32>
    tpu.vector_store %arg14[%c0_15, %c0_16], %16 {strides = array<i32>} : memref<8x32xf32, #tpu.memory_space<vmem>>, vector<8x32xf32>,
    %c0_17 = arith.constant 0 : index
    %c0_18 = arith.constant 0 : index
    %18 = vector.load %arg15[%c0_17, %c0_18] : memref<8x32xf32, #tpu.memory_space<vmem>>, vector<8x32xf32>
    tpu.vector_store %arg15[%c0_17, %c0_18], %16 {strides = array<i32>} : memref<8x32xf32, #tpu.memory_space<vmem>>, vector<8x32xf32>,
    %c0_19 = arith.constant 0 : index
    %c0_20 = arith.constant 0 : index
    %19 = vector.load %arg16[%c0_19, %c0_20] : memref<8x32xf32, #tpu.memory_space<vmem>>, vector<8x32xf32>
    tpu.vector_store %arg16[%c0_19, %c0_20], %16 {strides = array<i32>} : memref<8x32xf32, #tpu.memory_space<vmem>>, vector<8x32xf32>,
    %c0_21 = arith.constant 0 : index
    %c0_22 = arith.constant 0 : index
    %20 = vector.load %arg17[%c0_21, %c0_22] : memref<8x32xf32, #tpu.memory_space<vmem>>, vector<8x32xf32>
    tpu.vector_store %arg17[%c0_21, %c0_22], %16 {strides = array<i32>} : memref<8x32xf32, #tpu.memory_space<vmem>>, vector<8x32xf32>,
    %c0_i32 = arith.constant 0 : i32
    %c1_i32 = arith.constant 1 : i32
    %21 = arith.muli %c0_i32, %c1_i32 : i32
    %c0_i32_23 = arith.constant 0 : i32
    %22 = arith.addi %c0_i32_23, %21 : i32
    %23 = arith.index_cast %22 : i32 to index
    %c0_24 = arith.constant 0 : index
    %c0_25 = arith.constant 0 : index
    %24 = vector.load %arg0[%23, %c0_24, %c0_25] : memref<8x8x16xf32, #tpu.memory_space<vmem>>, vector<1x8x16xf32>
    %25 = vector.shape_cast %24 : vector<1x8x16xf32> to vector<8x16xf32>
    %c7_i32 = arith.constant 7 : i32
    %26 = arith.subi %c7_i32, %22 : i32
    %27 = arith.index_cast %26 : i32 to index
    %c0_26 = arith.constant 0 : index
    %c0_27 = arith.constant 0 : index
    %28 = vector.load %arg0[%27, %c0_26, %c0_27] : memref<8x8x16xf32, #tpu.memory_space<vmem>>, vector<1x8x16xf32>
    %29 = vector.shape_cast %28 : vector<1x8x16xf32> to vector<8x16xf32>
    %c0_28 = arith.constant 0 : index
    %c0_29 = arith.constant 0 : index
    %30 = vector.load %arg14[%c0_28, %c0_29] : memref<8x32xf32, #tpu.memory_space<vmem>>, vector<8x32xf32>
    %31 = tpu.concatenate %25, %30 in 1 : vector<8x16xf32>, vector<8x32xf32> -> vector<8x48xf32>
    %cst_30 = arith.constant dense<0.000000e+00> : vector<8x128xf32>
    %32 = tpu.matmul %31, %0, %cst_30 {dimension_numbers = #tpu.dot_dimension_numbers<[1], [0], [0], [1], [0, 0, 1, 1], [], []>} : vector<8x48xf32>, vector<48x128xf32>, vector<8x128xf32> -> vector<8x128xf32>
    %33 = arith.addf %32, %6 : vector<8x128xf32>
    %c0_31 = arith.constant 0 : index
    %c0_32 = arith.constant 0 : index
    %34 = vector.load %arg16[%c0_31, %c0_32] : memref<8x32xf32, #tpu.memory_space<vmem>>, vector<8x32xf32>
    %35 = tpu.concatenate %29, %34 in 1 : vector<8x16xf32>, vector<8x32xf32> -> vector<8x48xf32>
    %cst_33 = arith.constant dense<0.000000e+00> : vector<8x128xf32>
    %36 = tpu.matmul %35, %1, %cst_33 {dimension_numbers = #tpu.dot_dimension_numbers<[1], [0], [0], [1], [0, 0, 1, 1], [], []>} : vector<8x48xf32>, vector<48x128xf32>, vector<8x128xf32> -> vector<8x128xf32>
    %37 = arith.addf %36, %9 : vector<8x128xf32>
    %c0_34 = arith.constant 0 : index
    %c0_35 = arith.constant 0 : index
    %38 = vector.load %arg15[%c0_34, %c0_35] : memref<8x32xf32, #tpu.memory_space<vmem>>, vector<8x32xf32>
    %39 = vector.extract_strided_slice %33 {offsets = [0, 0], sizes = [8, 32], strides = [1, 1]} : vector<8x128xf32> to vector<8x32xf32>
    %40 = arith.negf %39 : vector<8x32xf32>
    %41 = math.exp %40 : vector<8x32xf32>
    %cst_36 = arith.constant 1.000000e+00 : f32
    %42 = vector.broadcast %cst_36 : f32 to vector<8x32xf32>
    %43 = arith.addf %42, %41 : vector<8x32xf32>
    %44 = arith.divf %42, %43 : vector<8x32xf32>
    %45 = vector.extract_strided_slice %33 {offsets = [0, 32], sizes = [8, 32], strides = [1, 1]} : vector<8x128xf32> to vector<8x32xf32>
    %46 = arith.negf %45 : vector<8x32xf32>
    %47 = math.exp %46 : vector<8x32xf32>
    %cst_37 = arith.constant 1.000000e+00 : f32
    %48 = vector.broadcast %cst_37 : f32 to vector<8x32xf32>
    %49 = arith.addf %48, %47 : vector<8x32xf32>
    %50 = arith.divf %48, %49 : vector<8x32xf32>
    %51 = vector.extract_strided_slice %33 {offsets = [0, 64], sizes = [8, 32], strides = [1, 1]} : vector<8x128xf32> to vector<8x32xf32>
    %52 = math.tanh %51 : vector<8x32xf32>
    %53 = vector.extract_strided_slice %33 {offsets = [0, 96], sizes = [8, 32], strides = [1, 1]} : vector<8x128xf32> to vector<8x32xf32>
    %54 = arith.negf %53 : vector<8x32xf32>
    %55 = math.exp %54 : vector<8x32xf32>
    %cst_38 = arith.constant 1.000000e+00 : f32
    %56 = vector.broadcast %cst_38 : f32 to vector<8x32xf32>
    %57 = arith.addf %56, %55 : vector<8x32xf32>
    %58 = arith.divf %56, %57 : vector<8x32xf32>
    %59 = arith.mulf %50, %38 : vector<8x32xf32>
    %60 = arith.mulf %44, %52 : vector<8x32xf32>
    %61 = arith.addf %59, %60 : vector<8x32xf32>
    %62 = math.tanh %61 : vector<8x32xf32>
    %63 = arith.mulf %58, %62 : vector<8x32xf32>
    %c0_39 = arith.constant 0 : index
    %c0_40 = arith.constant 0 : index
    %64 = vector.load %arg17[%c0_39, %c0_40] : memref<8x32xf32, #tpu.memory_space<vmem>>, vector<8x32xf32>
    %65 = vector.extract_strided_slice %37 {offsets = [0, 0], sizes = [8, 32], strides = [1, 1]} : vector<8x128xf32> to vector<8x32xf32>
    %66 = arith.negf %65 : vector<8x32xf32>
    %67 = math.exp %66 : vector<8x32xf32>
    %cst_41 = arith.constant 1.000000e+00 : f32
    %68 = vector.broadcast %cst_41 : f32 to vector<8x32xf32>
    %69 = arith.addf %68, %67 : vector<8x32xf32>
    %70 = arith.divf %68, %69 : vector<8x32xf32>
    %71 = vector.extract_strided_slice %37 {offsets = [0, 32], sizes = [8, 32], strides = [1, 1]} : vector<8x128xf32> to vector<8x32xf32>
    %72 = arith.negf %71 : vector<8x32xf32>
    %73 = math.exp %72 : vector<8x32xf32>
    %cst_42 = arith.constant 1.000000e+00 : f32
    %74 = vector.broadcast %cst_42 : f32 to vector<8x32xf32>
    %75 = arith.addf %74, %73 : vector<8x32xf32>
    %76 = arith.divf %74, %75 : vector<8x32xf32>
    %77 = vector.extract_strided_slice %37 {offsets = [0, 64], sizes = [8, 32], strides = [1, 1]} : vector<8x128xf32> to vector<8x32xf32>
    %78 = math.tanh %77 : vector<8x32xf32>
    %79 = vector.extract_strided_slice %37 {offsets = [0, 96], sizes = [8, 32], strides = [1, 1]} : vector<8x128xf32> to vector<8x32xf32>
    %80 = arith.negf %79 : vector<8x32xf32>
    %81 = math.exp %80 : vector<8x32xf32>
    %cst_43 = arith.constant 1.000000e+00 : f32
    %82 = vector.broadcast %cst_43 : f32 to vector<8x32xf32>
    %83 = arith.addf %82, %81 : vector<8x32xf32>
    %84 = arith.divf %82, %83 : vector<8x32xf32>
    %85 = arith.mulf %76, %64 : vector<8x32xf32>
    %86 = arith.mulf %70, %78 : vector<8x32xf32>
    %87 = arith.addf %85, %86 : vector<8x32xf32>
    %88 = math.tanh %87 : vector<8x32xf32>
    %89 = arith.mulf %84, %88 : vector<8x32xf32>
    %c0_44 = arith.constant 0 : index
    %c0_45 = arith.constant 0 : index
    %90 = vector.load %arg14[%c0_44, %c0_45] : memref<8x32xf32, #tpu.memory_space<vmem>>, vector<8x32xf32>
    tpu.vector_store %arg14[%c0_44, %c0_45], %63 {strides = array<i32>} : memref<8x32xf32, #tpu.memory_space<vmem>>, vector<8x32xf32>,
    %c0_46 = arith.constant 0 : index
    %c0_47 = arith.constant 0 : index
    %91 = vector.load %arg15[%c0_46, %c0_47] : memref<8x32xf32, #tpu.memory_space<vmem>>, vector<8x32xf32>
    tpu.vector_store %arg15[%c0_46, %c0_47], %61 {strides = array<i32>} : memref<8x32xf32, #tpu.memory_space<vmem>>, vector<8x32xf32>,
    %c0_48 = arith.constant 0 : index
    %c0_49 = arith.constant 0 : index
    %92 = vector.load %arg16[%c0_48, %c0_49] : memref<8x32xf32, #tpu.memory_space<vmem>>, vector<8x32xf32>
    tpu.vector_store %arg16[%c0_48, %c0_49], %89 {strides = array<i32>} : memref<8x32xf32, #tpu.memory_space<vmem>>, vector<8x32xf32>,
    %c0_50 = arith.constant 0 : index
    %c0_51 = arith.constant 0 : index
    %93 = vector.load %arg17[%c0_50, %c0_51] : memref<8x32xf32, #tpu.memory_space<vmem>>, vector<8x32xf32>
    tpu.vector_store %arg17[%c0_50, %c0_51], %87 {strides = array<i32>} : memref<8x32xf32, #tpu.memory_space<vmem>>, vector<8x32xf32>,
    %94 = arith.index_cast %22 : i32 to index
    %c0_52 = arith.constant 0 : index
    %c0_53 = arith.constant 0 : index
    %95 = vector.load %arg12[%94, %c0_52, %c0_53] : memref<8x8x32xf32, #tpu.memory_space<vmem>>, vector<1x8x32xf32>
    %96 = vector.shape_cast %95 : vector<1x8x32xf32> to vector<8x32xf32>
    %97 = vector.shape_cast %63 : vector<8x32xf32> to vector<1x8x32xf32>
    tpu.vector_store %arg12[%94, %c0_52, %c0_53], %97 {strides = array<i32>} : memref<8x8x32xf32, #tpu.memory_space<vmem>>, vector<1x8x32xf32>,
    %c7_i32_54 = arith.constant 7 : i32
    %98 = arith.subi %c7_i32_54, %22 : i32
    %99 = arith.index_cast %98 : i32 to index
    %c0_55 = arith.constant 0 : index
    %c0_56 = arith.constant 0 : index
    %100 = vector.load %arg13[%99, %c0_55, %c0_56] : memref<8x8x32xf32, #tpu.memory_space<vmem>>, vector<1x8x32xf32>
    %101 = vector.shape_cast %100 : vector<1x8x32xf32> to vector<8x32xf32>
    %102 = vector.shape_cast %89 : vector<8x32xf32> to vector<1x8x32xf32>
    tpu.vector_store %arg13[%99, %c0_55, %c0_56], %102 {strides = array<i32>} : memref<8x8x32xf32, #tpu.memory_space<vmem>>, vector<1x8x32xf32>,
    %c1_i32_57 = arith.constant 1 : i32
    %c1_i32_58 = arith.constant 1 : i32
    %103 = arith.muli %c1_i32_57, %c1_i32_58 : i32
    %c0_i32_59 = arith.constant 0 : i32
    %104 = arith.addi %c0_i32_59, %103 : i32
    %105 = arith.index_cast %104 : i32 to index
    %c0_60 = arith.constant 0 : index
    %c0_61 = arith.constant 0 : index
    %106 = vector.load %arg0[%105, %c0_60, %c0_61] : memref<8x8x16xf32, #tpu.memory_space<vmem>>, vector<1x8x16xf32>
    %107 = vector.shape_cast %106 : vector<1x8x16xf32> to vector<8x16xf32>
    %c7_i32_62 = arith.constant 7 : i32
    %108 = arith.subi %c7_i32_62, %104 : i32
    %109 = arith.index_cast %108 : i32 to index
    %c0_63 = arith.constant 0 : index
    %c0_64 = arith.constant 0 : index
    %110 = vector.load %arg0[%109, %c0_63, %c0_64] : memref<8x8x16xf32, #tpu.memory_space<vmem>>, vector<1x8x16xf32>
    %111 = vector.shape_cast %110 : vector<1x8x16xf32> to vector<8x16xf32>
    %c0_65 = arith.constant 0 : index
    %c0_66 = arith.constant 0 : index
    %112 = vector.load %arg14[%c0_65, %c0_66] : memref<8x32xf32, #tpu.memory_space<vmem>>, vector<8x32xf32>
    %113 = tpu.concatenate %107, %112 in 1 : vector<8x16xf32>, vector<8x32xf32> -> vector<8x48xf32>
    %cst_67 = arith.constant dense<0.000000e+00> : vector<8x128xf32>
    %114 = tpu.matmul %113, %0, %cst_67 {dimension_numbers = #tpu.dot_dimension_numbers<[1], [0], [0], [1], [0, 0, 1, 1], [], []>} : vector<8x48xf32>, vector<48x128xf32>, vector<8x128xf32> -> vector<8x128xf32>
    %115 = arith.addf %114, %6 : vector<8x128xf32>
    %c0_68 = arith.constant 0 : index
    %c0_69 = arith.constant 0 : index
    %116 = vector.load %arg16[%c0_68, %c0_69] : memref<8x32xf32, #tpu.memory_space<vmem>>, vector<8x32xf32>
    %117 = tpu.concatenate %111, %116 in 1 : vector<8x16xf32>, vector<8x32xf32> -> vector<8x48xf32>
    %cst_70 = arith.constant dense<0.000000e+00> : vector<8x128xf32>
    %118 = tpu.matmul %117, %1, %cst_70 {dimension_numbers = #tpu.dot_dimension_numbers<[1], [0], [0], [1], [0, 0, 1, 1], [], []>} : vector<8x48xf32>, vector<48x128xf32>, vector<8x128xf32> -> vector<8x128xf32>
    %119 = arith.addf %118, %9 : vector<8x128xf32>
    %c0_71 = arith.constant 0 : index
    %c0_72 = arith.constant 0 : index
    %120 = vector.load %arg15[%c0_71, %c0_72] : memref<8x32xf32, #tpu.memory_space<vmem>>, vector<8x32xf32>
    %121 = vector.extract_strided_slice %115 {offsets = [0, 0], sizes = [8, 32], strides = [1, 1]} : vector<8x128xf32> to vector<8x32xf32>
    %122 = arith.negf %121 : vector<8x32xf32>
    %123 = math.exp %122 : vector<8x32xf32>
    %cst_73 = arith.constant 1.000000e+00 : f32
    %124 = vector.broadcast %cst_73 : f32 to vector<8x32xf32>
    %125 = arith.addf %124, %123 : vector<8x32xf32>
    %126 = arith.divf %124, %125 : vector<8x32xf32>
    %127 = vector.extract_strided_slice %115 {offsets = [0, 32], sizes = [8, 32], strides = [1, 1]} : vector<8x128xf32> to vector<8x32xf32>
    %128 = arith.negf %127 : vector<8x32xf32>
    %129 = math.exp %128 : vector<8x32xf32>
    %cst_74 = arith.constant 1.000000e+00 : f32
    %130 = vector.broadcast %cst_74 : f32 to vector<8x32xf32>
    %131 = arith.addf %130, %129 : vector<8x32xf32>
    %132 = arith.divf %130, %131 : vector<8x32xf32>
    %133 = vector.extract_strided_slice %115 {offsets = [0, 64], sizes = [8, 32], strides = [1, 1]} : vector<8x128xf32> to vector<8x32xf32>
    %134 = math.tanh %133 : vector<8x32xf32>
    %135 = vector.extract_strided_slice %115 {offsets = [0, 96], sizes = [8, 32], strides = [1, 1]} : vector<8x128xf32> to vector<8x32xf32>
    %136 = arith.negf %135 : vector<8x32xf32>
    %137 = math.exp %136 : vector<8x32xf32>
    %cst_75 = arith.constant 1.000000e+00 : f32
    %138 = vector.broadcast %cst_75 : f32 to vector<8x32xf32>
    %139 = arith.addf %138, %137 : vector<8x32xf32>
    %140 = arith.divf %138, %139 : vector<8x32xf32>
    %141 = arith.mulf %132, %120 : vector<8x32xf32>
    %142 = arith.mulf %126, %134 : vector<8x32xf32>
    %143 = arith.addf %141, %142 : vector<8x32xf32>
    %144 = math.tanh %143 : vector<8x32xf32>
    %145 = arith.mulf %140, %144 : vector<8x32xf32>
    %c0_76 = arith.constant 0 : index
    %c0_77 = arith.constant 0 : index
    %146 = vector.load %arg17[%c0_76, %c0_77] : memref<8x32xf32, #tpu.memory_space<vmem>>, vector<8x32xf32>
    %147 = vector.extract_strided_slice %119 {offsets = [0, 0], sizes = [8, 32], strides = [1, 1]} : vector<8x128xf32> to vector<8x32xf32>
    %148 = arith.negf %147 : vector<8x32xf32>
    %149 = math.exp %148 : vector<8x32xf32>
    %cst_78 = arith.constant 1.000000e+00 : f32
    %150 = vector.broadcast %cst_78 : f32 to vector<8x32xf32>
    %151 = arith.addf %150, %149 : vector<8x32xf32>
    %152 = arith.divf %150, %151 : vector<8x32xf32>
    %153 = vector.extract_strided_slice %119 {offsets = [0, 32], sizes = [8, 32], strides = [1, 1]} : vector<8x128xf32> to vector<8x32xf32>
    %154 = arith.negf %153 : vector<8x32xf32>
    %155 = math.exp %154 : vector<8x32xf32>
    %cst_79 = arith.constant 1.000000e+00 : f32
    %156 = vector.broadcast %cst_79 : f32 to vector<8x32xf32>
    %157 = arith.addf %156, %155 : vector<8x32xf32>
    %158 = arith.divf %156, %157 : vector<8x32xf32>
    %159 = vector.extract_strided_slice %119 {offsets = [0, 64], sizes = [8, 32], strides = [1, 1]} : vector<8x128xf32> to vector<8x32xf32>
    %160 = math.tanh %159 : vector<8x32xf32>
    %161 = vector.extract_strided_slice %119 {offsets = [0, 96], sizes = [8, 32], strides = [1, 1]} : vector<8x128xf32> to vector<8x32xf32>
    %162 = arith.negf %161 : vector<8x32xf32>
    %163 = math.exp %162 : vector<8x32xf32>
    %cst_80 = arith.constant 1.000000e+00 : f32
    %164 = vector.broadcast %cst_80 : f32 to vector<8x32xf32>
    %165 = arith.addf %164, %163 : vector<8x32xf32>
    %166 = arith.divf %164, %165 : vector<8x32xf32>
    %167 = arith.mulf %158, %146 : vector<8x32xf32>
    %168 = arith.mulf %152, %160 : vector<8x32xf32>
    %169 = arith.addf %167, %168 : vector<8x32xf32>
    %170 = math.tanh %169 : vector<8x32xf32>
    %171 = arith.mulf %166, %170 : vector<8x32xf32>
    %c0_81 = arith.constant 0 : index
    %c0_82 = arith.constant 0 : index
    %172 = vector.load %arg14[%c0_81, %c0_82] : memref<8x32xf32, #tpu.memory_space<vmem>>, vector<8x32xf32>
    tpu.vector_store %arg14[%c0_81, %c0_82], %145 {strides = array<i32>} : memref<8x32xf32, #tpu.memory_space<vmem>>, vector<8x32xf32>,
    %c0_83 = arith.constant 0 : index
    %c0_84 = arith.constant 0 : index
    %173 = vector.load %arg15[%c0_83, %c0_84] : memref<8x32xf32, #tpu.memory_space<vmem>>, vector<8x32xf32>
    tpu.vector_store %arg15[%c0_83, %c0_84], %143 {strides = array<i32>} : memref<8x32xf32, #tpu.memory_space<vmem>>, vector<8x32xf32>,
    %c0_85 = arith.constant 0 : index
    %c0_86 = arith.constant 0 : index
    %174 = vector.load %arg16[%c0_85, %c0_86] : memref<8x32xf32, #tpu.memory_space<vmem>>, vector<8x32xf32>
    tpu.vector_store %arg16[%c0_85, %c0_86], %171 {strides = array<i32>} : memref<8x32xf32, #tpu.memory_space<vmem>>, vector<8x32xf32>,
    %c0_87 = arith.constant 0 : index
    %c0_88 = arith.constant 0 : index
    %175 = vector.load %arg17[%c0_87, %c0_88] : memref<8x32xf32, #tpu.memory_space<vmem>>, vector<8x32xf32>
    tpu.vector_store %arg17[%c0_87, %c0_88], %169 {strides = array<i32>} : memref<8x32xf32, #tpu.memory_space<vmem>>, vector<8x32xf32>,
    %176 = arith.index_cast %104 : i32 to index
    %c0_89 = arith.constant 0 : index
    %c0_90 = arith.constant 0 : index
    %177 = vector.load %arg12[%176, %c0_89, %c0_90] : memref<8x8x32xf32, #tpu.memory_space<vmem>>, vector<1x8x32xf32>
    %178 = vector.shape_cast %177 : vector<1x8x32xf32> to vector<8x32xf32>
    %179 = vector.shape_cast %145 : vector<8x32xf32> to vector<1x8x32xf32>
    tpu.vector_store %arg12[%176, %c0_89, %c0_90], %179 {strides = array<i32>} : memref<8x8x32xf32, #tpu.memory_space<vmem>>, vector<1x8x32xf32>,
    %c7_i32_91 = arith.constant 7 : i32
    %180 = arith.subi %c7_i32_91, %104 : i32
    %181 = arith.index_cast %180 : i32 to index
    %c0_92 = arith.constant 0 : index
    %c0_93 = arith.constant 0 : index
    %182 = vector.load %arg13[%181, %c0_92, %c0_93] : memref<8x8x32xf32, #tpu.memory_space<vmem>>, vector<1x8x32xf32>
    %183 = vector.shape_cast %182 : vector<1x8x32xf32> to vector<8x32xf32>
    %184 = vector.shape_cast %171 : vector<8x32xf32> to vector<1x8x32xf32>
    tpu.vector_store %arg13[%181, %c0_92, %c0_93], %184 {strides = array<i32>} : memref<8x8x32xf32, #tpu.memory_space<vmem>>, vector<1x8x32xf32>,
    %c2_i32 = arith.constant 2 : i32
    %c1_i32_94 = arith.constant 1 : i32
    %185 = arith.muli %c2_i32, %c1_i32_94 : i32
    %c0_i32_95 = arith.constant 0 : i32
    %186 = arith.addi %c0_i32_95, %185 : i32
    %187 = arith.index_cast %186 : i32 to index
    %c0_96 = arith.constant 0 : index
    %c0_97 = arith.constant 0 : index
    %188 = vector.load %arg0[%187, %c0_96, %c0_97] : memref<8x8x16xf32, #tpu.memory_space<vmem>>, vector<1x8x16xf32>
    %189 = vector.shape_cast %188 : vector<1x8x16xf32> to vector<8x16xf32>
    %c7_i32_98 = arith.constant 7 : i32
    %190 = arith.subi %c7_i32_98, %186 : i32
    %191 = arith.index_cast %190 : i32 to index
    %c0_99 = arith.constant 0 : index
    %c0_100 = arith.constant 0 : index
    %192 = vector.load %arg0[%191, %c0_99, %c0_100] : memref<8x8x16xf32, #tpu.memory_space<vmem>>, vector<1x8x16xf32>
    %193 = vector.shape_cast %192 : vector<1x8x16xf32> to vector<8x16xf32>
    %c0_101 = arith.constant 0 : index
    %c0_102 = arith.constant 0 : index
    %194 = vector.load %arg14[%c0_101, %c0_102] : memref<8x32xf32, #tpu.memory_space<vmem>>, vector<8x32xf32>
    %195 = tpu.concatenate %189, %194 in 1 : vector<8x16xf32>, vector<8x32xf32> -> vector<8x48xf32>
    %cst_103 = arith.constant dense<0.000000e+00> : vector<8x128xf32>
    %196 = tpu.matmul %195, %0, %cst_103 {dimension_numbers = #tpu.dot_dimension_numbers<[1], [0], [0], [1], [0, 0, 1, 1], [], []>} : vector<8x48xf32>, vector<48x128xf32>, vector<8x128xf32> -> vector<8x128xf32>
    %197 = arith.addf %196, %6 : vector<8x128xf32>
    %c0_104 = arith.constant 0 : index
    %c0_105 = arith.constant 0 : index
    %198 = vector.load %arg16[%c0_104, %c0_105] : memref<8x32xf32, #tpu.memory_space<vmem>>, vector<8x32xf32>
    %199 = tpu.concatenate %193, %198 in 1 : vector<8x16xf32>, vector<8x32xf32> -> vector<8x48xf32>
    %cst_106 = arith.constant dense<0.000000e+00> : vector<8x128xf32>
    %200 = tpu.matmul %199, %1, %cst_106 {dimension_numbers = #tpu.dot_dimension_numbers<[1], [0], [0], [1], [0, 0, 1, 1], [], []>} : vector<8x48xf32>, vector<48x128xf32>, vector<8x128xf32> -> vector<8x128xf32>
    %201 = arith.addf %200, %9 : vector<8x128xf32>
    %c0_107 = arith.constant 0 : index
    %c0_108 = arith.constant 0 : index
    %202 = vector.load %arg15[%c0_107, %c0_108] : memref<8x32xf32, #tpu.memory_space<vmem>>, vector<8x32xf32>
    %203 = vector.extract_strided_slice %197 {offsets = [0, 0], sizes = [8, 32], strides = [1, 1]} : vector<8x128xf32> to vector<8x32xf32>
    %204 = arith.negf %203 : vector<8x32xf32>
    %205 = math.exp %204 : vector<8x32xf32>
    %cst_109 = arith.constant 1.000000e+00 : f32
    %206 = vector.broadcast %cst_109 : f32 to vector<8x32xf32>
    %207 = arith.addf %206, %205 : vector<8x32xf32>
    %208 = arith.divf %206, %207 : vector<8x32xf32>
    %209 = vector.extract_strided_slice %197 {offsets = [0, 32], sizes = [8, 32], strides = [1, 1]} : vector<8x128xf32> to vector<8x32xf32>
    %210 = arith.negf %209 : vector<8x32xf32>
    %211 = math.exp %210 : vector<8x32xf32>
    %cst_110 = arith.constant 1.000000e+00 : f32
    %212 = vector.broadcast %cst_110 : f32 to vector<8x32xf32>
    %213 = arith.addf %212, %211 : vector<8x32xf32>
    %214 = arith.divf %212, %213 : vector<8x32xf32>
    %215 = vector.extract_strided_slice %197 {offsets = [0, 64], sizes = [8, 32], strides = [1, 1]} : vector<8x128xf32> to vector<8x32xf32>
    %216 = math.tanh %215 : vector<8x32xf32>
    %217 = vector.extract_strided_slice %197 {offsets = [0, 96], sizes = [8, 32], strides = [1, 1]} : vector<8x128xf32> to vector<8x32xf32>
    %218 = arith.negf %217 : vector<8x32xf32>
    %219 = math.exp %218 : vector<8x32xf32>
    %cst_111 = arith.constant 1.000000e+00 : f32
    %220 = vector.broadcast %cst_111 : f32 to vector<8x32xf32>
    %221 = arith.addf %220, %219 : vector<8x32xf32>
    %222 = arith.divf %220, %221 : vector<8x32xf32>
    %223 = arith.mulf %214, %202 : vector<8x32xf32>
    %224 = arith.mulf %208, %216 : vector<8x32xf32>
    %225 = arith.addf %223, %224 : vector<8x32xf32>
    %226 = math.tanh %225 : vector<8x32xf32>
    %227 = arith.mulf %222, %226 : vector<8x32xf32>
    %c0_112 = arith.constant 0 : index
    %c0_113 = arith.constant 0 : index
    %228 = vector.load %arg17[%c0_112, %c0_113] : memref<8x32xf32, #tpu.memory_space<vmem>>, vector<8x32xf32>
    %229 = vector.extract_strided_slice %201 {offsets = [0, 0], sizes = [8, 32], strides = [1, 1]} : vector<8x128xf32> to vector<8x32xf32>
    %230 = arith.negf %229 : vector<8x32xf32>
    %231 = math.exp %230 : vector<8x32xf32>
    %cst_114 = arith.constant 1.000000e+00 : f32
    %232 = vector.broadcast %cst_114 : f32 to vector<8x32xf32>
    %233 = arith.addf %232, %231 : vector<8x32xf32>
    %234 = arith.divf %232, %233 : vector<8x32xf32>
    %235 = vector.extract_strided_slice %201 {offsets = [0, 32], sizes = [8, 32], strides = [1, 1]} : vector<8x128xf32> to vector<8x32xf32>
    %236 = arith.negf %235 : vector<8x32xf32>
    %237 = math.exp %236 : vector<8x32xf32>
    %cst_115 = arith.constant 1.000000e+00 : f32
    %238 = vector.broadcast %cst_115 : f32 to vector<8x32xf32>
    %239 = arith.addf %238, %237 : vector<8x32xf32>
    %240 = arith.divf %238, %239 : vector<8x32xf32>
    %241 = vector.extract_strided_slice %201 {offsets = [0, 64], sizes = [8, 32], strides = [1, 1]} : vector<8x128xf32> to vector<8x32xf32>
    %242 = math.tanh %241 : vector<8x32xf32>
    %243 = vector.extract_strided_slice %201 {offsets = [0, 96], sizes = [8, 32], strides = [1, 1]} : vector<8x128xf32> to vector<8x32xf32>
    %244 = arith.negf %243 : vector<8x32xf32>
    %245 = math.exp %244 : vector<8x32xf32>
    %cst_116 = arith.constant 1.000000e+00 : f32
    %246 = vector.broadcast %cst_116 : f32 to vector<8x32xf32>
    %247 = arith.addf %246, %245 : vector<8x32xf32>
    %248 = arith.divf %246, %247 : vector<8x32xf32>
    %249 = arith.mulf %240, %228 : vector<8x32xf32>
    %250 = arith.mulf %234, %242 : vector<8x32xf32>
    %251 = arith.addf %249, %250 : vector<8x32xf32>
    %252 = math.tanh %251 : vector<8x32xf32>
    %253 = arith.mulf %248, %252 : vector<8x32xf32>
    %c0_117 = arith.constant 0 : index
    %c0_118 = arith.constant 0 : index
    %254 = vector.load %arg14[%c0_117, %c0_118] : memref<8x32xf32, #tpu.memory_space<vmem>>, vector<8x32xf32>
    tpu.vector_store %arg14[%c0_117, %c0_118], %227 {strides = array<i32>} : memref<8x32xf32, #tpu.memory_space<vmem>>, vector<8x32xf32>,
    %c0_119 = arith.constant 0 : index
    %c0_120 = arith.constant 0 : index
    %255 = vector.load %arg15[%c0_119, %c0_120] : memref<8x32xf32, #tpu.memory_space<vmem>>, vector<8x32xf32>
    tpu.vector_store %arg15[%c0_119, %c0_120], %225 {strides = array<i32>} : memref<8x32xf32, #tpu.memory_space<vmem>>, vector<8x32xf32>,
    %c0_121 = arith.constant 0 : index
    %c0_122 = arith.constant 0 : index
    %256 = vector.load %arg16[%c0_121, %c0_122] : memref<8x32xf32, #tpu.memory_space<vmem>>, vector<8x32xf32>
    tpu.vector_store %arg16[%c0_121, %c0_122], %253 {strides = array<i32>} : memref<8x32xf32, #tpu.memory_space<vmem>>, vector<8x32xf32>,
    %c0_123 = arith.constant 0 : index
    %c0_124 = arith.constant 0 : index
    %257 = vector.load %arg17[%c0_123, %c0_124] : memref<8x32xf32, #tpu.memory_space<vmem>>, vector<8x32xf32>
    tpu.vector_store %arg17[%c0_123, %c0_124], %251 {strides = array<i32>} : memref<8x32xf32, #tpu.memory_space<vmem>>, vector<8x32xf32>,
    %258 = arith.index_cast %186 : i32 to index
    %c0_125 = arith.constant 0 : index
    %c0_126 = arith.constant 0 : index
    %259 = vector.load %arg12[%258, %c0_125, %c0_126] : memref<8x8x32xf32, #tpu.memory_space<vmem>>, vector<1x8x32xf32>
    %260 = vector.shape_cast %259 : vector<1x8x32xf32> to vector<8x32xf32>
    %261 = vector.shape_cast %227 : vector<8x32xf32> to vector<1x8x32xf32>
    tpu.vector_store %arg12[%258, %c0_125, %c0_126], %261 {strides = array<i32>} : memref<8x8x32xf32, #tpu.memory_space<vmem>>, vector<1x8x32xf32>,
    %c7_i32_127 = arith.constant 7 : i32
    %262 = arith.subi %c7_i32_127, %186 : i32
    %263 = arith.index_cast %262 : i32 to index
    %c0_128 = arith.constant 0 : index
    %c0_129 = arith.constant 0 : index
    %264 = vector.load %arg13[%263, %c0_128, %c0_129] : memref<8x8x32xf32, #tpu.memory_space<vmem>>, vector<1x8x32xf32>
    %265 = vector.shape_cast %264 : vector<1x8x32xf32> to vector<8x32xf32>
    %266 = vector.shape_cast %253 : vector<8x32xf32> to vector<1x8x32xf32>
    tpu.vector_store %arg13[%263, %c0_128, %c0_129], %266 {strides = array<i32>} : memref<8x8x32xf32, #tpu.memory_space<vmem>>, vector<1x8x32xf32>,
    %c3_i32 = arith.constant 3 : i32
    %c1_i32_130 = arith.constant 1 : i32
    %267 = arith.muli %c3_i32, %c1_i32_130 : i32
    %c0_i32_131 = arith.constant 0 : i32
    %268 = arith.addi %c0_i32_131, %267 : i32
    %269 = arith.index_cast %268 : i32 to index
    %c0_132 = arith.constant 0 : index
    %c0_133 = arith.constant 0 : index
    %270 = vector.load %arg0[%269, %c0_132, %c0_133] : memref<8x8x16xf32, #tpu.memory_space<vmem>>, vector<1x8x16xf32>
    %271 = vector.shape_cast %270 : vector<1x8x16xf32> to vector<8x16xf32>
    %c7_i32_134 = arith.constant 7 : i32
    %272 = arith.subi %c7_i32_134, %268 : i32
    %273 = arith.index_cast %272 : i32 to index
    %c0_135 = arith.constant 0 : index
    %c0_136 = arith.constant 0 : index
    %274 = vector.load %arg0[%273, %c0_135, %c0_136] : memref<8x8x16xf32, #tpu.memory_space<vmem>>, vector<1x8x16xf32>
    %275 = vector.shape_cast %274 : vector<1x8x16xf32> to vector<8x16xf32>
    %c0_137 = arith.constant 0 : index
    %c0_138 = arith.constant 0 : index
    %276 = vector.load %arg14[%c0_137, %c0_138] : memref<8x32xf32, #tpu.memory_space<vmem>>, vector<8x32xf32>
    %277 = tpu.concatenate %271, %276 in 1 : vector<8x16xf32>, vector<8x32xf32> -> vector<8x48xf32>
    %cst_139 = arith.constant dense<0.000000e+00> : vector<8x128xf32>
    %278 = tpu.matmul %277, %0, %cst_139 {dimension_numbers = #tpu.dot_dimension_numbers<[1], [0], [0], [1], [0, 0, 1, 1], [], []>} : vector<8x48xf32>, vector<48x128xf32>, vector<8x128xf32> -> vector<8x128xf32>
    %279 = arith.addf %278, %6 : vector<8x128xf32>
    %c0_140 = arith.constant 0 : index
    %c0_141 = arith.constant 0 : index
    %280 = vector.load %arg16[%c0_140, %c0_141] : memref<8x32xf32, #tpu.memory_space<vmem>>, vector<8x32xf32>
    %281 = tpu.concatenate %275, %280 in 1 : vector<8x16xf32>, vector<8x32xf32> -> vector<8x48xf32>
    %cst_142 = arith.constant dense<0.000000e+00> : vector<8x128xf32>
    %282 = tpu.matmul %281, %1, %cst_142 {dimension_numbers = #tpu.dot_dimension_numbers<[1], [0], [0], [1], [0, 0, 1, 1], [], []>} : vector<8x48xf32>, vector<48x128xf32>, vector<8x128xf32> -> vector<8x128xf32>
    %283 = arith.addf %282, %9 : vector<8x128xf32>
    %c0_143 = arith.constant 0 : index
    %c0_144 = arith.constant 0 : index
    %284 = vector.load %arg15[%c0_143, %c0_144] : memref<8x32xf32, #tpu.memory_space<vmem>>, vector<8x32xf32>
    %285 = vector.extract_strided_slice %279 {offsets = [0, 0], sizes = [8, 32], strides = [1, 1]} : vector<8x128xf32> to vector<8x32xf32>
    %286 = arith.negf %285 : vector<8x32xf32>
    %287 = math.exp %286 : vector<8x32xf32>
    %cst_145 = arith.constant 1.000000e+00 : f32
    %288 = vector.broadcast %cst_145 : f32 to vector<8x32xf32>
    %289 = arith.addf %288, %287 : vector<8x32xf32>
    %290 = arith.divf %288, %289 : vector<8x32xf32>
    %291 = vector.extract_strided_slice %279 {offsets = [0, 32], sizes = [8, 32], strides = [1, 1]} : vector<8x128xf32> to vector<8x32xf32>
    %292 = arith.negf %291 : vector<8x32xf32>
    %293 = math.exp %292 : vector<8x32xf32>
    %cst_146 = arith.constant 1.000000e+00 : f32
    %294 = vector.broadcast %cst_146 : f32 to vector<8x32xf32>
    %295 = arith.addf %294, %293 : vector<8x32xf32>
    %296 = arith.divf %294, %295 : vector<8x32xf32>
    %297 = vector.extract_strided_slice %279 {offsets = [0, 64], sizes = [8, 32], strides = [1, 1]} : vector<8x128xf32> to vector<8x32xf32>
    %298 = math.tanh %297 : vector<8x32xf32>
    %299 = vector.extract_strided_slice %279 {offsets = [0, 96], sizes = [8, 32], strides = [1, 1]} : vector<8x128xf32> to vector<8x32xf32>
    %300 = arith.negf %299 : vector<8x32xf32>
    %301 = math.exp %300 : vector<8x32xf32>
    %cst_147 = arith.constant 1.000000e+00 : f32
    %302 = vector.broadcast %cst_147 : f32 to vector<8x32xf32>
    %303 = arith.addf %302, %301 : vector<8x32xf32>
    %304 = arith.divf %302, %303 : vector<8x32xf32>
    %305 = arith.mulf %296, %284 : vector<8x32xf32>
    %306 = arith.mulf %290, %298 : vector<8x32xf32>
    %307 = arith.addf %305, %306 : vector<8x32xf32>
    %308 = math.tanh %307 : vector<8x32xf32>
    %309 = arith.mulf %304, %308 : vector<8x32xf32>
    %c0_148 = arith.constant 0 : index
    %c0_149 = arith.constant 0 : index
    %310 = vector.load %arg17[%c0_148, %c0_149] : memref<8x32xf32, #tpu.memory_space<vmem>>, vector<8x32xf32>
    %311 = vector.extract_strided_slice %283 {offsets = [0, 0], sizes = [8, 32], strides = [1, 1]} : vector<8x128xf32> to vector<8x32xf32>
    %312 = arith.negf %311 : vector<8x32xf32>
    %313 = math.exp %312 : vector<8x32xf32>
    %cst_150 = arith.constant 1.000000e+00 : f32
    %314 = vector.broadcast %cst_150 : f32 to vector<8x32xf32>
    %315 = arith.addf %314, %313 : vector<8x32xf32>
    %316 = arith.divf %314, %315 : vector<8x32xf32>
    %317 = vector.extract_strided_slice %283 {offsets = [0, 32], sizes = [8, 32], strides = [1, 1]} : vector<8x128xf32> to vector<8x32xf32>
    %318 = arith.negf %317 : vector<8x32xf32>
    %319 = math.exp %318 : vector<8x32xf32>
    %cst_151 = arith.constant 1.000000e+00 : f32
    %320 = vector.broadcast %cst_151 : f32 to vector<8x32xf32>
    %321 = arith.addf %320, %319 : vector<8x32xf32>
    %322 = arith.divf %320, %321 : vector<8x32xf32>
    %323 = vector.extract_strided_slice %283 {offsets = [0, 64], sizes = [8, 32], strides = [1, 1]} : vector<8x128xf32> to vector<8x32xf32>
    %324 = math.tanh %323 : vector<8x32xf32>
    %325 = vector.extract_strided_slice %283 {offsets = [0, 96], sizes = [8, 32], strides = [1, 1]} : vector<8x128xf32> to vector<8x32xf32>
    %326 = arith.negf %325 : vector<8x32xf32>
    %327 = math.exp %326 : vector<8x32xf32>
    %cst_152 = arith.constant 1.000000e+00 : f32
    %328 = vector.broadcast %cst_152 : f32 to vector<8x32xf32>
    %329 = arith.addf %328, %327 : vector<8x32xf32>
    %330 = arith.divf %328, %329 : vector<8x32xf32>
    %331 = arith.mulf %322, %310 : vector<8x32xf32>
    %332 = arith.mulf %316, %324 : vector<8x32xf32>
    %333 = arith.addf %331, %332 : vector<8x32xf32>
    %334 = math.tanh %333 : vector<8x32xf32>
    %335 = arith.mulf %330, %334 : vector<8x32xf32>
    %c0_153 = arith.constant 0 : index
    %c0_154 = arith.constant 0 : index
    %336 = vector.load %arg14[%c0_153, %c0_154] : memref<8x32xf32, #tpu.memory_space<vmem>>, vector<8x32xf32>
    tpu.vector_store %arg14[%c0_153, %c0_154], %309 {strides = array<i32>} : memref<8x32xf32, #tpu.memory_space<vmem>>, vector<8x32xf32>,
    %c0_155 = arith.constant 0 : index
    %c0_156 = arith.constant 0 : index
    %337 = vector.load %arg15[%c0_155, %c0_156] : memref<8x32xf32, #tpu.memory_space<vmem>>, vector<8x32xf32>
    tpu.vector_store %arg15[%c0_155, %c0_156], %307 {strides = array<i32>} : memref<8x32xf32, #tpu.memory_space<vmem>>, vector<8x32xf32>,
    %c0_157 = arith.constant 0 : index
    %c0_158 = arith.constant 0 : index
    %338 = vector.load %arg16[%c0_157, %c0_158] : memref<8x32xf32, #tpu.memory_space<vmem>>, vector<8x32xf32>
    tpu.vector_store %arg16[%c0_157, %c0_158], %335 {strides = array<i32>} : memref<8x32xf32, #tpu.memory_space<vmem>>, vector<8x32xf32>,
    %c0_159 = arith.constant 0 : index
    %c0_160 = arith.constant 0 : index
    %339 = vector.load %arg17[%c0_159, %c0_160] : memref<8x32xf32, #tpu.memory_space<vmem>>, vector<8x32xf32>
    tpu.vector_store %arg17[%c0_159, %c0_160], %333 {strides = array<i32>} : memref<8x32xf32, #tpu.memory_space<vmem>>, vector<8x32xf32>,
    %340 = arith.index_cast %268 : i32 to index
    %c0_161 = arith.constant 0 : index
    %c0_162 = arith.constant 0 : index
    %341 = vector.load %arg12[%340, %c0_161, %c0_162] : memref<8x8x32xf32, #tpu.memory_space<vmem>>, vector<1x8x32xf32>
    %342 = vector.shape_cast %341 : vector<1x8x32xf32> to vector<8x32xf32>
    %343 = vector.shape_cast %309 : vector<8x32xf32> to vector<1x8x32xf32>
    tpu.vector_store %arg12[%340, %c0_161, %c0_162], %343 {strides = array<i32>} : memref<8x8x32xf32, #tpu.memory_space<vmem>>, vector<1x8x32xf32>,
    %c7_i32_163 = arith.constant 7 : i32
    %344 = arith.subi %c7_i32_163, %268 : i32
    %345 = arith.index_cast %344 : i32 to index
    %c0_164 = arith.constant 0 : index
    %c0_165 = arith.constant 0 : index
    %346 = vector.load %arg13[%345, %c0_164, %c0_165] : memref<8x8x32xf32, #tpu.memory_space<vmem>>, vector<1x8x32xf32>
    %347 = vector.shape_cast %346 : vector<1x8x32xf32> to vector<8x32xf32>
    %348 = vector.shape_cast %335 : vector<8x32xf32> to vector<1x8x32xf32>
    tpu.vector_store %arg13[%345, %c0_164, %c0_165], %348 {strides = array<i32>} : memref<8x8x32xf32, #tpu.memory_space<vmem>>, vector<1x8x32xf32>,
    %c4_i32 = arith.constant 4 : i32
    %c1_i32_166 = arith.constant 1 : i32
    %349 = arith.muli %c4_i32, %c1_i32_166 : i32
    %c0_i32_167 = arith.constant 0 : i32
    %350 = arith.addi %c0_i32_167, %349 : i32
    %351 = arith.index_cast %350 : i32 to index
    %c0_168 = arith.constant 0 : index
    %c0_169 = arith.constant 0 : index
    %352 = vector.load %arg0[%351, %c0_168, %c0_169] : memref<8x8x16xf32, #tpu.memory_space<vmem>>, vector<1x8x16xf32>
    %353 = vector.shape_cast %352 : vector<1x8x16xf32> to vector<8x16xf32>
    %c7_i32_170 = arith.constant 7 : i32
    %354 = arith.subi %c7_i32_170, %350 : i32
    %355 = arith.index_cast %354 : i32 to index
    %c0_171 = arith.constant 0 : index
    %c0_172 = arith.constant 0 : index
    %356 = vector.load %arg0[%355, %c0_171, %c0_172] : memref<8x8x16xf32, #tpu.memory_space<vmem>>, vector<1x8x16xf32>
    %357 = vector.shape_cast %356 : vector<1x8x16xf32> to vector<8x16xf32>
    %c0_173 = arith.constant 0 : index
    %c0_174 = arith.constant 0 : index
    %358 = vector.load %arg14[%c0_173, %c0_174] : memref<8x32xf32, #tpu.memory_space<vmem>>, vector<8x32xf32>
    %359 = tpu.concatenate %353, %358 in 1 : vector<8x16xf32>, vector<8x32xf32> -> vector<8x48xf32>
    %cst_175 = arith.constant dense<0.000000e+00> : vector<8x128xf32>
    %360 = tpu.matmul %359, %0, %cst_175 {dimension_numbers = #tpu.dot_dimension_numbers<[1], [0], [0], [1], [0, 0, 1, 1], [], []>} : vector<8x48xf32>, vector<48x128xf32>, vector<8x128xf32> -> vector<8x128xf32>
    %361 = arith.addf %360, %6 : vector<8x128xf32>
    %c0_176 = arith.constant 0 : index
    %c0_177 = arith.constant 0 : index
    %362 = vector.load %arg16[%c0_176, %c0_177] : memref<8x32xf32, #tpu.memory_space<vmem>>, vector<8x32xf32>
    %363 = tpu.concatenate %357, %362 in 1 : vector<8x16xf32>, vector<8x32xf32> -> vector<8x48xf32>
    %cst_178 = arith.constant dense<0.000000e+00> : vector<8x128xf32>
    %364 = tpu.matmul %363, %1, %cst_178 {dimension_numbers = #tpu.dot_dimension_numbers<[1], [0], [0], [1], [0, 0, 1, 1], [], []>} : vector<8x48xf32>, vector<48x128xf32>, vector<8x128xf32> -> vector<8x128xf32>
    %365 = arith.addf %364, %9 : vector<8x128xf32>
    %c0_179 = arith.constant 0 : index
    %c0_180 = arith.constant 0 : index
    %366 = vector.load %arg15[%c0_179, %c0_180] : memref<8x32xf32, #tpu.memory_space<vmem>>, vector<8x32xf32>
    %367 = vector.extract_strided_slice %361 {offsets = [0, 0], sizes = [8, 32], strides = [1, 1]} : vector<8x128xf32> to vector<8x32xf32>
    %368 = arith.negf %367 : vector<8x32xf32>
    %369 = math.exp %368 : vector<8x32xf32>
    %cst_181 = arith.constant 1.000000e+00 : f32
    %370 = vector.broadcast %cst_181 : f32 to vector<8x32xf32>
    %371 = arith.addf %370, %369 : vector<8x32xf32>
    %372 = arith.divf %370, %371 : vector<8x32xf32>
    %373 = vector.extract_strided_slice %361 {offsets = [0, 32], sizes = [8, 32], strides = [1, 1]} : vector<8x128xf32> to vector<8x32xf32>
    %374 = arith.negf %373 : vector<8x32xf32>
    %375 = math.exp %374 : vector<8x32xf32>
    %cst_182 = arith.constant 1.000000e+00 : f32
    %376 = vector.broadcast %cst_182 : f32 to vector<8x32xf32>
    %377 = arith.addf %376, %375 : vector<8x32xf32>
    %378 = arith.divf %376, %377 : vector<8x32xf32>
    %379 = vector.extract_strided_slice %361 {offsets = [0, 64], sizes = [8, 32], strides = [1, 1]} : vector<8x128xf32> to vector<8x32xf32>
    %380 = math.tanh %379 : vector<8x32xf32>
    %381 = vector.extract_strided_slice %361 {offsets = [0, 96], sizes = [8, 32], strides = [1, 1]} : vector<8x128xf32> to vector<8x32xf32>
    %382 = arith.negf %381 : vector<8x32xf32>
    %383 = math.exp %382 : vector<8x32xf32>
    %cst_183 = arith.constant 1.000000e+00 : f32
    %384 = vector.broadcast %cst_183 : f32 to vector<8x32xf32>
    %385 = arith.addf %384, %383 : vector<8x32xf32>
    %386 = arith.divf %384, %385 : vector<8x32xf32>
    %387 = arith.mulf %378, %366 : vector<8x32xf32>
    %388 = arith.mulf %372, %380 : vector<8x32xf32>
    %389 = arith.addf %387, %388 : vector<8x32xf32>
    %390 = math.tanh %389 : vector<8x32xf32>
    %391 = arith.mulf %386, %390 : vector<8x32xf32>
    %c0_184 = arith.constant 0 : index
    %c0_185 = arith.constant 0 : index
    %392 = vector.load %arg17[%c0_184, %c0_185] : memref<8x32xf32, #tpu.memory_space<vmem>>, vector<8x32xf32>
    %393 = vector.extract_strided_slice %365 {offsets = [0, 0], sizes = [8, 32], strides = [1, 1]} : vector<8x128xf32> to vector<8x32xf32>
    %394 = arith.negf %393 : vector<8x32xf32>
    %395 = math.exp %394 : vector<8x32xf32>
    %cst_186 = arith.constant 1.000000e+00 : f32
    %396 = vector.broadcast %cst_186 : f32 to vector<8x32xf32>
    %397 = arith.addf %396, %395 : vector<8x32xf32>
    %398 = arith.divf %396, %397 : vector<8x32xf32>
    %399 = vector.extract_strided_slice %365 {offsets = [0, 32], sizes = [8, 32], strides = [1, 1]} : vector<8x128xf32> to vector<8x32xf32>
    %400 = arith.negf %399 : vector<8x32xf32>
    %401 = math.exp %400 : vector<8x32xf32>
    %cst_187 = arith.constant 1.000000e+00 : f32
    %402 = vector.broadcast %cst_187 : f32 to vector<8x32xf32>
    %403 = arith.addf %402, %401 : vector<8x32xf32>
    %404 = arith.divf %402, %403 : vector<8x32xf32>
    %405 = vector.extract_strided_slice %365 {offsets = [0, 64], sizes = [8, 32], strides = [1, 1]} : vector<8x128xf32> to vector<8x32xf32>
    %406 = math.tanh %405 : vector<8x32xf32>
    %407 = vector.extract_strided_slice %365 {offsets = [0, 96], sizes = [8, 32], strides = [1, 1]} : vector<8x128xf32> to vector<8x32xf32>
    %408 = arith.negf %407 : vector<8x32xf32>
    %409 = math.exp %408 : vector<8x32xf32>
    %cst_188 = arith.constant 1.000000e+00 : f32
    %410 = vector.broadcast %cst_188 : f32 to vector<8x32xf32>
    %411 = arith.addf %410, %409 : vector<8x32xf32>
    %412 = arith.divf %410, %411 : vector<8x32xf32>
    %413 = arith.mulf %404, %392 : vector<8x32xf32>
    %414 = arith.mulf %398, %406 : vector<8x32xf32>
    %415 = arith.addf %413, %414 : vector<8x32xf32>
    %416 = math.tanh %415 : vector<8x32xf32>
    %417 = arith.mulf %412, %416 : vector<8x32xf32>
    %c0_189 = arith.constant 0 : index
    %c0_190 = arith.constant 0 : index
    %418 = vector.load %arg14[%c0_189, %c0_190] : memref<8x32xf32, #tpu.memory_space<vmem>>, vector<8x32xf32>
    tpu.vector_store %arg14[%c0_189, %c0_190], %391 {strides = array<i32>} : memref<8x32xf32, #tpu.memory_space<vmem>>, vector<8x32xf32>,
    %c0_191 = arith.constant 0 : index
    %c0_192 = arith.constant 0 : index
    %419 = vector.load %arg15[%c0_191, %c0_192] : memref<8x32xf32, #tpu.memory_space<vmem>>, vector<8x32xf32>
    tpu.vector_store %arg15[%c0_191, %c0_192], %389 {strides = array<i32>} : memref<8x32xf32, #tpu.memory_space<vmem>>, vector<8x32xf32>,
    %c0_193 = arith.constant 0 : index
    %c0_194 = arith.constant 0 : index
    %420 = vector.load %arg16[%c0_193, %c0_194] : memref<8x32xf32, #tpu.memory_space<vmem>>, vector<8x32xf32>
    tpu.vector_store %arg16[%c0_193, %c0_194], %417 {strides = array<i32>} : memref<8x32xf32, #tpu.memory_space<vmem>>, vector<8x32xf32>,
    %c0_195 = arith.constant 0 : index
    %c0_196 = arith.constant 0 : index
    %421 = vector.load %arg17[%c0_195, %c0_196] : memref<8x32xf32, #tpu.memory_space<vmem>>, vector<8x32xf32>
    tpu.vector_store %arg17[%c0_195, %c0_196], %415 {strides = array<i32>} : memref<8x32xf32, #tpu.memory_space<vmem>>, vector<8x32xf32>,
    %422 = arith.index_cast %350 : i32 to index
    %c0_197 = arith.constant 0 : index
    %c0_198 = arith.constant 0 : index
    %423 = vector.load %arg12[%422, %c0_197, %c0_198] : memref<8x8x32xf32, #tpu.memory_space<vmem>>, vector<1x8x32xf32>
    %424 = vector.shape_cast %423 : vector<1x8x32xf32> to vector<8x32xf32>
    %425 = vector.shape_cast %391 : vector<8x32xf32> to vector<1x8x32xf32>
    tpu.vector_store %arg12[%422, %c0_197, %c0_198], %425 {strides = array<i32>} : memref<8x8x32xf32, #tpu.memory_space<vmem>>, vector<1x8x32xf32>,
    %c7_i32_199 = arith.constant 7 : i32
    %426 = arith.subi %c7_i32_199, %350 : i32
    %427 = arith.index_cast %426 : i32 to index
    %c0_200 = arith.constant 0 : index
    %c0_201 = arith.constant 0 : index
    %428 = vector.load %arg13[%427, %c0_200, %c0_201] : memref<8x8x32xf32, #tpu.memory_space<vmem>>, vector<1x8x32xf32>
    %429 = vector.shape_cast %428 : vector<1x8x32xf32> to vector<8x32xf32>
    %430 = vector.shape_cast %417 : vector<8x32xf32> to vector<1x8x32xf32>
    tpu.vector_store %arg13[%427, %c0_200, %c0_201], %430 {strides = array<i32>} : memref<8x8x32xf32, #tpu.memory_space<vmem>>, vector<1x8x32xf32>,
    %c5_i32 = arith.constant 5 : i32
    %c1_i32_202 = arith.constant 1 : i32
    %431 = arith.muli %c5_i32, %c1_i32_202 : i32
    %c0_i32_203 = arith.constant 0 : i32
    %432 = arith.addi %c0_i32_203, %431 : i32
    %433 = arith.index_cast %432 : i32 to index
    %c0_204 = arith.constant 0 : index
    %c0_205 = arith.constant 0 : index
    %434 = vector.load %arg0[%433, %c0_204, %c0_205] : memref<8x8x16xf32, #tpu.memory_space<vmem>>, vector<1x8x16xf32>
    %435 = vector.shape_cast %434 : vector<1x8x16xf32> to vector<8x16xf32>
    %c7_i32_206 = arith.constant 7 : i32
    %436 = arith.subi %c7_i32_206, %432 : i32
    %437 = arith.index_cast %436 : i32 to index
    %c0_207 = arith.constant 0 : index
    %c0_208 = arith.constant 0 : index
    %438 = vector.load %arg0[%437, %c0_207, %c0_208] : memref<8x8x16xf32, #tpu.memory_space<vmem>>, vector<1x8x16xf32>
    %439 = vector.shape_cast %438 : vector<1x8x16xf32> to vector<8x16xf32>
    %c0_209 = arith.constant 0 : index
    %c0_210 = arith.constant 0 : index
    %440 = vector.load %arg14[%c0_209, %c0_210] : memref<8x32xf32, #tpu.memory_space<vmem>>, vector<8x32xf32>
    %441 = tpu.concatenate %435, %440 in 1 : vector<8x16xf32>, vector<8x32xf32> -> vector<8x48xf32>
    %cst_211 = arith.constant dense<0.000000e+00> : vector<8x128xf32>
    %442 = tpu.matmul %441, %0, %cst_211 {dimension_numbers = #tpu.dot_dimension_numbers<[1], [0], [0], [1], [0, 0, 1, 1], [], []>} : vector<8x48xf32>, vector<48x128xf32>, vector<8x128xf32> -> vector<8x128xf32>
    %443 = arith.addf %442, %6 : vector<8x128xf32>
    %c0_212 = arith.constant 0 : index
    %c0_213 = arith.constant 0 : index
    %444 = vector.load %arg16[%c0_212, %c0_213] : memref<8x32xf32, #tpu.memory_space<vmem>>, vector<8x32xf32>
    %445 = tpu.concatenate %439, %444 in 1 : vector<8x16xf32>, vector<8x32xf32> -> vector<8x48xf32>
    %cst_214 = arith.constant dense<0.000000e+00> : vector<8x128xf32>
    %446 = tpu.matmul %445, %1, %cst_214 {dimension_numbers = #tpu.dot_dimension_numbers<[1], [0], [0], [1], [0, 0, 1, 1], [], []>} : vector<8x48xf32>, vector<48x128xf32>, vector<8x128xf32> -> vector<8x128xf32>
    %447 = arith.addf %446, %9 : vector<8x128xf32>
    %c0_215 = arith.constant 0 : index
    %c0_216 = arith.constant 0 : index
    %448 = vector.load %arg15[%c0_215, %c0_216] : memref<8x32xf32, #tpu.memory_space<vmem>>, vector<8x32xf32>
    %449 = vector.extract_strided_slice %443 {offsets = [0, 0], sizes = [8, 32], strides = [1, 1]} : vector<8x128xf32> to vector<8x32xf32>
    %450 = arith.negf %449 : vector<8x32xf32>
    %451 = math.exp %450 : vector<8x32xf32>
    %cst_217 = arith.constant 1.000000e+00 : f32
    %452 = vector.broadcast %cst_217 : f32 to vector<8x32xf32>
    %453 = arith.addf %452, %451 : vector<8x32xf32>
    %454 = arith.divf %452, %453 : vector<8x32xf32>
    %455 = vector.extract_strided_slice %443 {offsets = [0, 32], sizes = [8, 32], strides = [1, 1]} : vector<8x128xf32> to vector<8x32xf32>
    %456 = arith.negf %455 : vector<8x32xf32>
    %457 = math.exp %456 : vector<8x32xf32>
    %cst_218 = arith.constant 1.000000e+00 : f32
    %458 = vector.broadcast %cst_218 : f32 to vector<8x32xf32>
    %459 = arith.addf %458, %457 : vector<8x32xf32>
    %460 = arith.divf %458, %459 : vector<8x32xf32>
    %461 = vector.extract_strided_slice %443 {offsets = [0, 64], sizes = [8, 32], strides = [1, 1]} : vector<8x128xf32> to vector<8x32xf32>
    %462 = math.tanh %461 : vector<8x32xf32>
    %463 = vector.extract_strided_slice %443 {offsets = [0, 96], sizes = [8, 32], strides = [1, 1]} : vector<8x128xf32> to vector<8x32xf32>
    %464 = arith.negf %463 : vector<8x32xf32>
    %465 = math.exp %464 : vector<8x32xf32>
    %cst_219 = arith.constant 1.000000e+00 : f32
    %466 = vector.broadcast %cst_219 : f32 to vector<8x32xf32>
    %467 = arith.addf %466, %465 : vector<8x32xf32>
    %468 = arith.divf %466, %467 : vector<8x32xf32>
    %469 = arith.mulf %460, %448 : vector<8x32xf32>
    %470 = arith.mulf %454, %462 : vector<8x32xf32>
    %471 = arith.addf %469, %470 : vector<8x32xf32>
    %472 = math.tanh %471 : vector<8x32xf32>
    %473 = arith.mulf %468, %472 : vector<8x32xf32>
    %c0_220 = arith.constant 0 : index
    %c0_221 = arith.constant 0 : index
    %474 = vector.load %arg17[%c0_220, %c0_221] : memref<8x32xf32, #tpu.memory_space<vmem>>, vector<8x32xf32>
    %475 = vector.extract_strided_slice %447 {offsets = [0, 0], sizes = [8, 32], strides = [1, 1]} : vector<8x128xf32> to vector<8x32xf32>
    %476 = arith.negf %475 : vector<8x32xf32>
    %477 = math.exp %476 : vector<8x32xf32>
    %cst_222 = arith.constant 1.000000e+00 : f32
    %478 = vector.broadcast %cst_222 : f32 to vector<8x32xf32>
    %479 = arith.addf %478, %477 : vector<8x32xf32>
    %480 = arith.divf %478, %479 : vector<8x32xf32>
    %481 = vector.extract_strided_slice %447 {offsets = [0, 32], sizes = [8, 32], strides = [1, 1]} : vector<8x128xf32> to vector<8x32xf32>
    %482 = arith.negf %481 : vector<8x32xf32>
    %483 = math.exp %482 : vector<8x32xf32>
    %cst_223 = arith.constant 1.000000e+00 : f32
    %484 = vector.broadcast %cst_223 : f32 to vector<8x32xf32>
    %485 = arith.addf %484, %483 : vector<8x32xf32>
    %486 = arith.divf %484, %485 : vector<8x32xf32>
    %487 = vector.extract_strided_slice %447 {offsets = [0, 64], sizes = [8, 32], strides = [1, 1]} : vector<8x128xf32> to vector<8x32xf32>
    %488 = math.tanh %487 : vector<8x32xf32>
    %489 = vector.extract_strided_slice %447 {offsets = [0, 96], sizes = [8, 32], strides = [1, 1]} : vector<8x128xf32> to vector<8x32xf32>
    %490 = arith.negf %489 : vector<8x32xf32>
    %491 = math.exp %490 : vector<8x32xf32>
    %cst_224 = arith.constant 1.000000e+00 : f32
    %492 = vector.broadcast %cst_224 : f32 to vector<8x32xf32>
    %493 = arith.addf %492, %491 : vector<8x32xf32>
    %494 = arith.divf %492, %493 : vector<8x32xf32>
    %495 = arith.mulf %486, %474 : vector<8x32xf32>
    %496 = arith.mulf %480, %488 : vector<8x32xf32>
    %497 = arith.addf %495, %496 : vector<8x32xf32>
    %498 = math.tanh %497 : vector<8x32xf32>
    %499 = arith.mulf %494, %498 : vector<8x32xf32>
    %c0_225 = arith.constant 0 : index
    %c0_226 = arith.constant 0 : index
    %500 = vector.load %arg14[%c0_225, %c0_226] : memref<8x32xf32, #tpu.memory_space<vmem>>, vector<8x32xf32>
    tpu.vector_store %arg14[%c0_225, %c0_226], %473 {strides = array<i32>} : memref<8x32xf32, #tpu.memory_space<vmem>>, vector<8x32xf32>,
    %c0_227 = arith.constant 0 : index
    %c0_228 = arith.constant 0 : index
    %501 = vector.load %arg15[%c0_227, %c0_228] : memref<8x32xf32, #tpu.memory_space<vmem>>, vector<8x32xf32>
    tpu.vector_store %arg15[%c0_227, %c0_228], %471 {strides = array<i32>} : memref<8x32xf32, #tpu.memory_space<vmem>>, vector<8x32xf32>,
    %c0_229 = arith.constant 0 : index
    %c0_230 = arith.constant 0 : index
    %502 = vector.load %arg16[%c0_229, %c0_230] : memref<8x32xf32, #tpu.memory_space<vmem>>, vector<8x32xf32>
    tpu.vector_store %arg16[%c0_229, %c0_230], %499 {strides = array<i32>} : memref<8x32xf32, #tpu.memory_space<vmem>>, vector<8x32xf32>,
    %c0_231 = arith.constant 0 : index
    %c0_232 = arith.constant 0 : index
    %503 = vector.load %arg17[%c0_231, %c0_232] : memref<8x32xf32, #tpu.memory_space<vmem>>, vector<8x32xf32>
    tpu.vector_store %arg17[%c0_231, %c0_232], %497 {strides = array<i32>} : memref<8x32xf32, #tpu.memory_space<vmem>>, vector<8x32xf32>,
    %504 = arith.index_cast %432 : i32 to index
    %c0_233 = arith.constant 0 : index
    %c0_234 = arith.constant 0 : index
    %505 = vector.load %arg12[%504, %c0_233, %c0_234] : memref<8x8x32xf32, #tpu.memory_space<vmem>>, vector<1x8x32xf32>
    %506 = vector.shape_cast %505 : vector<1x8x32xf32> to vector<8x32xf32>
    %507 = vector.shape_cast %473 : vector<8x32xf32> to vector<1x8x32xf32>
    tpu.vector_store %arg12[%504, %c0_233, %c0_234], %507 {strides = array<i32>} : memref<8x8x32xf32, #tpu.memory_space<vmem>>, vector<1x8x32xf32>,
    %c7_i32_235 = arith.constant 7 : i32
    %508 = arith.subi %c7_i32_235, %432 : i32
    %509 = arith.index_cast %508 : i32 to index
    %c0_236 = arith.constant 0 : index
    %c0_237 = arith.constant 0 : index
    %510 = vector.load %arg13[%509, %c0_236, %c0_237] : memref<8x8x32xf32, #tpu.memory_space<vmem>>, vector<1x8x32xf32>
    %511 = vector.shape_cast %510 : vector<1x8x32xf32> to vector<8x32xf32>
    %512 = vector.shape_cast %499 : vector<8x32xf32> to vector<1x8x32xf32>
    tpu.vector_store %arg13[%509, %c0_236, %c0_237], %512 {strides = array<i32>} : memref<8x8x32xf32, #tpu.memory_space<vmem>>, vector<1x8x32xf32>,
    %c6_i32 = arith.constant 6 : i32
    %c1_i32_238 = arith.constant 1 : i32
    %513 = arith.muli %c6_i32, %c1_i32_238 : i32
    %c0_i32_239 = arith.constant 0 : i32
    %514 = arith.addi %c0_i32_239, %513 : i32
    %515 = arith.index_cast %514 : i32 to index
    %c0_240 = arith.constant 0 : index
    %c0_241 = arith.constant 0 : index
    %516 = vector.load %arg0[%515, %c0_240, %c0_241] : memref<8x8x16xf32, #tpu.memory_space<vmem>>, vector<1x8x16xf32>
    %517 = vector.shape_cast %516 : vector<1x8x16xf32> to vector<8x16xf32>
    %c7_i32_242 = arith.constant 7 : i32
    %518 = arith.subi %c7_i32_242, %514 : i32
    %519 = arith.index_cast %518 : i32 to index
    %c0_243 = arith.constant 0 : index
    %c0_244 = arith.constant 0 : index
    %520 = vector.load %arg0[%519, %c0_243, %c0_244] : memref<8x8x16xf32, #tpu.memory_space<vmem>>, vector<1x8x16xf32>
    %521 = vector.shape_cast %520 : vector<1x8x16xf32> to vector<8x16xf32>
    %c0_245 = arith.constant 0 : index
    %c0_246 = arith.constant 0 : index
    %522 = vector.load %arg14[%c0_245, %c0_246] : memref<8x32xf32, #tpu.memory_space<vmem>>, vector<8x32xf32>
    %523 = tpu.concatenate %517, %522 in 1 : vector<8x16xf32>, vector<8x32xf32> -> vector<8x48xf32>
    %cst_247 = arith.constant dense<0.000000e+00> : vector<8x128xf32>
    %524 = tpu.matmul %523, %0, %cst_247 {dimension_numbers = #tpu.dot_dimension_numbers<[1], [0], [0], [1], [0, 0, 1, 1], [], []>} : vector<8x48xf32>, vector<48x128xf32>, vector<8x128xf32> -> vector<8x128xf32>
    %525 = arith.addf %524, %6 : vector<8x128xf32>
    %c0_248 = arith.constant 0 : index
    %c0_249 = arith.constant 0 : index
    %526 = vector.load %arg16[%c0_248, %c0_249] : memref<8x32xf32, #tpu.memory_space<vmem>>, vector<8x32xf32>
    %527 = tpu.concatenate %521, %526 in 1 : vector<8x16xf32>, vector<8x32xf32> -> vector<8x48xf32>
    %cst_250 = arith.constant dense<0.000000e+00> : vector<8x128xf32>
    %528 = tpu.matmul %527, %1, %cst_250 {dimension_numbers = #tpu.dot_dimension_numbers<[1], [0], [0], [1], [0, 0, 1, 1], [], []>} : vector<8x48xf32>, vector<48x128xf32>, vector<8x128xf32> -> vector<8x128xf32>
    %529 = arith.addf %528, %9 : vector<8x128xf32>
    %c0_251 = arith.constant 0 : index
    %c0_252 = arith.constant 0 : index
    %530 = vector.load %arg15[%c0_251, %c0_252] : memref<8x32xf32, #tpu.memory_space<vmem>>, vector<8x32xf32>
    %531 = vector.extract_strided_slice %525 {offsets = [0, 0], sizes = [8, 32], strides = [1, 1]} : vector<8x128xf32> to vector<8x32xf32>
    %532 = arith.negf %531 : vector<8x32xf32>
    %533 = math.exp %532 : vector<8x32xf32>
    %cst_253 = arith.constant 1.000000e+00 : f32
    %534 = vector.broadcast %cst_253 : f32 to vector<8x32xf32>
    %535 = arith.addf %534, %533 : vector<8x32xf32>
    %536 = arith.divf %534, %535 : vector<8x32xf32>
    %537 = vector.extract_strided_slice %525 {offsets = [0, 32], sizes = [8, 32], strides = [1, 1]} : vector<8x128xf32> to vector<8x32xf32>
    %538 = arith.negf %537 : vector<8x32xf32>
    %539 = math.exp %538 : vector<8x32xf32>
    %cst_254 = arith.constant 1.000000e+00 : f32
    %540 = vector.broadcast %cst_254 : f32 to vector<8x32xf32>
    %541 = arith.addf %540, %539 : vector<8x32xf32>
    %542 = arith.divf %540, %541 : vector<8x32xf32>
    %543 = vector.extract_strided_slice %525 {offsets = [0, 64], sizes = [8, 32], strides = [1, 1]} : vector<8x128xf32> to vector<8x32xf32>
    %544 = math.tanh %543 : vector<8x32xf32>
    %545 = vector.extract_strided_slice %525 {offsets = [0, 96], sizes = [8, 32], strides = [1, 1]} : vector<8x128xf32> to vector<8x32xf32>
    %546 = arith.negf %545 : vector<8x32xf32>
    %547 = math.exp %546 : vector<8x32xf32>
    %cst_255 = arith.constant 1.000000e+00 : f32
    %548 = vector.broadcast %cst_255 : f32 to vector<8x32xf32>
    %549 = arith.addf %548, %547 : vector<8x32xf32>
    %550 = arith.divf %548, %549 : vector<8x32xf32>
    %551 = arith.mulf %542, %530 : vector<8x32xf32>
    %552 = arith.mulf %536, %544 : vector<8x32xf32>
    %553 = arith.addf %551, %552 : vector<8x32xf32>
    %554 = math.tanh %553 : vector<8x32xf32>
    %555 = arith.mulf %550, %554 : vector<8x32xf32>
    %c0_256 = arith.constant 0 : index
    %c0_257 = arith.constant 0 : index
    %556 = vector.load %arg17[%c0_256, %c0_257] : memref<8x32xf32, #tpu.memory_space<vmem>>, vector<8x32xf32>
    %557 = vector.extract_strided_slice %529 {offsets = [0, 0], sizes = [8, 32], strides = [1, 1]} : vector<8x128xf32> to vector<8x32xf32>
    %558 = arith.negf %557 : vector<8x32xf32>
    %559 = math.exp %558 : vector<8x32xf32>
    %cst_258 = arith.constant 1.000000e+00 : f32
    %560 = vector.broadcast %cst_258 : f32 to vector<8x32xf32>
    %561 = arith.addf %560, %559 : vector<8x32xf32>
    %562 = arith.divf %560, %561 : vector<8x32xf32>
    %563 = vector.extract_strided_slice %529 {offsets = [0, 32], sizes = [8, 32], strides = [1, 1]} : vector<8x128xf32> to vector<8x32xf32>
    %564 = arith.negf %563 : vector<8x32xf32>
    %565 = math.exp %564 : vector<8x32xf32>
    %cst_259 = arith.constant 1.000000e+00 : f32
    %566 = vector.broadcast %cst_259 : f32 to vector<8x32xf32>
    %567 = arith.addf %566, %565 : vector<8x32xf32>
    %568 = arith.divf %566, %567 : vector<8x32xf32>
    %569 = vector.extract_strided_slice %529 {offsets = [0, 64], sizes = [8, 32], strides = [1, 1]} : vector<8x128xf32> to vector<8x32xf32>
    %570 = math.tanh %569 : vector<8x32xf32>
    %571 = vector.extract_strided_slice %529 {offsets = [0, 96], sizes = [8, 32], strides = [1, 1]} : vector<8x128xf32> to vector<8x32xf32>
    %572 = arith.negf %571 : vector<8x32xf32>
    %573 = math.exp %572 : vector<8x32xf32>
    %cst_260 = arith.constant 1.000000e+00 : f32
    %574 = vector.broadcast %cst_260 : f32 to vector<8x32xf32>
    %575 = arith.addf %574, %573 : vector<8x32xf32>
    %576 = arith.divf %574, %575 : vector<8x32xf32>
    %577 = arith.mulf %568, %556 : vector<8x32xf32>
    %578 = arith.mulf %562, %570 : vector<8x32xf32>
    %579 = arith.addf %577, %578 : vector<8x32xf32>
    %580 = math.tanh %579 : vector<8x32xf32>
    %581 = arith.mulf %576, %580 : vector<8x32xf32>
    %c0_261 = arith.constant 0 : index
    %c0_262 = arith.constant 0 : index
    %582 = vector.load %arg14[%c0_261, %c0_262] : memref<8x32xf32, #tpu.memory_space<vmem>>, vector<8x32xf32>
    tpu.vector_store %arg14[%c0_261, %c0_262], %555 {strides = array<i32>} : memref<8x32xf32, #tpu.memory_space<vmem>>, vector<8x32xf32>,
    %c0_263 = arith.constant 0 : index
    %c0_264 = arith.constant 0 : index
    %583 = vector.load %arg15[%c0_263, %c0_264] : memref<8x32xf32, #tpu.memory_space<vmem>>, vector<8x32xf32>
    tpu.vector_store %arg15[%c0_263, %c0_264], %553 {strides = array<i32>} : memref<8x32xf32, #tpu.memory_space<vmem>>, vector<8x32xf32>,
    %c0_265 = arith.constant 0 : index
    %c0_266 = arith.constant 0 : index
    %584 = vector.load %arg16[%c0_265, %c0_266] : memref<8x32xf32, #tpu.memory_space<vmem>>, vector<8x32xf32>
    tpu.vector_store %arg16[%c0_265, %c0_266], %581 {strides = array<i32>} : memref<8x32xf32, #tpu.memory_space<vmem>>, vector<8x32xf32>,
    %c0_267 = arith.constant 0 : index
    %c0_268 = arith.constant 0 : index
    %585 = vector.load %arg17[%c0_267, %c0_268] : memref<8x32xf32, #tpu.memory_space<vmem>>, vector<8x32xf32>
    tpu.vector_store %arg17[%c0_267, %c0_268], %579 {strides = array<i32>} : memref<8x32xf32, #tpu.memory_space<vmem>>, vector<8x32xf32>,
    %586 = arith.index_cast %514 : i32 to index
    %c0_269 = arith.constant 0 : index
    %c0_270 = arith.constant 0 : index
    %587 = vector.load %arg12[%586, %c0_269, %c0_270] : memref<8x8x32xf32, #tpu.memory_space<vmem>>, vector<1x8x32xf32>
    %588 = vector.shape_cast %587 : vector<1x8x32xf32> to vector<8x32xf32>
    %589 = vector.shape_cast %555 : vector<8x32xf32> to vector<1x8x32xf32>
    tpu.vector_store %arg12[%586, %c0_269, %c0_270], %589 {strides = array<i32>} : memref<8x8x32xf32, #tpu.memory_space<vmem>>, vector<1x8x32xf32>,
    %c7_i32_271 = arith.constant 7 : i32
    %590 = arith.subi %c7_i32_271, %514 : i32
    %591 = arith.index_cast %590 : i32 to index
    %c0_272 = arith.constant 0 : index
    %c0_273 = arith.constant 0 : index
    %592 = vector.load %arg13[%591, %c0_272, %c0_273] : memref<8x8x32xf32, #tpu.memory_space<vmem>>, vector<1x8x32xf32>
    %593 = vector.shape_cast %592 : vector<1x8x32xf32> to vector<8x32xf32>
    %594 = vector.shape_cast %581 : vector<8x32xf32> to vector<1x8x32xf32>
    tpu.vector_store %arg13[%591, %c0_272, %c0_273], %594 {strides = array<i32>} : memref<8x8x32xf32, #tpu.memory_space<vmem>>, vector<1x8x32xf32>,
    %c7_i32_274 = arith.constant 7 : i32
    %c1_i32_275 = arith.constant 1 : i32
    %595 = arith.muli %c7_i32_274, %c1_i32_275 : i32
    %c0_i32_276 = arith.constant 0 : i32
    %596 = arith.addi %c0_i32_276, %595 : i32
    %597 = arith.index_cast %596 : i32 to index
    %c0_277 = arith.constant 0 : index
    %c0_278 = arith.constant 0 : index
    %598 = vector.load %arg0[%597, %c0_277, %c0_278] : memref<8x8x16xf32, #tpu.memory_space<vmem>>, vector<1x8x16xf32>
    %599 = vector.shape_cast %598 : vector<1x8x16xf32> to vector<8x16xf32>
    %c7_i32_279 = arith.constant 7 : i32
    %600 = arith.subi %c7_i32_279, %596 : i32
    %601 = arith.index_cast %600 : i32 to index
    %c0_280 = arith.constant 0 : index
    %c0_281 = arith.constant 0 : index
    %602 = vector.load %arg0[%601, %c0_280, %c0_281] : memref<8x8x16xf32, #tpu.memory_space<vmem>>, vector<1x8x16xf32>
    %603 = vector.shape_cast %602 : vector<1x8x16xf32> to vector<8x16xf32>
    %c0_282 = arith.constant 0 : index
    %c0_283 = arith.constant 0 : index
    %604 = vector.load %arg14[%c0_282, %c0_283] : memref<8x32xf32, #tpu.memory_space<vmem>>, vector<8x32xf32>
    %605 = tpu.concatenate %599, %604 in 1 : vector<8x16xf32>, vector<8x32xf32> -> vector<8x48xf32>
    %cst_284 = arith.constant dense<0.000000e+00> : vector<8x128xf32>
    %606 = tpu.matmul %605, %0, %cst_284 {dimension_numbers = #tpu.dot_dimension_numbers<[1], [0], [0], [1], [0, 0, 1, 1], [], []>} : vector<8x48xf32>, vector<48x128xf32>, vector<8x128xf32> -> vector<8x128xf32>
    %607 = arith.addf %606, %6 : vector<8x128xf32>
    %c0_285 = arith.constant 0 : index
    %c0_286 = arith.constant 0 : index
    %608 = vector.load %arg16[%c0_285, %c0_286] : memref<8x32xf32, #tpu.memory_space<vmem>>, vector<8x32xf32>
    %609 = tpu.concatenate %603, %608 in 1 : vector<8x16xf32>, vector<8x32xf32> -> vector<8x48xf32>
    %cst_287 = arith.constant dense<0.000000e+00> : vector<8x128xf32>
    %610 = tpu.matmul %609, %1, %cst_287 {dimension_numbers = #tpu.dot_dimension_numbers<[1], [0], [0], [1], [0, 0, 1, 1], [], []>} : vector<8x48xf32>, vector<48x128xf32>, vector<8x128xf32> -> vector<8x128xf32>
    %611 = arith.addf %610, %9 : vector<8x128xf32>
    %c0_288 = arith.constant 0 : index
    %c0_289 = arith.constant 0 : index
    %612 = vector.load %arg15[%c0_288, %c0_289] : memref<8x32xf32, #tpu.memory_space<vmem>>, vector<8x32xf32>
    %613 = vector.extract_strided_slice %607 {offsets = [0, 0], sizes = [8, 32], strides = [1, 1]} : vector<8x128xf32> to vector<8x32xf32>
    %614 = arith.negf %613 : vector<8x32xf32>
    %615 = math.exp %614 : vector<8x32xf32>
    %cst_290 = arith.constant 1.000000e+00 : f32
    %616 = vector.broadcast %cst_290 : f32 to vector<8x32xf32>
    %617 = arith.addf %616, %615 : vector<8x32xf32>
    %618 = arith.divf %616, %617 : vector<8x32xf32>
    %619 = vector.extract_strided_slice %607 {offsets = [0, 32], sizes = [8, 32], strides = [1, 1]} : vector<8x128xf32> to vector<8x32xf32>
    %620 = arith.negf %619 : vector<8x32xf32>
    %621 = math.exp %620 : vector<8x32xf32>
    %cst_291 = arith.constant 1.000000e+00 : f32
    %622 = vector.broadcast %cst_291 : f32 to vector<8x32xf32>
    %623 = arith.addf %622, %621 : vector<8x32xf32>
    %624 = arith.divf %622, %623 : vector<8x32xf32>
    %625 = vector.extract_strided_slice %607 {offsets = [0, 64], sizes = [8, 32], strides = [1, 1]} : vector<8x128xf32> to vector<8x32xf32>
    %626 = math.tanh %625 : vector<8x32xf32>
    %627 = vector.extract_strided_slice %607 {offsets = [0, 96], sizes = [8, 32], strides = [1, 1]} : vector<8x128xf32> to vector<8x32xf32>
    %628 = arith.negf %627 : vector<8x32xf32>
    %629 = math.exp %628 : vector<8x32xf32>
    %cst_292 = arith.constant 1.000000e+00 : f32
    %630 = vector.broadcast %cst_292 : f32 to vector<8x32xf32>
    %631 = arith.addf %630, %629 : vector<8x32xf32>
    %632 = arith.divf %630, %631 : vector<8x32xf32>
    %633 = arith.mulf %624, %612 : vector<8x32xf32>
    %634 = arith.mulf %618, %626 : vector<8x32xf32>
    %635 = arith.addf %633, %634 : vector<8x32xf32>
    %636 = math.tanh %635 : vector<8x32xf32>
    %637 = arith.mulf %632, %636 : vector<8x32xf32>
    %c0_293 = arith.constant 0 : index
    %c0_294 = arith.constant 0 : index
    %638 = vector.load %arg17[%c0_293, %c0_294] : memref<8x32xf32, #tpu.memory_space<vmem>>, vector<8x32xf32>
    %639 = vector.extract_strided_slice %611 {offsets = [0, 0], sizes = [8, 32], strides = [1, 1]} : vector<8x128xf32> to vector<8x32xf32>
    %640 = arith.negf %639 : vector<8x32xf32>
    %641 = math.exp %640 : vector<8x32xf32>
    %cst_295 = arith.constant 1.000000e+00 : f32
    %642 = vector.broadcast %cst_295 : f32 to vector<8x32xf32>
    %643 = arith.addf %642, %641 : vector<8x32xf32>
    %644 = arith.divf %642, %643 : vector<8x32xf32>
    %645 = vector.extract_strided_slice %611 {offsets = [0, 32], sizes = [8, 32], strides = [1, 1]} : vector<8x128xf32> to vector<8x32xf32>
    %646 = arith.negf %645 : vector<8x32xf32>
    %647 = math.exp %646 : vector<8x32xf32>
    %cst_296 = arith.constant 1.000000e+00 : f32
    %648 = vector.broadcast %cst_296 : f32 to vector<8x32xf32>
    %649 = arith.addf %648, %647 : vector<8x32xf32>
    %650 = arith.divf %648, %649 : vector<8x32xf32>
    %651 = vector.extract_strided_slice %611 {offsets = [0, 64], sizes = [8, 32], strides = [1, 1]} : vector<8x128xf32> to vector<8x32xf32>
    %652 = math.tanh %651 : vector<8x32xf32>
    %653 = vector.extract_strided_slice %611 {offsets = [0, 96], sizes = [8, 32], strides = [1, 1]} : vector<8x128xf32> to vector<8x32xf32>
    %654 = arith.negf %653 : vector<8x32xf32>
    %655 = math.exp %654 : vector<8x32xf32>
    %cst_297 = arith.constant 1.000000e+00 : f32
    %656 = vector.broadcast %cst_297 : f32 to vector<8x32xf32>
    %657 = arith.addf %656, %655 : vector<8x32xf32>
    %658 = arith.divf %656, %657 : vector<8x32xf32>
    %659 = arith.mulf %650, %638 : vector<8x32xf32>
    %660 = arith.mulf %644, %652 : vector<8x32xf32>
    %661 = arith.addf %659, %660 : vector<8x32xf32>
    %662 = math.tanh %661 : vector<8x32xf32>
    %663 = arith.mulf %658, %662 : vector<8x32xf32>
    %c0_298 = arith.constant 0 : index
    %c0_299 = arith.constant 0 : index
    %664 = vector.load %arg14[%c0_298, %c0_299] : memref<8x32xf32, #tpu.memory_space<vmem>>, vector<8x32xf32>
    tpu.vector_store %arg14[%c0_298, %c0_299], %637 {strides = array<i32>} : memref<8x32xf32, #tpu.memory_space<vmem>>, vector<8x32xf32>,
    %c0_300 = arith.constant 0 : index
    %c0_301 = arith.constant 0 : index
    %665 = vector.load %arg15[%c0_300, %c0_301] : memref<8x32xf32, #tpu.memory_space<vmem>>, vector<8x32xf32>
    tpu.vector_store %arg15[%c0_300, %c0_301], %635 {strides = array<i32>} : memref<8x32xf32, #tpu.memory_space<vmem>>, vector<8x32xf32>,
    %c0_302 = arith.constant 0 : index
    %c0_303 = arith.constant 0 : index
    %666 = vector.load %arg16[%c0_302, %c0_303] : memref<8x32xf32, #tpu.memory_space<vmem>>, vector<8x32xf32>
    tpu.vector_store %arg16[%c0_302, %c0_303], %663 {strides = array<i32>} : memref<8x32xf32, #tpu.memory_space<vmem>>, vector<8x32xf32>,
    %c0_304 = arith.constant 0 : index
    %c0_305 = arith.constant 0 : index
    %667 = vector.load %arg17[%c0_304, %c0_305] : memref<8x32xf32, #tpu.memory_space<vmem>>, vector<8x32xf32>
    tpu.vector_store %arg17[%c0_304, %c0_305], %661 {strides = array<i32>} : memref<8x32xf32, #tpu.memory_space<vmem>>, vector<8x32xf32>,
    %668 = arith.index_cast %596 : i32 to index
    %c0_306 = arith.constant 0 : index
    %c0_307 = arith.constant 0 : index
    %669 = vector.load %arg12[%668, %c0_306, %c0_307] : memref<8x8x32xf32, #tpu.memory_space<vmem>>, vector<1x8x32xf32>
    %670 = vector.shape_cast %669 : vector<1x8x32xf32> to vector<8x32xf32>
    %671 = vector.shape_cast %637 : vector<8x32xf32> to vector<1x8x32xf32>
    tpu.vector_store %arg12[%668, %c0_306, %c0_307], %671 {strides = array<i32>} : memref<8x8x32xf32, #tpu.memory_space<vmem>>, vector<1x8x32xf32>,
    %c7_i32_308 = arith.constant 7 : i32
    %672 = arith.subi %c7_i32_308, %596 : i32
    %673 = arith.index_cast %672 : i32 to index
    %c0_309 = arith.constant 0 : index
    %c0_310 = arith.constant 0 : index
    %674 = vector.load %arg13[%673, %c0_309, %c0_310] : memref<8x8x32xf32, #tpu.memory_space<vmem>>, vector<1x8x32xf32>
    %675 = vector.shape_cast %674 : vector<1x8x32xf32> to vector<8x32xf32>
    %676 = vector.shape_cast %663 : vector<8x32xf32> to vector<1x8x32xf32>
    tpu.vector_store %arg13[%673, %c0_309, %c0_310], %676 {strides = array<i32>} : memref<8x8x32xf32, #tpu.memory_space<vmem>>, vector<1x8x32xf32>,
    %c8_i32 = arith.constant 8 : i32
    %c0_311 = arith.constant 0 : index
    %c0_312 = arith.constant 0 : index
    %677 = vector.load %arg14[%c0_311, %c0_312] : memref<8x32xf32, #tpu.memory_space<vmem>>, vector<8x32xf32>
    tpu.vector_store %arg14[%c0_311, %c0_312], %16 {strides = array<i32>} : memref<8x32xf32, #tpu.memory_space<vmem>>, vector<8x32xf32>,
    %c0_313 = arith.constant 0 : index
    %c0_314 = arith.constant 0 : index
    %678 = vector.load %arg15[%c0_313, %c0_314] : memref<8x32xf32, #tpu.memory_space<vmem>>, vector<8x32xf32>
    tpu.vector_store %arg15[%c0_313, %c0_314], %16 {strides = array<i32>} : memref<8x32xf32, #tpu.memory_space<vmem>>, vector<8x32xf32>,
    %c0_i32_315 = arith.constant 0 : i32
    %c1_i32_316 = arith.constant 1 : i32
    %679 = arith.muli %c0_i32_315, %c1_i32_316 : i32
    %c0_i32_317 = arith.constant 0 : i32
    %680 = arith.addi %c0_i32_317, %679 : i32
    %681 = arith.index_cast %680 : i32 to index
    %c0_318 = arith.constant 0 : index
    %c0_319 = arith.constant 0 : index
    %682 = vector.load %arg12[%681, %c0_318, %c0_319] : memref<8x8x32xf32, #tpu.memory_space<vmem>>, vector<1x8x32xf32>
    %683 = vector.shape_cast %682 : vector<1x8x32xf32> to vector<8x32xf32>
    %684 = arith.index_cast %680 : i32 to index
    %c0_320 = arith.constant 0 : index
    %c0_321 = arith.constant 0 : index
    %685 = vector.load %arg13[%684, %c0_320, %c0_321] : memref<8x8x32xf32, #tpu.memory_space<vmem>>, vector<1x8x32xf32>
    %686 = vector.shape_cast %685 : vector<1x8x32xf32> to vector<8x32xf32>
    %c0_322 = arith.constant 0 : index
    %c0_323 = arith.constant 0 : index
    %687 = vector.load %arg14[%c0_322, %c0_323] : memref<8x32xf32, #tpu.memory_space<vmem>>, vector<8x32xf32>
    %688 = tpu.concatenate %683, %686, %687 in 1 : vector<8x32xf32>, vector<8x32xf32>, vector<8x32xf32> -> vector<8x96xf32>
    %cst_324 = arith.constant dense<0.000000e+00> : vector<8x128xf32>
    %689 = tpu.matmul %688, %2, %cst_324 {dimension_numbers = #tpu.dot_dimension_numbers<[1], [0], [0], [1], [0, 0, 1, 1], [], []>} : vector<8x96xf32>, vector<96x128xf32>, vector<8x128xf32> -> vector<8x128xf32>
    %690 = arith.addf %689, %12 : vector<8x128xf32>
    %c0_325 = arith.constant 0 : index
    %c0_326 = arith.constant 0 : index
    %691 = vector.load %arg15[%c0_325, %c0_326] : memref<8x32xf32, #tpu.memory_space<vmem>>, vector<8x32xf32>
    %692 = vector.extract_strided_slice %690 {offsets = [0, 0], sizes = [8, 32], strides = [1, 1]} : vector<8x128xf32> to vector<8x32xf32>
    %693 = arith.negf %692 : vector<8x32xf32>
    %694 = math.exp %693 : vector<8x32xf32>
    %cst_327 = arith.constant 1.000000e+00 : f32
    %695 = vector.broadcast %cst_327 : f32 to vector<8x32xf32>
    %696 = arith.addf %695, %694 : vector<8x32xf32>
    %697 = arith.divf %695, %696 : vector<8x32xf32>
    %698 = vector.extract_strided_slice %690 {offsets = [0, 32], sizes = [8, 32], strides = [1, 1]} : vector<8x128xf32> to vector<8x32xf32>
    %699 = arith.negf %698 : vector<8x32xf32>
    %700 = math.exp %699 : vector<8x32xf32>
    %cst_328 = arith.constant 1.000000e+00 : f32
    %701 = vector.broadcast %cst_328 : f32 to vector<8x32xf32>
    %702 = arith.addf %701, %700 : vector<8x32xf32>
    %703 = arith.divf %701, %702 : vector<8x32xf32>
    %704 = vector.extract_strided_slice %690 {offsets = [0, 64], sizes = [8, 32], strides = [1, 1]} : vector<8x128xf32> to vector<8x32xf32>
    %705 = math.tanh %704 : vector<8x32xf32>
    %706 = vector.extract_strided_slice %690 {offsets = [0, 96], sizes = [8, 32], strides = [1, 1]} : vector<8x128xf32> to vector<8x32xf32>
    %707 = arith.negf %706 : vector<8x32xf32>
    %708 = math.exp %707 : vector<8x32xf32>
    %cst_329 = arith.constant 1.000000e+00 : f32
    %709 = vector.broadcast %cst_329 : f32 to vector<8x32xf32>
    %710 = arith.addf %709, %708 : vector<8x32xf32>
    %711 = arith.divf %709, %710 : vector<8x32xf32>
    %712 = arith.mulf %703, %691 : vector<8x32xf32>
    %713 = arith.mulf %697, %705 : vector<8x32xf32>
    %714 = arith.addf %712, %713 : vector<8x32xf32>
    %715 = math.tanh %714 : vector<8x32xf32>
    %716 = arith.mulf %711, %715 : vector<8x32xf32>
    %c0_330 = arith.constant 0 : index
    %c0_331 = arith.constant 0 : index
    %717 = vector.load %arg14[%c0_330, %c0_331] : memref<8x32xf32, #tpu.memory_space<vmem>>, vector<8x32xf32>
    tpu.vector_store %arg14[%c0_330, %c0_331], %716 {strides = array<i32>} : memref<8x32xf32, #tpu.memory_space<vmem>>, vector<8x32xf32>,
    %c0_332 = arith.constant 0 : index
    %c0_333 = arith.constant 0 : index
    %718 = vector.load %arg15[%c0_332, %c0_333] : memref<8x32xf32, #tpu.memory_space<vmem>>, vector<8x32xf32>
    tpu.vector_store %arg15[%c0_332, %c0_333], %714 {strides = array<i32>} : memref<8x32xf32, #tpu.memory_space<vmem>>, vector<8x32xf32>,
    %c1_i32_334 = arith.constant 1 : i32
    %c1_i32_335 = arith.constant 1 : i32
    %719 = arith.muli %c1_i32_334, %c1_i32_335 : i32
    %c0_i32_336 = arith.constant 0 : i32
    %720 = arith.addi %c0_i32_336, %719 : i32
    %721 = arith.index_cast %720 : i32 to index
    %c0_337 = arith.constant 0 : index
    %c0_338 = arith.constant 0 : index
    %722 = vector.load %arg12[%721, %c0_337, %c0_338] : memref<8x8x32xf32, #tpu.memory_space<vmem>>, vector<1x8x32xf32>
    %723 = vector.shape_cast %722 : vector<1x8x32xf32> to vector<8x32xf32>
    %724 = arith.index_cast %720 : i32 to index
    %c0_339 = arith.constant 0 : index
    %c0_340 = arith.constant 0 : index
    %725 = vector.load %arg13[%724, %c0_339, %c0_340] : memref<8x8x32xf32, #tpu.memory_space<vmem>>, vector<1x8x32xf32>
    %726 = vector.shape_cast %725 : vector<1x8x32xf32> to vector<8x32xf32>
    %c0_341 = arith.constant 0 : index
    %c0_342 = arith.constant 0 : index
    %727 = vector.load %arg14[%c0_341, %c0_342] : memref<8x32xf32, #tpu.memory_space<vmem>>, vector<8x32xf32>
    %728 = tpu.concatenate %723, %726, %727 in 1 : vector<8x32xf32>, vector<8x32xf32>, vector<8x32xf32> -> vector<8x96xf32>
    %cst_343 = arith.constant dense<0.000000e+00> : vector<8x128xf32>
    %729 = tpu.matmul %728, %2, %cst_343 {dimension_numbers = #tpu.dot_dimension_numbers<[1], [0], [0], [1], [0, 0, 1, 1], [], []>} : vector<8x96xf32>, vector<96x128xf32>, vector<8x128xf32> -> vector<8x128xf32>
    %730 = arith.addf %729, %12 : vector<8x128xf32>
    %c0_344 = arith.constant 0 : index
    %c0_345 = arith.constant 0 : index
    %731 = vector.load %arg15[%c0_344, %c0_345] : memref<8x32xf32, #tpu.memory_space<vmem>>, vector<8x32xf32>
    %732 = vector.extract_strided_slice %730 {offsets = [0, 0], sizes = [8, 32], strides = [1, 1]} : vector<8x128xf32> to vector<8x32xf32>
    %733 = arith.negf %732 : vector<8x32xf32>
    %734 = math.exp %733 : vector<8x32xf32>
    %cst_346 = arith.constant 1.000000e+00 : f32
    %735 = vector.broadcast %cst_346 : f32 to vector<8x32xf32>
    %736 = arith.addf %735, %734 : vector<8x32xf32>
    %737 = arith.divf %735, %736 : vector<8x32xf32>
    %738 = vector.extract_strided_slice %730 {offsets = [0, 32], sizes = [8, 32], strides = [1, 1]} : vector<8x128xf32> to vector<8x32xf32>
    %739 = arith.negf %738 : vector<8x32xf32>
    %740 = math.exp %739 : vector<8x32xf32>
    %cst_347 = arith.constant 1.000000e+00 : f32
    %741 = vector.broadcast %cst_347 : f32 to vector<8x32xf32>
    %742 = arith.addf %741, %740 : vector<8x32xf32>
    %743 = arith.divf %741, %742 : vector<8x32xf32>
    %744 = vector.extract_strided_slice %730 {offsets = [0, 64], sizes = [8, 32], strides = [1, 1]} : vector<8x128xf32> to vector<8x32xf32>
    %745 = math.tanh %744 : vector<8x32xf32>
    %746 = vector.extract_strided_slice %730 {offsets = [0, 96], sizes = [8, 32], strides = [1, 1]} : vector<8x128xf32> to vector<8x32xf32>
    %747 = arith.negf %746 : vector<8x32xf32>
    %748 = math.exp %747 : vector<8x32xf32>
    %cst_348 = arith.constant 1.000000e+00 : f32
    %749 = vector.broadcast %cst_348 : f32 to vector<8x32xf32>
    %750 = arith.addf %749, %748 : vector<8x32xf32>
    %751 = arith.divf %749, %750 : vector<8x32xf32>
    %752 = arith.mulf %743, %731 : vector<8x32xf32>
    %753 = arith.mulf %737, %745 : vector<8x32xf32>
    %754 = arith.addf %752, %753 : vector<8x32xf32>
    %755 = math.tanh %754 : vector<8x32xf32>
    %756 = arith.mulf %751, %755 : vector<8x32xf32>
    %c0_349 = arith.constant 0 : index
    %c0_350 = arith.constant 0 : index
    %757 = vector.load %arg14[%c0_349, %c0_350] : memref<8x32xf32, #tpu.memory_space<vmem>>, vector<8x32xf32>
    tpu.vector_store %arg14[%c0_349, %c0_350], %756 {strides = array<i32>} : memref<8x32xf32, #tpu.memory_space<vmem>>, vector<8x32xf32>,
    %c0_351 = arith.constant 0 : index
    %c0_352 = arith.constant 0 : index
    %758 = vector.load %arg15[%c0_351, %c0_352] : memref<8x32xf32, #tpu.memory_space<vmem>>, vector<8x32xf32>
    tpu.vector_store %arg15[%c0_351, %c0_352], %754 {strides = array<i32>} : memref<8x32xf32, #tpu.memory_space<vmem>>, vector<8x32xf32>,
    %c2_i32_353 = arith.constant 2 : i32
    %c1_i32_354 = arith.constant 1 : i32
    %759 = arith.muli %c2_i32_353, %c1_i32_354 : i32
    %c0_i32_355 = arith.constant 0 : i32
    %760 = arith.addi %c0_i32_355, %759 : i32
    %761 = arith.index_cast %760 : i32 to index
    %c0_356 = arith.constant 0 : index
    %c0_357 = arith.constant 0 : index
    %762 = vector.load %arg12[%761, %c0_356, %c0_357] : memref<8x8x32xf32, #tpu.memory_space<vmem>>, vector<1x8x32xf32>
    %763 = vector.shape_cast %762 : vector<1x8x32xf32> to vector<8x32xf32>
    %764 = arith.index_cast %760 : i32 to index
    %c0_358 = arith.constant 0 : index
    %c0_359 = arith.constant 0 : index
    %765 = vector.load %arg13[%764, %c0_358, %c0_359] : memref<8x8x32xf32, #tpu.memory_space<vmem>>, vector<1x8x32xf32>
    %766 = vector.shape_cast %765 : vector<1x8x32xf32> to vector<8x32xf32>
    %c0_360 = arith.constant 0 : index
    %c0_361 = arith.constant 0 : index
    %767 = vector.load %arg14[%c0_360, %c0_361] : memref<8x32xf32, #tpu.memory_space<vmem>>, vector<8x32xf32>
    %768 = tpu.concatenate %763, %766, %767 in 1 : vector<8x32xf32>, vector<8x32xf32>, vector<8x32xf32> -> vector<8x96xf32>
    %cst_362 = arith.constant dense<0.000000e+00> : vector<8x128xf32>
    %769 = tpu.matmul %768, %2, %cst_362 {dimension_numbers = #tpu.dot_dimension_numbers<[1], [0], [0], [1], [0, 0, 1, 1], [], []>} : vector<8x96xf32>, vector<96x128xf32>, vector<8x128xf32> -> vector<8x128xf32>
    %770 = arith.addf %769, %12 : vector<8x128xf32>
    %c0_363 = arith.constant 0 : index
    %c0_364 = arith.constant 0 : index
    %771 = vector.load %arg15[%c0_363, %c0_364] : memref<8x32xf32, #tpu.memory_space<vmem>>, vector<8x32xf32>
    %772 = vector.extract_strided_slice %770 {offsets = [0, 0], sizes = [8, 32], strides = [1, 1]} : vector<8x128xf32> to vector<8x32xf32>
    %773 = arith.negf %772 : vector<8x32xf32>
    %774 = math.exp %773 : vector<8x32xf32>
    %cst_365 = arith.constant 1.000000e+00 : f32
    %775 = vector.broadcast %cst_365 : f32 to vector<8x32xf32>
    %776 = arith.addf %775, %774 : vector<8x32xf32>
    %777 = arith.divf %775, %776 : vector<8x32xf32>
    %778 = vector.extract_strided_slice %770 {offsets = [0, 32], sizes = [8, 32], strides = [1, 1]} : vector<8x128xf32> to vector<8x32xf32>
    %779 = arith.negf %778 : vector<8x32xf32>
    %780 = math.exp %779 : vector<8x32xf32>
    %cst_366 = arith.constant 1.000000e+00 : f32
    %781 = vector.broadcast %cst_366 : f32 to vector<8x32xf32>
    %782 = arith.addf %781, %780 : vector<8x32xf32>
    %783 = arith.divf %781, %782 : vector<8x32xf32>
    %784 = vector.extract_strided_slice %770 {offsets = [0, 64], sizes = [8, 32], strides = [1, 1]} : vector<8x128xf32> to vector<8x32xf32>
    %785 = math.tanh %784 : vector<8x32xf32>
    %786 = vector.extract_strided_slice %770 {offsets = [0, 96], sizes = [8, 32], strides = [1, 1]} : vector<8x128xf32> to vector<8x32xf32>
    %787 = arith.negf %786 : vector<8x32xf32>
    %788 = math.exp %787 : vector<8x32xf32>
    %cst_367 = arith.constant 1.000000e+00 : f32
    %789 = vector.broadcast %cst_367 : f32 to vector<8x32xf32>
    %790 = arith.addf %789, %788 : vector<8x32xf32>
    %791 = arith.divf %789, %790 : vector<8x32xf32>
    %792 = arith.mulf %783, %771 : vector<8x32xf32>
    %793 = arith.mulf %777, %785 : vector<8x32xf32>
    %794 = arith.addf %792, %793 : vector<8x32xf32>
    %795 = math.tanh %794 : vector<8x32xf32>
    %796 = arith.mulf %791, %795 : vector<8x32xf32>
    %c0_368 = arith.constant 0 : index
    %c0_369 = arith.constant 0 : index
    %797 = vector.load %arg14[%c0_368, %c0_369] : memref<8x32xf32, #tpu.memory_space<vmem>>, vector<8x32xf32>
    tpu.vector_store %arg14[%c0_368, %c0_369], %796 {strides = array<i32>} : memref<8x32xf32, #tpu.memory_space<vmem>>, vector<8x32xf32>,
    %c0_370 = arith.constant 0 : index
    %c0_371 = arith.constant 0 : index
    %798 = vector.load %arg15[%c0_370, %c0_371] : memref<8x32xf32, #tpu.memory_space<vmem>>, vector<8x32xf32>
    tpu.vector_store %arg15[%c0_370, %c0_371], %794 {strides = array<i32>} : memref<8x32xf32, #tpu.memory_space<vmem>>, vector<8x32xf32>,
    %c3_i32_372 = arith.constant 3 : i32
    %c1_i32_373 = arith.constant 1 : i32
    %799 = arith.muli %c3_i32_372, %c1_i32_373 : i32
    %c0_i32_374 = arith.constant 0 : i32
    %800 = arith.addi %c0_i32_374, %799 : i32
    %801 = arith.index_cast %800 : i32 to index
    %c0_375 = arith.constant 0 : index
    %c0_376 = arith.constant 0 : index
    %802 = vector.load %arg12[%801, %c0_375, %c0_376] : memref<8x8x32xf32, #tpu.memory_space<vmem>>, vector<1x8x32xf32>
    %803 = vector.shape_cast %802 : vector<1x8x32xf32> to vector<8x32xf32>
    %804 = arith.index_cast %800 : i32 to index
    %c0_377 = arith.constant 0 : index
    %c0_378 = arith.constant 0 : index
    %805 = vector.load %arg13[%804, %c0_377, %c0_378] : memref<8x8x32xf32, #tpu.memory_space<vmem>>, vector<1x8x32xf32>
    %806 = vector.shape_cast %805 : vector<1x8x32xf32> to vector<8x32xf32>
    %c0_379 = arith.constant 0 : index
    %c0_380 = arith.constant 0 : index
    %807 = vector.load %arg14[%c0_379, %c0_380] : memref<8x32xf32, #tpu.memory_space<vmem>>, vector<8x32xf32>
    %808 = tpu.concatenate %803, %806, %807 in 1 : vector<8x32xf32>, vector<8x32xf32>, vector<8x32xf32> -> vector<8x96xf32>
    %cst_381 = arith.constant dense<0.000000e+00> : vector<8x128xf32>
    %809 = tpu.matmul %808, %2, %cst_381 {dimension_numbers = #tpu.dot_dimension_numbers<[1], [0], [0], [1], [0, 0, 1, 1], [], []>} : vector<8x96xf32>, vector<96x128xf32>, vector<8x128xf32> -> vector<8x128xf32>
    %810 = arith.addf %809, %12 : vector<8x128xf32>
    %c0_382 = arith.constant 0 : index
    %c0_383 = arith.constant 0 : index
    %811 = vector.load %arg15[%c0_382, %c0_383] : memref<8x32xf32, #tpu.memory_space<vmem>>, vector<8x32xf32>
    %812 = vector.extract_strided_slice %810 {offsets = [0, 0], sizes = [8, 32], strides = [1, 1]} : vector<8x128xf32> to vector<8x32xf32>
    %813 = arith.negf %812 : vector<8x32xf32>
    %814 = math.exp %813 : vector<8x32xf32>
    %cst_384 = arith.constant 1.000000e+00 : f32
    %815 = vector.broadcast %cst_384 : f32 to vector<8x32xf32>
    %816 = arith.addf %815, %814 : vector<8x32xf32>
    %817 = arith.divf %815, %816 : vector<8x32xf32>
    %818 = vector.extract_strided_slice %810 {offsets = [0, 32], sizes = [8, 32], strides = [1, 1]} : vector<8x128xf32> to vector<8x32xf32>
    %819 = arith.negf %818 : vector<8x32xf32>
    %820 = math.exp %819 : vector<8x32xf32>
    %cst_385 = arith.constant 1.000000e+00 : f32
    %821 = vector.broadcast %cst_385 : f32 to vector<8x32xf32>
    %822 = arith.addf %821, %820 : vector<8x32xf32>
    %823 = arith.divf %821, %822 : vector<8x32xf32>
    %824 = vector.extract_strided_slice %810 {offsets = [0, 64], sizes = [8, 32], strides = [1, 1]} : vector<8x128xf32> to vector<8x32xf32>
    %825 = math.tanh %824 : vector<8x32xf32>
    %826 = vector.extract_strided_slice %810 {offsets = [0, 96], sizes = [8, 32], strides = [1, 1]} : vector<8x128xf32> to vector<8x32xf32>
    %827 = arith.negf %826 : vector<8x32xf32>
    %828 = math.exp %827 : vector<8x32xf32>
    %cst_386 = arith.constant 1.000000e+00 : f32
    %829 = vector.broadcast %cst_386 : f32 to vector<8x32xf32>
    %830 = arith.addf %829, %828 : vector<8x32xf32>
    %831 = arith.divf %829, %830 : vector<8x32xf32>
    %832 = arith.mulf %823, %811 : vector<8x32xf32>
    %833 = arith.mulf %817, %825 : vector<8x32xf32>
    %834 = arith.addf %832, %833 : vector<8x32xf32>
    %835 = math.tanh %834 : vector<8x32xf32>
    %836 = arith.mulf %831, %835 : vector<8x32xf32>
    %c0_387 = arith.constant 0 : index
    %c0_388 = arith.constant 0 : index
    %837 = vector.load %arg14[%c0_387, %c0_388] : memref<8x32xf32, #tpu.memory_space<vmem>>, vector<8x32xf32>
    tpu.vector_store %arg14[%c0_387, %c0_388], %836 {strides = array<i32>} : memref<8x32xf32, #tpu.memory_space<vmem>>, vector<8x32xf32>,
    %c0_389 = arith.constant 0 : index
    %c0_390 = arith.constant 0 : index
    %838 = vector.load %arg15[%c0_389, %c0_390] : memref<8x32xf32, #tpu.memory_space<vmem>>, vector<8x32xf32>
    tpu.vector_store %arg15[%c0_389, %c0_390], %834 {strides = array<i32>} : memref<8x32xf32, #tpu.memory_space<vmem>>, vector<8x32xf32>,
    %c4_i32_391 = arith.constant 4 : i32
    %c1_i32_392 = arith.constant 1 : i32
    %839 = arith.muli %c4_i32_391, %c1_i32_392 : i32
    %c0_i32_393 = arith.constant 0 : i32
    %840 = arith.addi %c0_i32_393, %839 : i32
    %841 = arith.index_cast %840 : i32 to index
    %c0_394 = arith.constant 0 : index
    %c0_395 = arith.constant 0 : index
    %842 = vector.load %arg12[%841, %c0_394, %c0_395] : memref<8x8x32xf32, #tpu.memory_space<vmem>>, vector<1x8x32xf32>
    %843 = vector.shape_cast %842 : vector<1x8x32xf32> to vector<8x32xf32>
    %844 = arith.index_cast %840 : i32 to index
    %c0_396 = arith.constant 0 : index
    %c0_397 = arith.constant 0 : index
    %845 = vector.load %arg13[%844, %c0_396, %c0_397] : memref<8x8x32xf32, #tpu.memory_space<vmem>>, vector<1x8x32xf32>
    %846 = vector.shape_cast %845 : vector<1x8x32xf32> to vector<8x32xf32>
    %c0_398 = arith.constant 0 : index
    %c0_399 = arith.constant 0 : index
    %847 = vector.load %arg14[%c0_398, %c0_399] : memref<8x32xf32, #tpu.memory_space<vmem>>, vector<8x32xf32>
    %848 = tpu.concatenate %843, %846, %847 in 1 : vector<8x32xf32>, vector<8x32xf32>, vector<8x32xf32> -> vector<8x96xf32>
    %cst_400 = arith.constant dense<0.000000e+00> : vector<8x128xf32>
    %849 = tpu.matmul %848, %2, %cst_400 {dimension_numbers = #tpu.dot_dimension_numbers<[1], [0], [0], [1], [0, 0, 1, 1], [], []>} : vector<8x96xf32>, vector<96x128xf32>, vector<8x128xf32> -> vector<8x128xf32>
    %850 = arith.addf %849, %12 : vector<8x128xf32>
    %c0_401 = arith.constant 0 : index
    %c0_402 = arith.constant 0 : index
    %851 = vector.load %arg15[%c0_401, %c0_402] : memref<8x32xf32, #tpu.memory_space<vmem>>, vector<8x32xf32>
    %852 = vector.extract_strided_slice %850 {offsets = [0, 0], sizes = [8, 32], strides = [1, 1]} : vector<8x128xf32> to vector<8x32xf32>
    %853 = arith.negf %852 : vector<8x32xf32>
    %854 = math.exp %853 : vector<8x32xf32>
    %cst_403 = arith.constant 1.000000e+00 : f32
    %855 = vector.broadcast %cst_403 : f32 to vector<8x32xf32>
    %856 = arith.addf %855, %854 : vector<8x32xf32>
    %857 = arith.divf %855, %856 : vector<8x32xf32>
    %858 = vector.extract_strided_slice %850 {offsets = [0, 32], sizes = [8, 32], strides = [1, 1]} : vector<8x128xf32> to vector<8x32xf32>
    %859 = arith.negf %858 : vector<8x32xf32>
    %860 = math.exp %859 : vector<8x32xf32>
    %cst_404 = arith.constant 1.000000e+00 : f32
    %861 = vector.broadcast %cst_404 : f32 to vector<8x32xf32>
    %862 = arith.addf %861, %860 : vector<8x32xf32>
    %863 = arith.divf %861, %862 : vector<8x32xf32>
    %864 = vector.extract_strided_slice %850 {offsets = [0, 64], sizes = [8, 32], strides = [1, 1]} : vector<8x128xf32> to vector<8x32xf32>
    %865 = math.tanh %864 : vector<8x32xf32>
    %866 = vector.extract_strided_slice %850 {offsets = [0, 96], sizes = [8, 32], strides = [1, 1]} : vector<8x128xf32> to vector<8x32xf32>
    %867 = arith.negf %866 : vector<8x32xf32>
    %868 = math.exp %867 : vector<8x32xf32>
    %cst_405 = arith.constant 1.000000e+00 : f32
    %869 = vector.broadcast %cst_405 : f32 to vector<8x32xf32>
    %870 = arith.addf %869, %868 : vector<8x32xf32>
    %871 = arith.divf %869, %870 : vector<8x32xf32>
    %872 = arith.mulf %863, %851 : vector<8x32xf32>
    %873 = arith.mulf %857, %865 : vector<8x32xf32>
    %874 = arith.addf %872, %873 : vector<8x32xf32>
    %875 = math.tanh %874 : vector<8x32xf32>
    %876 = arith.mulf %871, %875 : vector<8x32xf32>
    %c0_406 = arith.constant 0 : index
    %c0_407 = arith.constant 0 : index
    %877 = vector.load %arg14[%c0_406, %c0_407] : memref<8x32xf32, #tpu.memory_space<vmem>>, vector<8x32xf32>
    tpu.vector_store %arg14[%c0_406, %c0_407], %876 {strides = array<i32>} : memref<8x32xf32, #tpu.memory_space<vmem>>, vector<8x32xf32>,
    %c0_408 = arith.constant 0 : index
    %c0_409 = arith.constant 0 : index
    %878 = vector.load %arg15[%c0_408, %c0_409] : memref<8x32xf32, #tpu.memory_space<vmem>>, vector<8x32xf32>
    tpu.vector_store %arg15[%c0_408, %c0_409], %874 {strides = array<i32>} : memref<8x32xf32, #tpu.memory_space<vmem>>, vector<8x32xf32>,
    %c5_i32_410 = arith.constant 5 : i32
    %c1_i32_411 = arith.constant 1 : i32
    %879 = arith.muli %c5_i32_410, %c1_i32_411 : i32
    %c0_i32_412 = arith.constant 0 : i32
    %880 = arith.addi %c0_i32_412, %879 : i32
    %881 = arith.index_cast %880 : i32 to index
    %c0_413 = arith.constant 0 : index
    %c0_414 = arith.constant 0 : index
    %882 = vector.load %arg12[%881, %c0_413, %c0_414] : memref<8x8x32xf32, #tpu.memory_space<vmem>>, vector<1x8x32xf32>
    %883 = vector.shape_cast %882 : vector<1x8x32xf32> to vector<8x32xf32>
    %884 = arith.index_cast %880 : i32 to index
    %c0_415 = arith.constant 0 : index
    %c0_416 = arith.constant 0 : index
    %885 = vector.load %arg13[%884, %c0_415, %c0_416] : memref<8x8x32xf32, #tpu.memory_space<vmem>>, vector<1x8x32xf32>
    %886 = vector.shape_cast %885 : vector<1x8x32xf32> to vector<8x32xf32>
    %c0_417 = arith.constant 0 : index
    %c0_418 = arith.constant 0 : index
    %887 = vector.load %arg14[%c0_417, %c0_418] : memref<8x32xf32, #tpu.memory_space<vmem>>, vector<8x32xf32>
    %888 = tpu.concatenate %883, %886, %887 in 1 : vector<8x32xf32>, vector<8x32xf32>, vector<8x32xf32> -> vector<8x96xf32>
    %cst_419 = arith.constant dense<0.000000e+00> : vector<8x128xf32>
    %889 = tpu.matmul %888, %2, %cst_419 {dimension_numbers = #tpu.dot_dimension_numbers<[1], [0], [0], [1], [0, 0, 1, 1], [], []>} : vector<8x96xf32>, vector<96x128xf32>, vector<8x128xf32> -> vector<8x128xf32>
    %890 = arith.addf %889, %12 : vector<8x128xf32>
    %c0_420 = arith.constant 0 : index
    %c0_421 = arith.constant 0 : index
    %891 = vector.load %arg15[%c0_420, %c0_421] : memref<8x32xf32, #tpu.memory_space<vmem>>, vector<8x32xf32>
    %892 = vector.extract_strided_slice %890 {offsets = [0, 0], sizes = [8, 32], strides = [1, 1]} : vector<8x128xf32> to vector<8x32xf32>
    %893 = arith.negf %892 : vector<8x32xf32>
    %894 = math.exp %893 : vector<8x32xf32>
    %cst_422 = arith.constant 1.000000e+00 : f32
    %895 = vector.broadcast %cst_422 : f32 to vector<8x32xf32>
    %896 = arith.addf %895, %894 : vector<8x32xf32>
    %897 = arith.divf %895, %896 : vector<8x32xf32>
    %898 = vector.extract_strided_slice %890 {offsets = [0, 32], sizes = [8, 32], strides = [1, 1]} : vector<8x128xf32> to vector<8x32xf32>
    %899 = arith.negf %898 : vector<8x32xf32>
    %900 = math.exp %899 : vector<8x32xf32>
    %cst_423 = arith.constant 1.000000e+00 : f32
    %901 = vector.broadcast %cst_423 : f32 to vector<8x32xf32>
    %902 = arith.addf %901, %900 : vector<8x32xf32>
    %903 = arith.divf %901, %902 : vector<8x32xf32>
    %904 = vector.extract_strided_slice %890 {offsets = [0, 64], sizes = [8, 32], strides = [1, 1]} : vector<8x128xf32> to vector<8x32xf32>
    %905 = math.tanh %904 : vector<8x32xf32>
    %906 = vector.extract_strided_slice %890 {offsets = [0, 96], sizes = [8, 32], strides = [1, 1]} : vector<8x128xf32> to vector<8x32xf32>
    %907 = arith.negf %906 : vector<8x32xf32>
    %908 = math.exp %907 : vector<8x32xf32>
    %cst_424 = arith.constant 1.000000e+00 : f32
    %909 = vector.broadcast %cst_424 : f32 to vector<8x32xf32>
    %910 = arith.addf %909, %908 : vector<8x32xf32>
    %911 = arith.divf %909, %910 : vector<8x32xf32>
    %912 = arith.mulf %903, %891 : vector<8x32xf32>
    %913 = arith.mulf %897, %905 : vector<8x32xf32>
    %914 = arith.addf %912, %913 : vector<8x32xf32>
    %915 = math.tanh %914 : vector<8x32xf32>
    %916 = arith.mulf %911, %915 : vector<8x32xf32>
    %c0_425 = arith.constant 0 : index
    %c0_426 = arith.constant 0 : index
    %917 = vector.load %arg14[%c0_425, %c0_426] : memref<8x32xf32, #tpu.memory_space<vmem>>, vector<8x32xf32>
    tpu.vector_store %arg14[%c0_425, %c0_426], %916 {strides = array<i32>} : memref<8x32xf32, #tpu.memory_space<vmem>>, vector<8x32xf32>,
    %c0_427 = arith.constant 0 : index
    %c0_428 = arith.constant 0 : index
    %918 = vector.load %arg15[%c0_427, %c0_428] : memref<8x32xf32, #tpu.memory_space<vmem>>, vector<8x32xf32>
    tpu.vector_store %arg15[%c0_427, %c0_428], %914 {strides = array<i32>} : memref<8x32xf32, #tpu.memory_space<vmem>>, vector<8x32xf32>,
    %c6_i32_429 = arith.constant 6 : i32
    %c1_i32_430 = arith.constant 1 : i32
    %919 = arith.muli %c6_i32_429, %c1_i32_430 : i32
    %c0_i32_431 = arith.constant 0 : i32
    %920 = arith.addi %c0_i32_431, %919 : i32
    %921 = arith.index_cast %920 : i32 to index
    %c0_432 = arith.constant 0 : index
    %c0_433 = arith.constant 0 : index
    %922 = vector.load %arg12[%921, %c0_432, %c0_433] : memref<8x8x32xf32, #tpu.memory_space<vmem>>, vector<1x8x32xf32>
    %923 = vector.shape_cast %922 : vector<1x8x32xf32> to vector<8x32xf32>
    %924 = arith.index_cast %920 : i32 to index
    %c0_434 = arith.constant 0 : index
    %c0_435 = arith.constant 0 : index
    %925 = vector.load %arg13[%924, %c0_434, %c0_435] : memref<8x8x32xf32, #tpu.memory_space<vmem>>, vector<1x8x32xf32>
    %926 = vector.shape_cast %925 : vector<1x8x32xf32> to vector<8x32xf32>
    %c0_436 = arith.constant 0 : index
    %c0_437 = arith.constant 0 : index
    %927 = vector.load %arg14[%c0_436, %c0_437] : memref<8x32xf32, #tpu.memory_space<vmem>>, vector<8x32xf32>
    %928 = tpu.concatenate %923, %926, %927 in 1 : vector<8x32xf32>, vector<8x32xf32>, vector<8x32xf32> -> vector<8x96xf32>
    %cst_438 = arith.constant dense<0.000000e+00> : vector<8x128xf32>
    %929 = tpu.matmul %928, %2, %cst_438 {dimension_numbers = #tpu.dot_dimension_numbers<[1], [0], [0], [1], [0, 0, 1, 1], [], []>} : vector<8x96xf32>, vector<96x128xf32>, vector<8x128xf32> -> vector<8x128xf32>
    %930 = arith.addf %929, %12 : vector<8x128xf32>
    %c0_439 = arith.constant 0 : index
    %c0_440 = arith.constant 0 : index
    %931 = vector.load %arg15[%c0_439, %c0_440] : memref<8x32xf32, #tpu.memory_space<vmem>>, vector<8x32xf32>
    %932 = vector.extract_strided_slice %930 {offsets = [0, 0], sizes = [8, 32], strides = [1, 1]} : vector<8x128xf32> to vector<8x32xf32>
    %933 = arith.negf %932 : vector<8x32xf32>
    %934 = math.exp %933 : vector<8x32xf32>
    %cst_441 = arith.constant 1.000000e+00 : f32
    %935 = vector.broadcast %cst_441 : f32 to vector<8x32xf32>
    %936 = arith.addf %935, %934 : vector<8x32xf32>
    %937 = arith.divf %935, %936 : vector<8x32xf32>
    %938 = vector.extract_strided_slice %930 {offsets = [0, 32], sizes = [8, 32], strides = [1, 1]} : vector<8x128xf32> to vector<8x32xf32>
    %939 = arith.negf %938 : vector<8x32xf32>
    %940 = math.exp %939 : vector<8x32xf32>
    %cst_442 = arith.constant 1.000000e+00 : f32
    %941 = vector.broadcast %cst_442 : f32 to vector<8x32xf32>
    %942 = arith.addf %941, %940 : vector<8x32xf32>
    %943 = arith.divf %941, %942 : vector<8x32xf32>
    %944 = vector.extract_strided_slice %930 {offsets = [0, 64], sizes = [8, 32], strides = [1, 1]} : vector<8x128xf32> to vector<8x32xf32>
    %945 = math.tanh %944 : vector<8x32xf32>
    %946 = vector.extract_strided_slice %930 {offsets = [0, 96], sizes = [8, 32], strides = [1, 1]} : vector<8x128xf32> to vector<8x32xf32>
    %947 = arith.negf %946 : vector<8x32xf32>
    %948 = math.exp %947 : vector<8x32xf32>
    %cst_443 = arith.constant 1.000000e+00 : f32
    %949 = vector.broadcast %cst_443 : f32 to vector<8x32xf32>
    %950 = arith.addf %949, %948 : vector<8x32xf32>
    %951 = arith.divf %949, %950 : vector<8x32xf32>
    %952 = arith.mulf %943, %931 : vector<8x32xf32>
    %953 = arith.mulf %937, %945 : vector<8x32xf32>
    %954 = arith.addf %952, %953 : vector<8x32xf32>
    %955 = math.tanh %954 : vector<8x32xf32>
    %956 = arith.mulf %951, %955 : vector<8x32xf32>
    %c0_444 = arith.constant 0 : index
    %c0_445 = arith.constant 0 : index
    %957 = vector.load %arg14[%c0_444, %c0_445] : memref<8x32xf32, #tpu.memory_space<vmem>>, vector<8x32xf32>
    tpu.vector_store %arg14[%c0_444, %c0_445], %956 {strides = array<i32>} : memref<8x32xf32, #tpu.memory_space<vmem>>, vector<8x32xf32>,
    %c0_446 = arith.constant 0 : index
    %c0_447 = arith.constant 0 : index
    %958 = vector.load %arg15[%c0_446, %c0_447] : memref<8x32xf32, #tpu.memory_space<vmem>>, vector<8x32xf32>
    tpu.vector_store %arg15[%c0_446, %c0_447], %954 {strides = array<i32>} : memref<8x32xf32, #tpu.memory_space<vmem>>, vector<8x32xf32>,
    %c7_i32_448 = arith.constant 7 : i32
    %c1_i32_449 = arith.constant 1 : i32
    %959 = arith.muli %c7_i32_448, %c1_i32_449 : i32
    %c0_i32_450 = arith.constant 0 : i32
    %960 = arith.addi %c0_i32_450, %959 : i32
    %961 = arith.index_cast %960 : i32 to index
    %c0_451 = arith.constant 0 : index
    %c0_452 = arith.constant 0 : index
    %962 = vector.load %arg12[%961, %c0_451, %c0_452] : memref<8x8x32xf32, #tpu.memory_space<vmem>>, vector<1x8x32xf32>
    %963 = vector.shape_cast %962 : vector<1x8x32xf32> to vector<8x32xf32>
    %964 = arith.index_cast %960 : i32 to index
    %c0_453 = arith.constant 0 : index
    %c0_454 = arith.constant 0 : index
    %965 = vector.load %arg13[%964, %c0_453, %c0_454] : memref<8x8x32xf32, #tpu.memory_space<vmem>>, vector<1x8x32xf32>
    %966 = vector.shape_cast %965 : vector<1x8x32xf32> to vector<8x32xf32>
    %c0_455 = arith.constant 0 : index
    %c0_456 = arith.constant 0 : index
    %967 = vector.load %arg14[%c0_455, %c0_456] : memref<8x32xf32, #tpu.memory_space<vmem>>, vector<8x32xf32>
    %968 = tpu.concatenate %963, %966, %967 in 1 : vector<8x32xf32>, vector<8x32xf32>, vector<8x32xf32> -> vector<8x96xf32>
    %cst_457 = arith.constant dense<0.000000e+00> : vector<8x128xf32>
    %969 = tpu.matmul %968, %2, %cst_457 {dimension_numbers = #tpu.dot_dimension_numbers<[1], [0], [0], [1], [0, 0, 1, 1], [], []>} : vector<8x96xf32>, vector<96x128xf32>, vector<8x128xf32> -> vector<8x128xf32>
    %970 = arith.addf %969, %12 : vector<8x128xf32>
    %c0_458 = arith.constant 0 : index
    %c0_459 = arith.constant 0 : index
    %971 = vector.load %arg15[%c0_458, %c0_459] : memref<8x32xf32, #tpu.memory_space<vmem>>, vector<8x32xf32>
    %972 = vector.extract_strided_slice %970 {offsets = [0, 0], sizes = [8, 32], strides = [1, 1]} : vector<8x128xf32> to vector<8x32xf32>
    %973 = arith.negf %972 : vector<8x32xf32>
    %974 = math.exp %973 : vector<8x32xf32>
    %cst_460 = arith.constant 1.000000e+00 : f32
    %975 = vector.broadcast %cst_460 : f32 to vector<8x32xf32>
    %976 = arith.addf %975, %974 : vector<8x32xf32>
    %977 = arith.divf %975, %976 : vector<8x32xf32>
    %978 = vector.extract_strided_slice %970 {offsets = [0, 32], sizes = [8, 32], strides = [1, 1]} : vector<8x128xf32> to vector<8x32xf32>
    %979 = arith.negf %978 : vector<8x32xf32>
    %980 = math.exp %979 : vector<8x32xf32>
    %cst_461 = arith.constant 1.000000e+00 : f32
    %981 = vector.broadcast %cst_461 : f32 to vector<8x32xf32>
    %982 = arith.addf %981, %980 : vector<8x32xf32>
    %983 = arith.divf %981, %982 : vector<8x32xf32>
    %984 = vector.extract_strided_slice %970 {offsets = [0, 64], sizes = [8, 32], strides = [1, 1]} : vector<8x128xf32> to vector<8x32xf32>
    %985 = math.tanh %984 : vector<8x32xf32>
    %986 = vector.extract_strided_slice %970 {offsets = [0, 96], sizes = [8, 32], strides = [1, 1]} : vector<8x128xf32> to vector<8x32xf32>
    %987 = arith.negf %986 : vector<8x32xf32>
    %988 = math.exp %987 : vector<8x32xf32>
    %cst_462 = arith.constant 1.000000e+00 : f32
    %989 = vector.broadcast %cst_462 : f32 to vector<8x32xf32>
    %990 = arith.addf %989, %988 : vector<8x32xf32>
    %991 = arith.divf %989, %990 : vector<8x32xf32>
    %992 = arith.mulf %983, %971 : vector<8x32xf32>
    %993 = arith.mulf %977, %985 : vector<8x32xf32>
    %994 = arith.addf %992, %993 : vector<8x32xf32>
    %995 = math.tanh %994 : vector<8x32xf32>
    %996 = arith.mulf %991, %995 : vector<8x32xf32>
    %c0_463 = arith.constant 0 : index
    %c0_464 = arith.constant 0 : index
    %997 = vector.load %arg14[%c0_463, %c0_464] : memref<8x32xf32, #tpu.memory_space<vmem>>, vector<8x32xf32>
    tpu.vector_store %arg14[%c0_463, %c0_464], %996 {strides = array<i32>} : memref<8x32xf32, #tpu.memory_space<vmem>>, vector<8x32xf32>,
    %c0_465 = arith.constant 0 : index
    %c0_466 = arith.constant 0 : index
    %998 = vector.load %arg15[%c0_465, %c0_466] : memref<8x32xf32, #tpu.memory_space<vmem>>, vector<8x32xf32>
    tpu.vector_store %arg15[%c0_465, %c0_466], %994 {strides = array<i32>} : memref<8x32xf32, #tpu.memory_space<vmem>>, vector<8x32xf32>,
    %c8_i32_467 = arith.constant 8 : i32
    %c7 = arith.constant 7 : index
    %c0_468 = arith.constant 0 : index
    %c0_469 = arith.constant 0 : index
    %999 = vector.load %arg12[%c7, %c0_468, %c0_469] : memref<8x8x32xf32, #tpu.memory_space<vmem>>, vector<1x8x32xf32>
    %1000 = vector.shape_cast %999 : vector<1x8x32xf32> to vector<8x32xf32>
    %c7_470 = arith.constant 7 : index
    %c0_471 = arith.constant 0 : index
    %c0_472 = arith.constant 0 : index
    %1001 = vector.load %arg13[%c7_470, %c0_471, %c0_472] : memref<8x8x32xf32, #tpu.memory_space<vmem>>, vector<1x8x32xf32>
    %1002 = vector.shape_cast %1001 : vector<1x8x32xf32> to vector<8x32xf32>
    %1003 = tpu.concatenate %1000, %1002, %16 in 1 : vector<8x32xf32>, vector<8x32xf32>, vector<8x32xf32> -> vector<8x96xf32>
    %cst_473 = arith.constant dense<0.000000e+00> : vector<8x128xf32>
    %1004 = tpu.matmul %1003, %3, %cst_473 {dimension_numbers = #tpu.dot_dimension_numbers<[1], [0], [0], [1], [0, 0, 1, 1], [], []>} : vector<8x96xf32>, vector<96x128xf32>, vector<8x128xf32> -> vector<8x128xf32>
    %1005 = arith.addf %1004, %15 : vector<8x128xf32>
    %1006 = vector.extract_strided_slice %1005 {offsets = [0, 0], sizes = [8, 32], strides = [1, 1]} : vector<8x128xf32> to vector<8x32xf32>
    %1007 = arith.negf %1006 : vector<8x32xf32>
    %1008 = math.exp %1007 : vector<8x32xf32>
    %cst_474 = arith.constant 1.000000e+00 : f32
    %1009 = vector.broadcast %cst_474 : f32 to vector<8x32xf32>
    %1010 = arith.addf %1009, %1008 : vector<8x32xf32>
    %1011 = arith.divf %1009, %1010 : vector<8x32xf32>
    %1012 = vector.extract_strided_slice %1005 {offsets = [0, 32], sizes = [8, 32], strides = [1, 1]} : vector<8x128xf32> to vector<8x32xf32>
    %1013 = arith.negf %1012 : vector<8x32xf32>
    %1014 = math.exp %1013 : vector<8x32xf32>
    %cst_475 = arith.constant 1.000000e+00 : f32
    %1015 = vector.broadcast %cst_475 : f32 to vector<8x32xf32>
    %1016 = arith.addf %1015, %1014 : vector<8x32xf32>
    %1017 = arith.divf %1015, %1016 : vector<8x32xf32>
    %1018 = vector.extract_strided_slice %1005 {offsets = [0, 64], sizes = [8, 32], strides = [1, 1]} : vector<8x128xf32> to vector<8x32xf32>
    %1019 = math.tanh %1018 : vector<8x32xf32>
    %1020 = vector.extract_strided_slice %1005 {offsets = [0, 96], sizes = [8, 32], strides = [1, 1]} : vector<8x128xf32> to vector<8x32xf32>
    %1021 = arith.negf %1020 : vector<8x32xf32>
    %1022 = math.exp %1021 : vector<8x32xf32>
    %cst_476 = arith.constant 1.000000e+00 : f32
    %1023 = vector.broadcast %cst_476 : f32 to vector<8x32xf32>
    %1024 = arith.addf %1023, %1022 : vector<8x32xf32>
    %1025 = arith.divf %1023, %1024 : vector<8x32xf32>
    %1026 = arith.mulf %1017, %16 : vector<8x32xf32>
    %1027 = arith.mulf %1011, %1019 : vector<8x32xf32>
    %1028 = arith.addf %1026, %1027 : vector<8x32xf32>
    %1029 = math.tanh %1028 : vector<8x32xf32>
    %1030 = arith.mulf %1025, %1029 : vector<8x32xf32>
    %c0_477 = arith.constant 0 : index
    %c0_478 = arith.constant 0 : index
    %1031 = vector.load %arg14[%c0_477, %c0_478] : memref<8x32xf32, #tpu.memory_space<vmem>>, vector<8x32xf32>
    %1032 = tpu.concatenate %1031, %1030 in 1 : vector<8x32xf32>, vector<8x32xf32> -> vector<8x64xf32>
    %c0_479 = arith.constant 0 : index
    %c0_480 = arith.constant 0 : index
    %1033 = vector.load %arg9[%c0_479, %c0_480] : memref<64x5xf32, #tpu.memory_space<vmem>>, vector<64x5xf32>
    %cst_481 = arith.constant dense<0.000000e+00> : vector<8x5xf32>
    %1034 = tpu.matmul %1032, %1033, %cst_481 {dimension_numbers = #tpu.dot_dimension_numbers<[1], [0], [0], [1], [0, 0, 1, 1], [], []>} : vector<8x64xf32>, vector<64x5xf32>, vector<8x5xf32> -> vector<8x5xf32>
    %c0_482 = arith.constant 0 : index
    %c0_483 = arith.constant 0 : index
    %1035 = vector.load %arg10[%c0_482, %c0_483] : memref<1x5xf32, #tpu.memory_space<vmem>>, vector<1x5xf32>
    %1036 = vector.broadcast %1035 : vector<1x5xf32> to vector<8x5xf32>
    %1037 = arith.addf %1034, %1036 : vector<8x5xf32>
    %cst_484 = arith.constant dense<0xFF800000> : vector<8xf32>
    %1038 = vector.multi_reduction <maximumf>, %1037, %cst_484 [1] : vector<8x5xf32> to vector<8xf32>
    %1039 = vector.shape_cast %1038 : vector<8xf32> to vector<8x1xf32>
    %1040 = vector.broadcast %1039 : vector<8x1xf32> to vector<8x5xf32>
    %1041 = arith.subf %1037, %1040 : vector<8x5xf32>
    %1042 = math.exp %1041 : vector<8x5xf32>
    %cst_485 = arith.constant dense<0.000000e+00> : vector<8xf32>
    %1043 = vector.multi_reduction <add>, %1042, %cst_485 [1] : vector<8x5xf32> to vector<8xf32>
    %1044 = vector.shape_cast %1043 : vector<8xf32> to vector<8x1xf32>
    %1045 = math.log %1044 : vector<8x1xf32>
    %1046 = arith.addf %1039, %1045 : vector<8x1xf32>
    %1047 = vector.broadcast %1046 : vector<8x1xf32> to vector<8x5xf32>
    %1048 = arith.subf %1037, %1047 : vector<8x5xf32>
    %c0_486 = arith.constant 0 : index
    %c0_487 = arith.constant 0 : index
    %1049 = vector.load %arg11[%c0_486, %c0_487] : memref<8x5xf32, #tpu.memory_space<vmem>>, vector<8x5xf32>
    tpu.vector_store %arg11[%c0_486, %c0_487], %1048 {strides = array<i32>} : memref<8x5xf32, #tpu.memory_space<vmem>>, vector<8x5xf32>,
    return
  }
}

</mosaic_0001>

<bundles_post_ra>
// kernel: lstm_model_forward.1
= control target key start
LH: loop header
LB: loop body
LE: loop exit
PB: predicated region body
PF: predicated region fallthrough
CT: control target
= control target key end

     0   :  { %vm102_vm0 = vcmask 261120   ;;  %v4613_v0 = vmov 0.0   ;;  %v4614_v1 = vmov 0.0|0.0   ;;  %vm4615_vm1 = vmmov 0   ;;  %s4616_s22 = smov 16   ;;  %s4618_s30 = smov 64   ;;  %s5531_s1 = inlined_call_operand.vmem [shape: f32[48,128], index: 1, kind: input, shape index: {}]   ;;  %s5532_s3 = inlined_call_operand.vmem [shape: f32[48,128], index: 3, kind: input, shape index: {}]   ;;  %s5533_s0 = inlined_call_operand.vmem [shape: f32[8,8,16], index: 0, kind: input, shape index: {}]   ;;  %s5534_s2 = inlined_call_operand.vmem [shape: f32[1,128], index: 2, kind: input, shape index: {}]   ;;  %s5535_s4 = inlined_call_operand.vmem [shape: f32[1,128], index: 4, kind: input, shape index: {}]   ;;  %s5536_s5 = inlined_call_operand.vmem [shape: f32[96,128], index: 5, kind: input, shape index: {}]   ;;  %s5537_s6 = inlined_call_operand.vmem [shape: f32[1,128], index: 6, kind: input, shape index: {}]   ;;  %s5538_s7 = inlined_call_operand.vmem [shape: f32[96,128], index: 7, kind: input, shape index: {}]   ;;  %s5539_s8 = inlined_call_operand.vmem [shape: f32[1,128], index: 8, kind: input, shape index: {}]   ;;  %s5540_s9 = inlined_call_operand.vmem [shape: f32[64,5], index: 9, kind: input, shape index: {}]   ;;  %s5541_s10 = inlined_call_operand.vmem [shape: f32[1,5], index: 10, kind: input, shape index: {}]   ;;  %s5542_s11 = inlined_call_operand.vmem [shape: f32[8,5], index: 11, kind: output, shape index: {}]  }
   0x1   :  { %103 = vst.msk [vmem:[#allocation4] sm:$0xff] %vm102_vm0, %v4613_v0  ;;  %104 = vst.msk [vmem:[#allocation5] sm:$0xff] %vm102_vm0, %v4613_v0  ;;  %4082 = vmatprep.subr.bf16.mxu0 %v4614_v1  ;;  %v38_v2 = vld [vmem:[%s5531_s1] sm:$0xff]  ;;  %v39_v3 = vld [vmem:[%s5531_s1 + $0x8] sm:$0xff]  ;;  %4091 = vmatprep.subr.bf16.mxu1 %v4614_v1  ;;  %vm115_vm2 = vcmask 130048   ;;  %vm117_vm3 = vcmask 392192  }
   0x2   :  { %105 = vst.msk [vmem:[#allocation6] sm:$0xff] %vm102_vm0, %v4613_v0  ;;  %106 = vst.msk [vmem:[#allocation7] sm:$0xff] %vm102_vm0, %v4613_v0  ;;  %v40_v4 = vld [vmem:[%s5531_s1 + $0x10] sm:$0xff]  ;;  %v4699_v5 = vpack.c.bf16 %v39_v3, %v38_v2  ;;  %v41_v6 = vld [vmem:[%s5531_s1 + $0x18] sm:$0xff]  ;;  %3592 = vmatprep.mubr.msk.f32.mxu0 %vm4615_vm1, %v4613_v0  ;;  %3607 = vmatprep.mubr.msk.f32.mxu1 %vm4615_vm1, %v4613_v0  ;;  %s4619_s12 = smov 96   ;;  %vm2064_vm4 = vcmask 523264  }
   0x3   :  { %v44_v7 = vld [vmem:[%s5532_s3] sm:$0xff]  ;;  %v45_v8 = vld [vmem:[%s5532_s3 + $0x8] sm:$0xff]  ;;  %v46_v10 = vld [vmem:[%s5532_s3 + $0x10] sm:$0xff]  ;;  %v4720_v11 = vpack.c.bf16 %v41_v6, %v40_v4  ;;  %vm2066_vm5 = vcmask 785408   ;;  %vm3253_vm6 = vcmask 39936  }
   0x4   :  { %v4714_v9 = vpack.c.bf16 %v45_v8, %v44_v7  ;;  %4084 = vmatpush3.bf16.msra.mxu0 %v4699_v5  ;;  %v47_v12 = vld [vmem:[%s5532_s3 + $0x18] sm:$0xff]  ;;  %v42_v13 = vld [vmem:[%s5531_s1 + $0x20] sm:$0xff]  ;;  %v43_v14 = vld [vmem:[%s5531_s1 + $0x28] sm:$0xff]  ;;  %s4617_s1 = smov 32  }
   0x5   :  { %4085 = vmatprep.subr.bf16.mxu0 %v4614_v1  ;;  %v4734_v15 = vpack.c.bf16 %v47_v12, %v46_v10  ;;  %v48_v16 = vld [vmem:[%s5532_s3 + $0x20] sm:$0xff]  ;;  %v49_v17 = vld [vmem:[%s5532_s3 + $0x28] sm:$0xff]  ;;  %v4743_v19 = vpack.c.bf16 %v43_v14, %v42_v13  ;;  %v3276_v26 = vld [vmem:[%s5533_s0 + $0x38] sm:$0xff] }
   0x6   :  { %4093 = vmatpush3.bf16.msra.mxu1 %v4714_v9  ;;  %v4748_v21 = vpack.c.bf16 %v49_v17, %v48_v16  ;;  %v107_v23 = vld [vmem:[%s5533_s0] sm:$0xff]  ;;  %v4815_v10 = vld [vmem:[%s5533_s0 + $0x8] sm:$0xff]  ;;  %v4823_v14 = vld [vmem:[%s5533_s0 + $0x30] sm:$0xff] }
   0x7   :  { %4094 = vmatprep.subr.bf16.mxu1 %v4614_v1  ;;  %v4786_v29 = vld [vmem:[%s5534_s2] ss:$0 sm:$0xff] }
   0x8   :  { %v110_v18 = vld [vmem:[#allocation4] sm:$0xff]  ;;  %4087 = vmatpush3.bf16.msra.mxu0 %v4720_v11  ;;  %v270_v22 = vld [vmem:[#allocation5] sm:$0xff] }
   0x9   :  { %112 = vrot.lane.b32.xlu0 %v110_v18, %s4616_s22  ;;  %4088 = vmatprep.subr.bf16.mxu0 %v4614_v1  ;;  %v191_v20 = vld [vmem:[#allocation6] sm:$0xff]  ;;  %v4792_v33 = vld [vmem:[%s5535_s4] ss:$0 sm:$0xff]  ;;  %v299_v39 = vld [vmem:[#allocation7] sm:$0xff] }
   0xa   :  { %4096 = vmatpush3.bf16.msra.mxu1 %v4734_v15 }
   0xb   :  { %4097 = vmatprep.subr.bf16.mxu1 %v4614_v1 }
   0xc   :  { %4090 = vmatpush3.bf16.msra.mxu0 %v4743_v19 }
   0xd   :  { %193 = vrot.lane.b32.xlu0 %v191_v20, %s4616_s22  ;;  %4100 = vmatprep.subr.bf16.mxu0 %v4614_v1 }
   0xe   :  { %4099 = vmatpush3.bf16.msra.mxu1 %v4748_v21 }
   0xf   :  { %4109 = vmatprep.subr.bf16.mxu1 %v4614_v1 }
  0x11   :  { %279 = vrot.lane.b32.xlu0 %v270_v22, %s4617_s1 }
  0x7b   :  { %v113_v24 = vpop.permute.xlu0 %112 }
  0x7c   :  { %v116_v25 = vsel %vm115_vm2, %v107_v23, %v113_v24 }
  0x7d   :  { %3593 = vmatmul.mubr.msk.f32.vlgmr.msra.gmra.mrb[0].mxu0 %vm117_vm3, %v116_v25 }
  0x7e   :  { %4102 = vmatpush3.bf16.msra.mxu0 %v4699_v5  ;;  %3622 = vmatprep.mubr.msk.f32.mxu0 %vm4615_vm1, %v4613_v0 }
  0x7f   :  { %v194_v27 = vpop.permute.xlu0 %193  ;;  %4103 = vmatprep.subr.bf16.mxu0 %v4614_v1 }
  0x80   :  { %v196_v28 = vsel %vm115_vm2, %v3276_v26, %v194_v27 }
  0x81   :  { %3608 = vmatmul.mubr.msk.f32.vlgmr.msra.gmra.mrb[0].mxu1 %vm117_vm3, %v196_v28 }
  0x82   :  { %4105 = vmatpush3.bf16.msra.mxu0 %v4720_v11  ;;  %4111 = vmatpush3.bf16.msra.mxu1 %v4714_v9 }
  0x83   :  { %4106 = vmatprep.subr.bf16.mxu0 %v4614_v1  ;;  %4112 = vmatprep.subr.bf16.mxu1 %v4614_v1  ;;  %v280_v52 = vpop.permute.xlu0 %279 }
  0x84   :  { %3637 = vmatprep.mubr.msk.f32.mxu1 %vm4615_vm1, %v4613_v0 }
  0x86   :  { %4108 = vmatpush3.bf16.msra.mxu0 %v4743_v19  ;;  %4114 = vmatpush3.bf16.msra.mxu1 %v4734_v15 }
  0x87   :  { %4115 = vmatprep.subr.bf16.mxu1 %v4614_v1  ;;  %4118 = vmatprep.subr.bf16.mxu0 %v4614_v1 }
  0x8a   :  { %4117 = vmatpush3.bf16.msra.mxu1 %v4748_v21 }
  0x8b   :  { %4127 = vmatprep.subr.bf16.mxu1 %v4614_v1 }
 0x150   :  { %v187_v30 = vpop.f32.mrb[0].mxu0 }
 0x151   :  { %v188_v31 = vadd.f32 %v4786_v29, %v187_v30  ;;  %v3594_v32 = vpop.f32.mrb[1].mxu0 }
 0x153   :  { %4407 = vtanh.f32 %v188_v31  ;;  %v3279_v40 = vmul.f32 -1.442695, %v188_v31 }
 0x154   :  { %v266_v34 = vpop.f32.mrb[0].mxu1 }
 0x155   :  { %v267_v35 = vadd.f32 %v4792_v33, %v266_v34  ;;  %v3609_v36 = vpop.f32.mrb[1].mxu1 }
 0x157   :  { %4409 = vtanh.f32 %v267_v35  ;;  %v3280_v41 = vmul.f32 -1.442695, %v267_v35 }
 0x158   :  { %4411 = vpow2.f32 %v3279_v40 }
 0x159   :  { %4413 = vpow2.f32 %v3280_v41 }
 0x15d   :  { %v4408_v37 = vpop.eup %4407 }
 0x15e   :  { %284 = vrot.lane.b32.xlu1 %v4408_v37, %s4618_s30 }
 0x161   :  { %v4410_v38 = vpop.eup %4409 }
 0x162   :  { %313 = vrot.lane.b32.xlu1 %v4410_v38, %s4618_s30  ;;  %v4412_v42 = vpop.eup %4411 }
 0x163   :  { %v274_v43 = vadd.f32 1.0, %v4412_v42  ;;  %v4414_v44 = vpop.eup %4413 }
 0x164   :  { %v303_v45 = vadd.f32 1.0, %v4414_v44 }
 0x165   :  { %4415 = vrcp.f32 %v274_v43 }
 0x166   :  { %308 = vrot.lane.b32.xlu1 %v299_v39, %s4617_s1  ;;  %4417 = vrcp.f32 %v303_v45 }
 0x16f   :  { %v4416_v46 = vpop.eup %4415 }
 0x170   :  { %v4418_v49 = vpop.eup %4417  ;;  %v282_v53 = vmul.f32 %v4416_v46, %v280_v52 }
 0x1d0   :  { %v285_v47 = vpop.permute.xlu1 %284 }
 0x1d1   :  { %v287_v48 = vmul.f32 %v4416_v46, %v285_v47 }
 0x1d3   :  { %289 = vrot.lane.b32.xlu0 %v287_v48, %s4617_s1 }
 0x1d4   :  { %v314_v50 = vpop.permute.xlu1 %313 }
 0x1d5   :  { %v316_v51 = vmul.f32 %v4418_v49, %v314_v50 }
 0x1d7   :  { %318 = vrot.lane.b32.xlu1 %v316_v51, %s4617_s1 }
 0x1d8   :  { %v309_v54 = vpop.permute.xlu1 %308 }
 0x1d9   :  { %v311_v57 = vmul.f32 %v4418_v49, %v309_v54 }
 0x245   :  { %v290_v55 = vpop.permute.xlu0 %289 }
 0x246   :  { %v292_v56 = vadd.f32 %v290_v55, %v282_v53 }
 0x248   :  { %4419 = vtanh.f32 %v292_v56 }
 0x249   :  { %v319_v58 = vpop.permute.xlu1 %318 }
 0x24a   :  { %v321_v59 = vadd.f32 %v319_v58, %v311_v57 }
 0x24c   :  { %4421 = vtanh.f32 %v321_v59 }
 0x252   :  { %v4420_v60 = vpop.eup %4419 }
 0x253   :  { %295 = vrot.lane.b32.xlu0 %v4420_v60, %s4618_s30 }
 0x256   :  { %v4422_v61 = vpop.eup %4421 }
 0x257   :  { %324 = vrot.lane.b32.xlu1 %v4422_v61, %s4618_s30 }
 0x2c5   :  { %v296_v62 = vpop.permute.xlu0 %295 }
 0x2c6   :  { %v298_v63 = vmul.f32 %v4416_v46, %v296_v62 }
 0x2c8   :  { %329 = vrot.lane.b32.xlu0 %v298_v63, %s4617_s1 }
 0x2c9   :  { %v325_v2 = vpop.permute.xlu1 %324 }
 0x2ca   :  { %v327_v3 = vmul.f32 %v4418_v49, %v325_v2  ;;  %v4869_v2 = vld [vmem:[%s5533_s0 + $0x10] sm:$0xff] }
 0x2cc   :  { %339 = vrot.lane.b32.xlu1 %v327_v3, %s4617_s1 }
 0x33a   :  { %v330_v4 = vpop.permute.xlu0 %329 }
 0x33b   :  { %332 = vst.msk [vmem:[#allocation4] sm:$0xff] %vm102_vm0, %v330_v4  ;;  %348 = vst.msk [vmem:[#allocation2] sm:$0xff] %vm102_vm0, %v330_v4 }
 0x33e   :  { %v340_v6 = vpop.permute.xlu1 %339 }
 0x33f   :  { %342 = vst.msk [vmem:[#allocation6] sm:$0xff] %vm102_vm0, %v340_v6  ;;  %350 = vst.msk [vmem:[#allocation3 + $0x38] sm:$0xff] %vm102_vm0, %v340_v6  ;;  %v4877_v6 = vld [vmem:[%s5533_s0 + $0x28] sm:$0xff] }
 0x342   :  { %v355_v7 = vld [vmem:[#allocation4] sm:$0xff] }
 0x343   :  { %357 = vrot.lane.b32.xlu0 %v355_v7, %s4616_s22 }
 0x346   :  { %v434_v8 = vld [vmem:[#allocation6] sm:$0xff] }
 0x347   :  { %436 = vrot.lane.b32.xlu1 %v434_v8, %s4616_s22  ;;  %334 = vrot.lane.b32.xlu0 %v292_v56, %s4619_s12 }
 0x34b   :  { %344 = vrot.lane.b32.xlu1 %v321_v59, %s4619_s12 }
 0x3b5   :  { %v358_v12 = vpop.permute.xlu0 %357 }
 0x3b6   :  { %v360_v13 = vsel %vm115_vm2, %v4815_v10, %v358_v12 }
 0x3b7   :  { %3623 = vmatmul.mubr.msk.f32.vlgmr.msra.gmra.mrb[2].mxu0 %vm117_vm3, %v360_v13 }
 0x3b8   :  { %4120 = vmatpush3.bf16.msra.mxu0 %v4699_v5  ;;  %3652 = vmatprep.mubr.msk.f32.mxu0 %vm4615_vm1, %v4613_v0 }
 0x3b9   :  { %v437_v16 = vpop.permute.xlu1 %436  ;;  %v335_v17 = vpop.permute.xlu0 %334  ;;  %4121 = vmatprep.subr.bf16.mxu0 %v4614_v1 }
 0x3ba   :  { %v439_v18 = vsel %vm115_vm2, %v4823_v14, %v437_v16  ;;  %337 = vst.msk [vmem:[#allocation5] sm:$0xff] %vm102_vm0, %v335_v17 }
 0x3bb   :  { %3638 = vmatmul.mubr.msk.f32.vlgmr.msra.gmra.mrb[2].mxu1 %vm117_vm3, %v439_v18 }
 0x3bc   :  { %4123 = vmatpush3.bf16.msra.mxu0 %v4720_v11  ;;  %4129 = vmatpush3.bf16.msra.mxu1 %v4714_v9 }
 0x3bd   :  { %v345_v20 = vpop.permute.xlu1 %344  ;;  %4124 = vmatprep.subr.bf16.mxu0 %v4614_v1  ;;  %4130 = vmatprep.subr.bf16.mxu1 %v4614_v1 }
 0x3be   :  { %347 = vst.msk [vmem:[#allocation7] sm:$0xff] %vm102_vm0, %v345_v20  ;;  %3667 = vmatprep.mubr.msk.f32.mxu1 %vm4615_vm1, %v4613_v0 }
 0x3c0   :  { %4126 = vmatpush3.bf16.msra.mxu0 %v4743_v19  ;;  %4132 = vmatpush3.bf16.msra.mxu1 %v4734_v15 }
 0x3c1   :  { %4133 = vmatprep.subr.bf16.mxu1 %v4614_v1  ;;  %4136 = vmatprep.subr.bf16.mxu0 %v4614_v1  ;;  %v513_v31 = vld [vmem:[#allocation5] sm:$0xff] }
 0x3c4   :  { %4135 = vmatpush3.bf16.msra.mxu1 %v4748_v21 }
 0x3c5   :  { %4145 = vmatprep.subr.bf16.mxu1 %v4614_v1  ;;  %v542_v32 = vld [vmem:[#allocation7] sm:$0xff] }
 0x48a   :  { %v430_v22 = vpop.f32.mrb[2].mxu0 }
 0x48b   :  { %v431_v23 = vadd.f32 %v4786_v29, %v430_v22  ;;  %v3624_v24 = vpop.f32.mrb[3].mxu0 }
 0x48d   :  { %4423 = vtanh.f32 %v431_v23  ;;  %v3285_v34 = vmul.f32 -1.442695, %v431_v23 }
 0x48e   :  { %v509_v25 = vpop.f32.mrb[2].mxu1 }
 0x48f   :  { %v510_v26 = vadd.f32 %v4792_v33, %v509_v25  ;;  %v3639_v27 = vpop.f32.mrb[3].mxu1 }
 0x491   :  { %4425 = vtanh.f32 %v510_v26  ;;  %v3286_v35 = vmul.f32 -1.442695, %v510_v26 }
 0x492   :  { %4427 = vpow2.f32 %v3285_v34 }
 0x493   :  { %4429 = vpow2.f32 %v3286_v35 }
 0x497   :  { %v4424_v28 = vpop.eup %4423 }
 0x498   :  { %527 = vrot.lane.b32.xlu0 %v4424_v28, %s4618_s30 }
 0x49b   :  { %v4426_v30 = vpop.eup %4425 }
 0x49c   :  { %556 = vrot.lane.b32.xlu1 %v4426_v30, %s4618_s30  ;;  %522 = vrot.lane.b32.xlu0 %v513_v31, %s4617_s1  ;;  %v4428_v36 = vpop.eup %4427 }
 0x49d   :  { %v517_v37 = vadd.f32 1.0, %v4428_v36  ;;  %v4430_v38 = vpop.eup %4429 }
 0x49e   :  { %v546_v39 = vadd.f32 1.0, %v4430_v38 }
 0x49f   :  { %4431 = vrcp.f32 %v517_v37 }
 0x4a0   :  { %551 = vrot.lane.b32.xlu1 %v542_v32, %s4617_s1  ;;  %4433 = vrcp.f32 %v546_v39 }
 0x4a9   :  { %v4432_v40 = vpop.eup %4431 }
 0x4aa   :  { %v4434_v43 = vpop.eup %4433 }
 0x50a   :  { %v528_v41 = vpop.permute.xlu0 %527 }
 0x50b   :  { %v530_v42 = vmul.f32 %v4432_v40, %v528_v41 }
 0x50d   :  { %532 = vrot.lane.b32.xlu0 %v530_v42, %s4617_s1 }
 0x50e   :  { %v557_v44 = vpop.permute.xlu1 %556  ;;  %v523_v46 = vpop.permute.xlu0 %522 }
 0x50f   :  { %v559_v45 = vmul.f32 %v4434_v43, %v557_v44  ;;  %v525_v47 = vmul.f32 %v4432_v40, %v523_v46 }
 0x511   :  { %561 = vrot.lane.b32.xlu1 %v559_v45, %s4617_s1 }
 0x512   :  { %v552_v48 = vpop.permute.xlu1 %551 }
 0x513   :  { %v554_v51 = vmul.f32 %v4434_v43, %v552_v48 }
 0x57f   :  { %v533_v49 = vpop.permute.xlu0 %532 }
 0x580   :  { %v535_v50 = vadd.f32 %v533_v49, %v525_v47 }
 0x582   :  { %4435 = vtanh.f32 %v535_v50 }
 0x583   :  { %v562_v52 = vpop.permute.xlu1 %561 }
 0x584   :  { %v564_v53 = vadd.f32 %v562_v52, %v554_v51 }
 0x586   :  { %4437 = vtanh.f32 %v564_v53 }
 0x58c   :  { %v4436_v54 = vpop.eup %4435 }
 0x58d   :  { %538 = vrot.lane.b32.xlu0 %v4436_v54, %s4618_s30 }
 0x590   :  { %v4438_v55 = vpop.eup %4437 }
 0x591   :  { %567 = vrot.lane.b32.xlu1 %v4438_v55, %s4618_s30 }
 0x5ff   :  { %v539_v56 = vpop.permute.xlu0 %538 }
 0x600   :  { %v541_v57 = vmul.f32 %v4432_v40, %v539_v56 }
 0x602   :  { %572 = vrot.lane.b32.xlu0 %v541_v57, %s4617_s1 }
 0x603   :  { %v568_v58 = vpop.permute.xlu1 %567 }
 0x604   :  { %v570_v59 = vmul.f32 %v4434_v43, %v568_v58 }
 0x606   :  { %582 = vrot.lane.b32.xlu1 %v570_v59, %s4617_s1 }
 0x674   :  { %v573_v60 = vpop.permute.xlu0 %572 }
 0x675   :  { %575 = vst.msk [vmem:[#allocation4] sm:$0xff] %vm102_vm0, %v573_v60  ;;  %592 = vst.msk [vmem:[#allocation2 + $0x8] sm:$0xff] %vm102_vm0, %v573_v60  ;;  %v4923_v60 = vld [vmem:[%s5533_s0 + $0x18] sm:$0xff] }
 0x678   :  { %v583_v61 = vpop.permute.xlu1 %582 }
 0x679   :  { %585 = vst.msk [vmem:[#allocation6] sm:$0xff] %vm102_vm0, %v583_v61  ;;  %594 = vst.msk [vmem:[#allocation3 + $0x30] sm:$0xff] %vm102_vm0, %v583_v61 }
 0x67c   :  { %v599_v62 = vld [vmem:[#allocation4] sm:$0xff] }
 0x67d   :  { %601 = vrot.lane.b32.xlu0 %v599_v62, %s4616_s22 }
 0x680   :  { %v678_v63 = vld [vmem:[#allocation6] sm:$0xff] }
 0x681   :  { %680 = vrot.lane.b32.xlu1 %v678_v63, %s4616_s22  ;;  %577 = vrot.lane.b32.xlu0 %v535_v50, %s4619_s12  ;;  %v4931_v63 = vld [vmem:[%s5533_s0 + $0x20] sm:$0xff] }
 0x685   :  { %587 = vrot.lane.b32.xlu1 %v564_v53, %s4619_s12 }
 0x6ef   :  { %v602_v3 = vpop.permute.xlu0 %601 }
 0x6f0   :  { %v604_v4 = vsel %vm115_vm2, %v4869_v2, %v602_v3 }
 0x6f1   :  { %3653 = vmatmul.mubr.msk.f32.vlgmr.msra.gmra.mrb[4].mxu0 %vm117_vm3, %v604_v4 }
 0x6f2   :  { %4138 = vmatpush3.bf16.msra.mxu0 %v4699_v5  ;;  %3682 = vmatprep.mubr.msk.f32.mxu0 %vm4615_vm1, %v4613_v0 }
 0x6f3   :  { %v681_v7 = vpop.permute.xlu1 %680  ;;  %v578_v8 = vpop.permute.xlu0 %577  ;;  %4139 = vmatprep.subr.bf16.mxu0 %v4614_v1 }
 0x6f4   :  { %v683_v12 = vsel %vm115_vm2, %v4877_v6, %v681_v7  ;;  %580 = vst.msk [vmem:[#allocation5] sm:$0xff] %vm102_vm0, %v578_v8 }
 0x6f5   :  { %3668 = vmatmul.mubr.msk.f32.vlgmr.msra.gmra.mrb[4].mxu1 %vm117_vm3, %v683_v12 }
 0x6f6   :  { %4141 = vmatpush3.bf16.msra.mxu0 %v4720_v11  ;;  %4147 = vmatpush3.bf16.msra.mxu1 %v4714_v9 }
 0x6f7   :  { %v588_v13 = vpop.permute.xlu1 %587  ;;  %4142 = vmatprep.subr.bf16.mxu0 %v4614_v1  ;;  %4148 = vmatprep.subr.bf16.mxu1 %v4614_v1 }
 0x6f8   :  { %590 = vst.msk [vmem:[#allocation7] sm:$0xff] %vm102_vm0, %v588_v13  ;;  %3697 = vmatprep.mubr.msk.f32.mxu1 %vm4615_vm1, %v4613_v0 }
 0x6fa   :  { %4144 = vmatpush3.bf16.msra.mxu0 %v4743_v19  ;;  %4150 = vmatpush3.bf16.msra.mxu1 %v4734_v15 }
 0x6fb   :  { %4151 = vmatprep.subr.bf16.mxu1 %v4614_v1  ;;  %4154 = vmatprep.subr.bf16.mxu0 %v4614_v1  ;;  %v757_v26 = vld [vmem:[#allocation5] sm:$0xff] }
 0x6fe   :  { %4153 = vmatpush3.bf16.msra.mxu1 %v4748_v21 }
 0x6ff   :  { %4163 = vmatprep.subr.bf16.mxu1 %v4614_v1  ;;  %v786_v27 = vld [vmem:[#allocation7] sm:$0xff] }
 0x7c4   :  { %v674_v16 = vpop.f32.mrb[4].mxu0 }
 0x7c5   :  { %v675_v17 = vadd.f32 %v4786_v29, %v674_v16  ;;  %v3654_v18 = vpop.f32.mrb[5].mxu0 }
 0x7c7   :  { %4439 = vtanh.f32 %v675_v17  ;;  %v3291_v28 = vmul.f32 -1.442695, %v675_v17 }
 0x7c8   :  { %v753_v20 = vpop.f32.mrb[4].mxu1 }
 0x7c9   :  { %v754_v22 = vadd.f32 %v4792_v33, %v753_v20  ;;  %v3669_v23 = vpop.f32.mrb[5].mxu1 }
 0x7cb   :  { %4441 = vtanh.f32 %v754_v22  ;;  %v3292_v30 = vmul.f32 -1.442695, %v754_v22 }
 0x7cc   :  { %4443 = vpow2.f32 %v3291_v28 }
 0x7cd   :  { %4445 = vpow2.f32 %v3292_v30 }
 0x7d1   :  { %v4440_v24 = vpop.eup %4439 }
 0x7d2   :  { %771 = vrot.lane.b32.xlu0 %v4440_v24, %s4618_s30 }
 0x7d5   :  { %v4442_v25 = vpop.eup %4441 }
 0x7d6   :  { %800 = vrot.lane.b32.xlu1 %v4442_v25, %s4618_s30  ;;  %766 = vrot.lane.b32.xlu0 %v757_v26, %s4617_s1  ;;  %v4444_v31 = vpop.eup %4443 }
 0x7d7   :  { %v761_v32 = vadd.f32 1.0, %v4444_v31  ;;  %v4446_v34 = vpop.eup %4445 }
 0x7d8   :  { %v790_v35 = vadd.f32 1.0, %v4446_v34 }
 0x7d9   :  { %4447 = vrcp.f32 %v761_v32 }
 0x7da   :  { %795 = vrot.lane.b32.xlu1 %v786_v27, %s4617_s1  ;;  %4449 = vrcp.f32 %v790_v35 }
 0x7e3   :  { %v4448_v36 = vpop.eup %4447 }
 0x7e4   :  { %v4450_v39 = vpop.eup %4449 }
 0x844   :  { %v772_v37 = vpop.permute.xlu0 %771 }
 0x845   :  { %v774_v38 = vmul.f32 %v4448_v36, %v772_v37 }
 0x847   :  { %776 = vrot.lane.b32.xlu0 %v774_v38, %s4617_s1 }
 0x848   :  { %v801_v40 = vpop.permute.xlu1 %800  ;;  %v767_v42 = vpop.permute.xlu0 %766 }
 0x849   :  { %v803_v41 = vmul.f32 %v4450_v39, %v801_v40  ;;  %v769_v43 = vmul.f32 %v4448_v36, %v767_v42 }
 0x84b   :  { %805 = vrot.lane.b32.xlu1 %v803_v41, %s4617_s1 }
 0x84c   :  { %v796_v44 = vpop.permute.xlu1 %795 }
 0x84d   :  { %v798_v47 = vmul.f32 %v4450_v39, %v796_v44 }
 0x8b9   :  { %v777_v45 = vpop.permute.xlu0 %776 }
 0x8ba   :  { %v779_v46 = vadd.f32 %v777_v45, %v769_v43 }
 0x8bc   :  { %4451 = vtanh.f32 %v779_v46 }
 0x8bd   :  { %v806_v48 = vpop.permute.xlu1 %805 }
 0x8be   :  { %v808_v49 = vadd.f32 %v806_v48, %v798_v47 }
 0x8c0   :  { %4453 = vtanh.f32 %v808_v49 }
 0x8c6   :  { %v4452_v50 = vpop.eup %4451 }
 0x8c7   :  { %782 = vrot.lane.b32.xlu0 %v4452_v50, %s4618_s30 }
 0x8ca   :  { %v4454_v51 = vpop.eup %4453 }
 0x8cb   :  { %811 = vrot.lane.b32.xlu1 %v4454_v51, %s4618_s30 }
 0x939   :  { %v783_v52 = vpop.permute.xlu0 %782 }
 0x93a   :  { %v785_v53 = vmul.f32 %v4448_v36, %v783_v52 }
 0x93c   :  { %816 = vrot.lane.b32.xlu0 %v785_v53, %s4617_s1 }
 0x93d   :  { %v812_v54 = vpop.permute.xlu1 %811 }
 0x93e   :  { %v814_v55 = vmul.f32 %v4450_v39, %v812_v54 }
 0x940   :  { %826 = vrot.lane.b32.xlu1 %v814_v55, %s4617_s1 }
 0x9ae   :  { %v817_v56 = vpop.permute.xlu0 %816 }
 0x9af   :  { %819 = vst.msk [vmem:[#allocation4] sm:$0xff] %vm102_vm0, %v817_v56  ;;  %836 = vst.msk [vmem:[#allocation2 + $0x10] sm:$0xff] %vm102_vm0, %v817_v56 }
 0x9b2   :  { %v827_v57 = vpop.permute.xlu1 %826 }
 0x9b3   :  { %829 = vst.msk [vmem:[#allocation6] sm:$0xff] %vm102_vm0, %v827_v57  ;;  %838 = vst.msk [vmem:[#allocation3 + $0x28] sm:$0xff] %vm102_vm0, %v827_v57 }
 0x9b6   :  { %v843_v58 = vld [vmem:[#allocation4] sm:$0xff] }
 0x9b7   :  { %845 = vrot.lane.b32.xlu0 %v843_v58, %s4616_s22 }
 0x9ba   :  { %v922_v59 = vld [vmem:[#allocation6] sm:$0xff] }
 0x9bb   :  { %924 = vrot.lane.b32.xlu1 %v922_v59, %s4616_s22  ;;  %821 = vrot.lane.b32.xlu0 %v779_v46, %s4619_s12 }
 0x9bf   :  { %831 = vrot.lane.b32.xlu1 %v808_v49, %s4619_s12 }
 0xa29   :  { %v846_v61 = vpop.permute.xlu0 %845 }
 0xa2a   :  { %v848_v62 = vsel %vm115_vm2, %v4923_v60, %v846_v61 }
 0xa2b   :  { %3683 = vmatmul.mubr.msk.f32.vlgmr.msra.gmra.mrb[6].mxu0 %vm117_vm3, %v848_v62 }
 0xa2c   :  { %4156 = vmatpush3.bf16.msra.mxu0 %v4699_v5  ;;  %3712 = vmatprep.mubr.msk.f32.mxu0 %vm4615_vm1, %v4613_v0 }
 0xa2d   :  { %v925_v3 = vpop.permute.xlu1 %924  ;;  %v822_v4 = vpop.permute.xlu0 %821  ;;  %4157 = vmatprep.subr.bf16.mxu0 %v4614_v1 }
 0xa2e   :  { %v927_v7 = vsel %vm115_vm2, %v4931_v63, %v925_v3  ;;  %824 = vst.msk [vmem:[#allocation5] sm:$0xff] %vm102_vm0, %v822_v4 }
 0xa2f   :  { %3698 = vmatmul.mubr.msk.f32.vlgmr.msra.gmra.mrb[6].mxu1 %vm117_vm3, %v927_v7 }
 0xa30   :  { %4159 = vmatpush3.bf16.msra.mxu0 %v4720_v11  ;;  %4165 = vmatpush3.bf16.msra.mxu1 %v4714_v9 }
 0xa31   :  { %v832_v8 = vpop.permute.xlu1 %831  ;;  %4160 = vmatprep.subr.bf16.mxu0 %v4614_v1  ;;  %4166 = vmatprep.subr.bf16.mxu1 %v4614_v1 }
 0xa32   :  { %834 = vst.msk [vmem:[#allocation7] sm:$0xff] %vm102_vm0, %v832_v8  ;;  %3727 = vmatprep.mubr.msk.f32.mxu1 %vm4615_vm1, %v4613_v0 }
 0xa34   :  { %4162 = vmatpush3.bf16.msra.mxu0 %v4743_v19  ;;  %4168 = vmatpush3.bf16.msra.mxu1 %v4734_v15 }
 0xa35   :  { %4169 = vmatprep.subr.bf16.mxu1 %v4614_v1  ;;  %4172 = vmatprep.subr.bf16.mxu0 %v4614_v1  ;;  %v1001_v24 = vld [vmem:[#allocation5] sm:$0xff] }
 0xa38   :  { %4171 = vmatpush3.bf16.msra.mxu1 %v4748_v21 }
 0xa39   :  { %4181 = vmatprep.subr.bf16.mxu1 %v4614_v1  ;;  %v1030_v25 = vld [vmem:[#allocation7] sm:$0xff] }
 0xafe   :  { %v918_v12 = vpop.f32.mrb[6].mxu0 }
 0xaff   :  { %v919_v13 = vadd.f32 %v4786_v29, %v918_v12  ;;  %v3684_v16 = vpop.f32.mrb[7].mxu0 }
 0xb01   :  { %4455 = vtanh.f32 %v919_v13  ;;  %v3297_v26 = vmul.f32 -1.442695, %v919_v13 }
 0xb02   :  { %v997_v17 = vpop.f32.mrb[6].mxu1 }
 0xb03   :  { %v998_v18 = vadd.f32 %v4792_v33, %v997_v17  ;;  %v3699_v20 = vpop.f32.mrb[7].mxu1 }
 0xb05   :  { %4457 = vtanh.f32 %v998_v18  ;;  %v3298_v27 = vmul.f32 -1.442695, %v998_v18 }
 0xb06   :  { %4459 = vpow2.f32 %v3297_v26 }
 0xb07   :  { %4461 = vpow2.f32 %v3298_v27 }
 0xb0b   :  { %v4456_v22 = vpop.eup %4455 }
 0xb0c   :  { %1015 = vrot.lane.b32.xlu0 %v4456_v22, %s4618_s30 }
 0xb0f   :  { %v4458_v23 = vpop.eup %4457 }
 0xb10   :  { %1044 = vrot.lane.b32.xlu1 %v4458_v23, %s4618_s30  ;;  %1010 = vrot.lane.b32.xlu0 %v1001_v24, %s4617_s1  ;;  %v4460_v28 = vpop.eup %4459 }
 0xb11   :  { %v1005_v30 = vadd.f32 1.0, %v4460_v28  ;;  %v4462_v31 = vpop.eup %4461 }
 0xb12   :  { %v1034_v32 = vadd.f32 1.0, %v4462_v31 }
 0xb13   :  { %4463 = vrcp.f32 %v1005_v30 }
 0xb14   :  { %1039 = vrot.lane.b32.xlu1 %v1030_v25, %s4617_s1  ;;  %4465 = vrcp.f32 %v1034_v32 }
 0xb1d   :  { %v4464_v34 = vpop.eup %4463 }
 0xb1e   :  { %v4466_v37 = vpop.eup %4465 }
 0xb7e   :  { %v1016_v35 = vpop.permute.xlu0 %1015 }
 0xb7f   :  { %v1018_v36 = vmul.f32 %v4464_v34, %v1016_v35 }
 0xb81   :  { %1020 = vrot.lane.b32.xlu0 %v1018_v36, %s4617_s1 }
 0xb82   :  { %v1045_v38 = vpop.permute.xlu1 %1044  ;;  %v1011_v40 = vpop.permute.xlu0 %1010 }
 0xb83   :  { %v1047_v39 = vmul.f32 %v4466_v37, %v1045_v38  ;;  %v1013_v41 = vmul.f32 %v4464_v34, %v1011_v40 }
 0xb85   :  { %1049 = vrot.lane.b32.xlu1 %v1047_v39, %s4617_s1 }
 0xb86   :  { %v1040_v42 = vpop.permute.xlu1 %1039 }
 0xb87   :  { %v1042_v45 = vmul.f32 %v4466_v37, %v1040_v42 }
 0xbf3   :  { %v1021_v43 = vpop.permute.xlu0 %1020 }
 0xbf4   :  { %v1023_v44 = vadd.f32 %v1021_v43, %v1013_v41 }
 0xbf6   :  { %4467 = vtanh.f32 %v1023_v44 }
 0xbf7   :  { %v1050_v46 = vpop.permute.xlu1 %1049 }
 0xbf8   :  { %v1052_v47 = vadd.f32 %v1050_v46, %v1042_v45 }
 0xbfa   :  { %4469 = vtanh.f32 %v1052_v47 }
 0xc00   :  { %v4468_v48 = vpop.eup %4467 }
 0xc01   :  { %1026 = vrot.lane.b32.xlu0 %v4468_v48, %s4618_s30 }
 0xc04   :  { %v4470_v49 = vpop.eup %4469 }
 0xc05   :  { %1055 = vrot.lane.b32.xlu1 %v4470_v49, %s4618_s30 }
 0xc73   :  { %v1027_v50 = vpop.permute.xlu0 %1026 }
 0xc74   :  { %v1029_v51 = vmul.f32 %v4464_v34, %v1027_v50 }
 0xc76   :  { %1060 = vrot.lane.b32.xlu0 %v1029_v51, %s4617_s1 }
 0xc77   :  { %v1056_v52 = vpop.permute.xlu1 %1055 }
 0xc78   :  { %v1058_v53 = vmul.f32 %v4466_v37, %v1056_v52 }
 0xc7a   :  { %1070 = vrot.lane.b32.xlu1 %v1058_v53, %s4617_s1 }
 0xce8   :  { %v1061_v54 = vpop.permute.xlu0 %1060 }
 0xce9   :  { %1063 = vst.msk [vmem:[#allocation4] sm:$0xff] %vm102_vm0, %v1061_v54  ;;  %1080 = vst.msk [vmem:[#allocation2 + $0x18] sm:$0xff] %vm102_vm0, %v1061_v54 }
 0xcec   :  { %v1071_v55 = vpop.permute.xlu1 %1070 }
 0xced   :  { %1073 = vst.msk [vmem:[#allocation6] sm:$0xff] %vm102_vm0, %v1071_v55  ;;  %1082 = vst.msk [vmem:[#allocation3 + $0x20] sm:$0xff] %vm102_vm0, %v1071_v55 }
 0xcf0   :  { %v1085_v56 = vld [vmem:[#allocation4] sm:$0xff] }
 0xcf1   :  { %1087 = vrot.lane.b32.xlu0 %v1085_v56, %s4616_s22 }
 0xcf4   :  { %v1164_v57 = vld [vmem:[#allocation6] sm:$0xff] }
 0xcf5   :  { %1166 = vrot.lane.b32.xlu1 %v1164_v57, %s4616_s22  ;;  %1065 = vrot.lane.b32.xlu0 %v1023_v44, %s4619_s12 }
 0xcf9   :  { %1075 = vrot.lane.b32.xlu1 %v1052_v47, %s4619_s12 }
 0xd63   :  { %v1088_v58 = vpop.permute.xlu0 %1087 }
 0xd64   :  { %v1090_v59 = vsel %vm115_vm2, %v4931_v63, %v1088_v58 }
 0xd65   :  { %3713 = vmatmul.mubr.msk.f32.vlgmr.msra.gmra.mrb[8].mxu0 %vm117_vm3, %v1090_v59 }
 0xd66   :  { %4174 = vmatpush3.bf16.msra.mxu0 %v4699_v5  ;;  %3742 = vmatprep.mubr.msk.f32.mxu0 %vm4615_vm1, %v4613_v0 }
 0xd67   :  { %v1167_v61 = vpop.permute.xlu1 %1166  ;;  %v1066_v62 = vpop.permute.xlu0 %1065  ;;  %4175 = vmatprep.subr.bf16.mxu0 %v4614_v1 }
 0xd68   :  { %v1169_v3 = vsel %vm115_vm2, %v4923_v60, %v1167_v61  ;;  %1068 = vst.msk [vmem:[#allocation5] sm:$0xff] %vm102_vm0, %v1066_v62 }
 0xd69   :  { %3728 = vmatmul.mubr.msk.f32.vlgmr.msra.gmra.mrb[8].mxu1 %vm117_vm3, %v1169_v3 }
 0xd6a   :  { %4177 = vmatpush3.bf16.msra.mxu0 %v4720_v11  ;;  %4183 = vmatpush3.bf16.msra.mxu1 %v4714_v9 }
 0xd6b   :  { %v1076_v63 = vpop.permute.xlu1 %1075  ;;  %4178 = vmatprep.subr.bf16.mxu0 %v4614_v1  ;;  %4184 = vmatprep.subr.bf16.mxu1 %v4614_v1 }
 0xd6c   :  { %1078 = vst.msk [vmem:[#allocation7] sm:$0xff] %vm102_vm0, %v1076_v63  ;;  %3757 = vmatprep.mubr.msk.f32.mxu1 %vm4615_vm1, %v4613_v0 }
 0xd6e   :  { %4180 = vmatpush3.bf16.msra.mxu0 %v4743_v19  ;;  %4186 = vmatpush3.bf16.msra.mxu1 %v4734_v15 }
 0xd6f   :  { %4187 = vmatprep.subr.bf16.mxu1 %v4614_v1  ;;  %4190 = vmatprep.subr.bf16.mxu0 %v4614_v1  ;;  %v1243_v18 = vld [vmem:[#allocation5] sm:$0xff] }
 0xd72   :  { %4189 = vmatpush3.bf16.msra.mxu1 %v4748_v21 }
 0xd73   :  { %4199 = vmatprep.subr.bf16.mxu1 %v4614_v1  ;;  %v1272_v20 = vld [vmem:[#allocation7] sm:$0xff] }
 0xe38   :  { %v1160_v60 = vpop.f32.mrb[8].mxu0 }
 0xe39   :  { %v1161_v4 = vadd.f32 %v4786_v29, %v1160_v60  ;;  %v3714_v7 = vpop.f32.mrb[9].mxu0 }
 0xe3b   :  { %4471 = vtanh.f32 %v1161_v4  ;;  %v3303_v22 = vmul.f32 -1.442695, %v1161_v4 }
 0xe3c   :  { %v1239_v8 = vpop.f32.mrb[8].mxu1 }
 0xe3d   :  { %v1240_v12 = vadd.f32 %v4792_v33, %v1239_v8  ;;  %v3729_v13 = vpop.f32.mrb[9].mxu1 }
 0xe3f   :  { %4473 = vtanh.f32 %v1240_v12  ;;  %v3304_v23 = vmul.f32 -1.442695, %v1240_v12 }
 0xe40   :  { %4475 = vpow2.f32 %v3303_v22 }
 0xe41   :  { %4477 = vpow2.f32 %v3304_v23 }
 0xe45   :  { %v4472_v16 = vpop.eup %4471 }
 0xe46   :  { %1257 = vrot.lane.b32.xlu0 %v4472_v16, %s4618_s30 }
 0xe49   :  { %v4474_v17 = vpop.eup %4473 }
 0xe4a   :  { %1286 = vrot.lane.b32.xlu1 %v4474_v17, %s4618_s30  ;;  %1252 = vrot.lane.b32.xlu0 %v1243_v18, %s4617_s1  ;;  %v4476_v24 = vpop.eup %4475 }
 0xe4b   :  { %v1247_v25 = vadd.f32 1.0, %v4476_v24  ;;  %v4478_v26 = vpop.eup %4477 }
 0xe4c   :  { %v1276_v27 = vadd.f32 1.0, %v4478_v26 }
 0xe4d   :  { %4479 = vrcp.f32 %v1247_v25 }
 0xe4e   :  { %1281 = vrot.lane.b32.xlu1 %v1272_v20, %s4617_s1  ;;  %4481 = vrcp.f32 %v1276_v27 }
 0xe57   :  { %v4480_v28 = vpop.eup %4479 }
 0xe58   :  { %v4482_v32 = vpop.eup %4481 }
 0xeb8   :  { %v1258_v30 = vpop.permute.xlu0 %1257 }
 0xeb9   :  { %v1260_v31 = vmul.f32 %v4480_v28, %v1258_v30 }
 0xebb   :  { %1262 = vrot.lane.b32.xlu0 %v1260_v31, %s4617_s1 }
 0xebc   :  { %v1287_v34 = vpop.permute.xlu1 %1286  ;;  %v1253_v36 = vpop.permute.xlu0 %1252 }
 0xebd   :  { %v1289_v35 = vmul.f32 %v4482_v32, %v1287_v34  ;;  %v1255_v37 = vmul.f32 %v4480_v28, %v1253_v36 }
 0xebf   :  { %1291 = vrot.lane.b32.xlu1 %v1289_v35, %s4617_s1 }
 0xec0   :  { %v1282_v38 = vpop.permute.xlu1 %1281 }
 0xec1   :  { %v1284_v41 = vmul.f32 %v4482_v32, %v1282_v38 }
 0xf2d   :  { %v1263_v39 = vpop.permute.xlu0 %1262 }
 0xf2e   :  { %v1265_v40 = vadd.f32 %v1263_v39, %v1255_v37 }
 0xf30   :  { %4483 = vtanh.f32 %v1265_v40 }
 0xf31   :  { %v1292_v42 = vpop.permute.xlu1 %1291 }
 0xf32   :  { %v1294_v43 = vadd.f32 %v1292_v42, %v1284_v41 }
 0xf34   :  { %4485 = vtanh.f32 %v1294_v43 }
 0xf3a   :  { %v4484_v44 = vpop.eup %4483 }
 0xf3b   :  { %1268 = vrot.lane.b32.xlu0 %v4484_v44, %s4618_s30 }
 0xf3e   :  { %v4486_v45 = vpop.eup %4485 }
 0xf3f   :  { %1297 = vrot.lane.b32.xlu1 %v4486_v45, %s4618_s30 }
 0xfad   :  { %v1269_v46 = vpop.permute.xlu0 %1268 }
 0xfae   :  { %v1271_v47 = vmul.f32 %v4480_v28, %v1269_v46 }
 0xfb0   :  { %1302 = vrot.lane.b32.xlu0 %v1271_v47, %s4617_s1 }
 0xfb1   :  { %v1298_v48 = vpop.permute.xlu1 %1297 }
 0xfb2   :  { %v1300_v49 = vmul.f32 %v4482_v32, %v1298_v48 }
 0xfb4   :  { %1312 = vrot.lane.b32.xlu1 %v1300_v49, %s4617_s1 }
0x1022   :  { %v1303_v50 = vpop.permute.xlu0 %1302 }
0x1023   :  { %1305 = vst.msk [vmem:[#allocation4] sm:$0xff] %vm102_vm0, %v1303_v50  ;;  %1322 = vst.msk [vmem:[#allocation2 + $0x20] sm:$0xff] %vm102_vm0, %v1303_v50 }
0x1026   :  { %v1313_v51 = vpop.permute.xlu1 %1312 }
0x1027   :  { %1315 = vst.msk [vmem:[#allocation6] sm:$0xff] %vm102_vm0, %v1313_v51  ;;  %1324 = vst.msk [vmem:[#allocation3 + $0x18] sm:$0xff] %vm102_vm0, %v1313_v51 }
0x102a   :  { %v1327_v52 = vld [vmem:[#allocation4] sm:$0xff] }
0x102b   :  { %1329 = vrot.lane.b32.xlu0 %v1327_v52, %s4616_s22 }
0x102e   :  { %v1406_v53 = vld [vmem:[#allocation6] sm:$0xff] }
0x102f   :  { %1408 = vrot.lane.b32.xlu1 %v1406_v53, %s4616_s22  ;;  %1307 = vrot.lane.b32.xlu0 %v1265_v40, %s4619_s12 }
0x1033   :  { %1317 = vrot.lane.b32.xlu1 %v1294_v43, %s4619_s12 }
0x109d   :  { %v1330_v54 = vpop.permute.xlu0 %1329 }
0x109e   :  { %v1332_v55 = vsel %vm115_vm2, %v4877_v6, %v1330_v54 }
0x109f   :  { %3743 = vmatmul.mubr.msk.f32.vlgmr.msra.gmra.mrb[10].mxu0 %vm117_vm3, %v1332_v55 }
0x10a0   :  { %4192 = vmatpush3.bf16.msra.mxu0 %v4699_v5  ;;  %3772 = vmatprep.mubr.msk.f32.mxu0 %vm4615_vm1, %v4613_v0 }
0x10a1   :  { %v1409_v56 = vpop.permute.xlu1 %1408  ;;  %v1308_v57 = vpop.permute.xlu0 %1307  ;;  %4193 = vmatprep.subr.bf16.mxu0 %v4614_v1 }
0x10a2   :  { %v1411_v58 = vsel %vm115_vm2, %v4869_v2, %v1409_v56  ;;  %1310 = vst.msk [vmem:[#allocation5] sm:$0xff] %vm102_vm0, %v1308_v57 }
0x10a3   :  { %3758 = vmatmul.mubr.msk.f32.vlgmr.msra.gmra.mrb[10].mxu1 %vm117_vm3, %v1411_v58 }
0x10a4   :  { %4195 = vmatpush3.bf16.msra.mxu0 %v4720_v11  ;;  %4201 = vmatpush3.bf16.msra.mxu1 %v4714_v9 }
0x10a5   :  { %v1318_v6 = vpop.permute.xlu1 %1317  ;;  %4196 = vmatprep.subr.bf16.mxu0 %v4614_v1  ;;  %4202 = vmatprep.subr.bf16.mxu1 %v4614_v1 }
0x10a6   :  { %1320 = vst.msk [vmem:[#allocation7] sm:$0xff] %vm102_vm0, %v1318_v6  ;;  %3787 = vmatprep.mubr.msk.f32.mxu1 %vm4615_vm1, %v4613_v0 }
0x10a8   :  { %4198 = vmatpush3.bf16.msra.mxu0 %v4743_v19  ;;  %4204 = vmatpush3.bf16.msra.mxu1 %v4734_v15 }
0x10a9   :  { %4205 = vmatprep.subr.bf16.mxu1 %v4614_v1  ;;  %4208 = vmatprep.subr.bf16.mxu0 %v4614_v1  ;;  %v1485_v7 = vld [vmem:[#allocation5] sm:$0xff] }
0x10ac   :  { %4207 = vmatpush3.bf16.msra.mxu1 %v4748_v21 }
0x10ad   :  { %4217 = vmatprep.subr.bf16.mxu1 %v4614_v1  ;;  %v1514_v8 = vld [vmem:[#allocation7] sm:$0xff] }
0x1172   :  { %v1402_v2 = vpop.f32.mrb[10].mxu0 }
0x1173   :  { %v1403_v59 = vadd.f32 %v4786_v29, %v1402_v2  ;;  %v3744_v61 = vpop.f32.mrb[11].mxu0 }
0x1175   :  { %4487 = vtanh.f32 %v1403_v59  ;;  %v3309_v29 = vmul.f32 -1.442695, %v1403_v59 }
0x1176   :  { %v1481_v62 = vpop.f32.mrb[10].mxu1 }
0x1177   :  { %v1482_v3 = vadd.f32 %v4792_v33, %v1481_v62  ;;  %v3759_v63 = vpop.f32.mrb[11].mxu1 }
0x1179   :  { %4489 = vtanh.f32 %v1482_v3  ;;  %v3310_v12 = vmul.f32 -1.442695, %v1482_v3 }
0x117a   :  { %4491 = vpow2.f32 %v3309_v29 }
0x117b   :  { %4493 = vpow2.f32 %v3310_v12 }
0x117f   :  { %v4488_v60 = vpop.eup %4487 }
0x1180   :  { %1499 = vrot.lane.b32.xlu0 %v4488_v60, %s4618_s30 }
0x1183   :  { %v4490_v4 = vpop.eup %4489 }
0x1184   :  { %1528 = vrot.lane.b32.xlu1 %v4490_v4, %s4618_s30  ;;  %1494 = vrot.lane.b32.xlu0 %v1485_v7, %s4617_s1  ;;  %v4492_v13 = vpop.eup %4491 }
0x1185   :  { %v1489_v33 = vadd.f32 1.0, %v4492_v13  ;;  %v4494_v16 = vpop.eup %4493 }
0x1186   :  { %v1518_v17 = vadd.f32 1.0, %v4494_v16 }
0x1187   :  { %4495 = vrcp.f32 %v1489_v33 }
0x1188   :  { %1523 = vrot.lane.b32.xlu1 %v1514_v8, %s4617_s1  ;;  %4497 = vrcp.f32 %v1518_v17 }
0x1191   :  { %v4496_v18 = vpop.eup %4495 }
0x1192   :  { %v4498_v23 = vpop.eup %4497 }
0x11f2   :  { %v1500_v20 = vpop.permute.xlu0 %1499 }
0x11f3   :  { %v1502_v22 = vmul.f32 %v4496_v18, %v1500_v20 }
0x11f5   :  { %1504 = vrot.lane.b32.xlu0 %v1502_v22, %s4617_s1 }
0x11f6   :  { %v1529_v24 = vpop.permute.xlu1 %1528  ;;  %v1495_v26 = vpop.permute.xlu0 %1494 }
0x11f7   :  { %v1531_v25 = vmul.f32 %v4498_v23, %v1529_v24  ;;  %v1497_v27 = vmul.f32 %v4496_v18, %v1495_v26 }
0x11f9   :  { %1533 = vrot.lane.b32.xlu1 %v1531_v25, %s4617_s1 }
0x11fa   :  { %v1524_v28 = vpop.permute.xlu1 %1523 }
0x11fb   :  { %v1526_v32 = vmul.f32 %v4498_v23, %v1524_v28 }
0x1267   :  { %v1505_v30 = vpop.permute.xlu0 %1504 }
0x1268   :  { %v1507_v31 = vadd.f32 %v1505_v30, %v1497_v27 }
0x126a   :  { %4499 = vtanh.f32 %v1507_v31 }
0x126b   :  { %v1534_v34 = vpop.permute.xlu1 %1533 }
0x126c   :  { %v1536_v35 = vadd.f32 %v1534_v34, %v1526_v32 }
0x126e   :  { %4501 = vtanh.f32 %v1536_v35 }
0x1274   :  { %v4500_v36 = vpop.eup %4499 }
0x1275   :  { %1510 = vrot.lane.b32.xlu0 %v4500_v36, %s4618_s30 }
0x1278   :  { %v4502_v37 = vpop.eup %4501 }
0x1279   :  { %1539 = vrot.lane.b32.xlu1 %v4502_v37, %s4618_s30 }
0x12e7   :  { %v1511_v38 = vpop.permute.xlu0 %1510 }
0x12e8   :  { %v1513_v39 = vmul.f32 %v4496_v18, %v1511_v38 }
0x12ea   :  { %1544 = vrot.lane.b32.xlu0 %v1513_v39, %s4617_s1 }
0x12eb   :  { %v1540_v40 = vpop.permute.xlu1 %1539 }
0x12ec   :  { %v1542_v41 = vmul.f32 %v4498_v23, %v1540_v40 }
0x12ee   :  { %1554 = vrot.lane.b32.xlu1 %v1542_v41, %s4617_s1 }
0x135c   :  { %v1545_v42 = vpop.permute.xlu0 %1544 }
0x135d   :  { %1547 = vst.msk [vmem:[#allocation4] sm:$0xff] %vm102_vm0, %v1545_v42  ;;  %1564 = vst.msk [vmem:[#allocation2 + $0x28] sm:$0xff] %vm102_vm0, %v1545_v42 }
0x1360   :  { %v1555_v43 = vpop.permute.xlu1 %1554 }
0x1361   :  { %1557 = vst.msk [vmem:[#allocation6] sm:$0xff] %vm102_vm0, %v1555_v43  ;;  %1566 = vst.msk [vmem:[#allocation3 + $0x10] sm:$0xff] %vm102_vm0, %v1555_v43 }
0x1364   :  { %v1569_v44 = vld [vmem:[#allocation4] sm:$0xff] }
0x1365   :  { %1571 = vrot.lane.b32.xlu0 %v1569_v44, %s4616_s22 }
0x1368   :  { %v1648_v45 = vld [vmem:[#allocation6] sm:$0xff] }
0x1369   :  { %1650 = vrot.lane.b32.xlu1 %v1648_v45, %s4616_s22  ;;  %1549 = vrot.lane.b32.xlu0 %v1507_v31, %s4619_s12  ;;  %v3317_v31 = vld [vmem:[%s5533_s0 + $0x38] sm:$0xff] }
0x136d   :  { %1559 = vrot.lane.b32.xlu1 %v1536_v35, %s4619_s12  ;;  %v1810_v35 = vld [vmem:[%s5533_s0] sm:$0xff] }
0x13d7   :  { %v1572_v46 = vpop.permute.xlu0 %1571 }
0x13d8   :  { %v1574_v47 = vsel %vm115_vm2, %v4823_v14, %v1572_v46 }
0x13d9   :  { %3773 = vmatmul.mubr.msk.f32.vlgmr.msra.gmra.mrb[12].mxu0 %vm117_vm3, %v1574_v47 }
0x13da   :  { %4210 = vmatpush3.bf16.msra.mxu0 %v4699_v5  ;;  %3802 = vmatprep.mubr.msk.f32.mxu0 %vm4615_vm1, %v4613_v0 }
0x13db   :  { %v1651_v48 = vpop.permute.xlu1 %1650  ;;  %v1550_v49 = vpop.permute.xlu0 %1549  ;;  %4211 = vmatprep.subr.bf16.mxu0 %v4614_v1 }
0x13dc   :  { %v1653_v50 = vsel %vm115_vm2, %v4815_v10, %v1651_v48  ;;  %1552 = vst.msk [vmem:[#allocation5] sm:$0xff] %vm102_vm0, %v1550_v49 }
0x13dd   :  { %3788 = vmatmul.mubr.msk.f32.vlgmr.msra.gmra.mrb[12].mxu1 %vm117_vm3, %v1653_v50 }
0x13de   :  { %4213 = vmatpush3.bf16.msra.mxu0 %v4720_v11  ;;  %4219 = vmatpush3.bf16.msra.mxu1 %v4714_v9  ;;  %v5089_v9 = vld [vmem:[%s5534_s2] ss:$0 sm:$0xff] }
0x13df   :  { %v1560_v14 = vpop.permute.xlu1 %1559  ;;  %4214 = vmatprep.subr.bf16.mxu0 %v4614_v1  ;;  %4220 = vmatprep.subr.bf16.mxu1 %v4614_v1 }
0x13e0   :  { %1562 = vst.msk [vmem:[#allocation7] sm:$0xff] %vm102_vm0, %v1560_v14  ;;  %3817 = vmatprep.mubr.msk.f32.mxu1 %vm4615_vm1, %v4613_v0 }
0x13e2   :  { %4216 = vmatpush3.bf16.msra.mxu0 %v4743_v19  ;;  %4222 = vmatpush3.bf16.msra.mxu1 %v4734_v15  ;;  %v5095_v15 = vld [vmem:[%s5535_s4] ss:$0 sm:$0xff] }
0x13e3   :  { %4223 = vmatprep.subr.bf16.mxu1 %v4614_v1  ;;  %4226 = vmatprep.subr.bf16.mxu0 %v4614_v1  ;;  %v1727_v54 = vld [vmem:[#allocation5] sm:$0xff] }
0x13e6   :  { %4225 = vmatpush3.bf16.msra.mxu1 %v4748_v21 }
0x13e7   :  { %4244 = vmatprep.subr.bf16.mxu1 %v4614_v1  ;;  %v1756_v55 = vld [vmem:[#allocation7] sm:$0xff] }
0x14ac   :  { %v1644_v5 = vpop.f32.mrb[12].mxu0 }
0x14ad   :  { %v1645_v11 = vadd.f32 %v5089_v9, %v1644_v5  ;;  %v3774_v10 = vpop.f32.mrb[13].mxu0 }
0x14af   :  { %4503 = vtanh.f32 %v1645_v11  ;;  %v3315_v56 = vmul.f32 -1.442695, %v1645_v11 }
0x14b0   :  { %v1723_v19 = vpop.f32.mrb[12].mxu1 }
0x14b1   :  { %v1724_v21 = vadd.f32 %v5095_v15, %v1723_v19  ;;  %v3789_v51 = vpop.f32.mrb[13].mxu1 }
0x14b3   :  { %4505 = vtanh.f32 %v1724_v21  ;;  %v3316_v57 = vmul.f32 -1.442695, %v1724_v21 }
0x14b4   :  { %4507 = vpow2.f32 %v3315_v56 }
0x14b5   :  { %4509 = vpow2.f32 %v3316_v57 }
0x14b9   :  { %v4504_v52 = vpop.eup %4503 }
0x14ba   :  { %1741 = vrot.lane.b32.xlu0 %v4504_v52, %s4618_s30 }
0x14bd   :  { %v4506_v53 = vpop.eup %4505 }
0x14be   :  { %1770 = vrot.lane.b32.xlu1 %v4506_v53, %s4618_s30  ;;  %1736 = vrot.lane.b32.xlu0 %v1727_v54, %s4617_s1  ;;  %v4508_v58 = vpop.eup %4507 }
0x14bf   :  { %v1731_v6 = vadd.f32 1.0, %v4508_v58  ;;  %v4510_v2 = vpop.eup %4509 }
0x14c0   :  { %v1760_v59 = vadd.f32 1.0, %v4510_v2 }
0x14c1   :  { %4511 = vrcp.f32 %v1731_v6 }
0x14c2   :  { %1765 = vrot.lane.b32.xlu1 %v1756_v55, %s4617_s1  ;;  %4513 = vrcp.f32 %v1760_v59 }
0x14cb   :  { %v4512_v61 = vpop.eup %4511 }
0x14cc   :  { %v4514_v63 = vpop.eup %4513 }
0x152c   :  { %v1742_v62 = vpop.permute.xlu0 %1741 }
0x152d   :  { %v1744_v3 = vmul.f32 %v4512_v61, %v1742_v62 }
0x152f   :  { %1746 = vrot.lane.b32.xlu0 %v1744_v3, %s4617_s1 }
0x1530   :  { %v1771_v60 = vpop.permute.xlu1 %1770  ;;  %v1737_v7 = vpop.permute.xlu0 %1736 }
0x1531   :  { %v1773_v4 = vmul.f32 %v4514_v63, %v1771_v60  ;;  %v1739_v8 = vmul.f32 %v4512_v61, %v1737_v7  ;;  %v50_v7 = vld [vmem:[%s5536_s5] sm:$0xff] }
0x1533   :  { %1775 = vrot.lane.b32.xlu1 %v1773_v4, %s4617_s1 }
0x1534   :  { %v1766_v29 = vpop.permute.xlu1 %1765 }
0x1535   :  { %v1768_v33 = vmul.f32 %v4514_v63, %v1766_v29  ;;  %v52_v29 = vld [vmem:[%s5536_s5 + $0x10] sm:$0xff] }
0x15a1   :  { %v1747_v12 = vpop.permute.xlu0 %1746 }
0x15a2   :  { %v1749_v13 = vadd.f32 %v1747_v12, %v1739_v8  ;;  %v51_v8 = vld [vmem:[%s5536_s5 + $0x8] sm:$0xff] }
0x15a3   :  { %v5159_v12 = vpack.c.bf16 %v51_v8, %v50_v7 }
0x15a4   :  { %4515 = vtanh.f32 %v1749_v13 }
0x15a5   :  { %v1776_v16 = vpop.permute.xlu1 %1775 }
0x15a6   :  { %v1778_v17 = vadd.f32 %v1776_v16, %v1768_v33  ;;  %v54_v16 = vld [vmem:[%s5536_s5 + $0x20] sm:$0xff] }
0x15a8   :  { %4517 = vtanh.f32 %v1778_v17 }
0x15ae   :  { %v4516_v18 = vpop.eup %4515 }
0x15af   :  { %1752 = vrot.lane.b32.xlu0 %v4516_v18, %s4618_s30 }
0x15b2   :  { %v4518_v20 = vpop.eup %4517 }
0x15b3   :  { %1781 = vrot.lane.b32.xlu1 %v4518_v20, %s4618_s30  ;;  %v56_v20 = vld [vmem:[%s5536_s5 + $0x30] sm:$0xff] }
0x1621   :  { %v1753_v22 = vpop.permute.xlu0 %1752 }
0x1622   :  { %v1755_v23 = vmul.f32 %v4512_v61, %v1753_v22  ;;  %v57_v22 = vld [vmem:[%s5536_s5 + $0x38] sm:$0xff] }
0x1624   :  { %1786 = vrot.lane.b32.xlu0 %v1755_v23, %s4617_s1  ;;  %v5189_v23 = vpack.c.bf16 %v57_v22, %v56_v20 }
0x1625   :  { %v1782_v24 = vpop.permute.xlu1 %1781 }
0x1626   :  { %v1784_v25 = vmul.f32 %v4514_v63, %v1782_v24  ;;  %v58_v24 = vld [vmem:[%s5536_s5 + $0x40] sm:$0xff] }
0x1628   :  { %1796 = vrot.lane.b32.xlu1 %v1784_v25, %s4617_s1  ;;  %v59_v25 = vld [vmem:[%s5536_s5 + $0x48] sm:$0xff] }
0x1696   :  { %v1787_v26 = vpop.permute.xlu0 %1786 }
0x1697   :  { %1789 = vst.msk [vmem:[#allocation4] sm:$0xff] %vm102_vm0, %v1787_v26  ;;  %1806 = vst.msk [vmem:[#allocation2 + $0x30] sm:$0xff] %vm102_vm0, %v1787_v26  ;;  %v5201_v26 = vpack.c.bf16 %v59_v25, %v58_v24 }
0x169a   :  { %v1797_v27 = vpop.permute.xlu1 %1796 }
0x169b   :  { %1799 = vst.msk [vmem:[#allocation6] sm:$0xff] %vm102_vm0, %v1797_v27  ;;  %1808 = vst.msk [vmem:[#allocation3 + $0x8] sm:$0xff] %vm102_vm0, %v1797_v27  ;;  %v60_v27 = vld [vmem:[%s5536_s5 + $0x50] sm:$0xff] }
0x169e   :  { %v1811_v28 = vld [vmem:[#allocation4] sm:$0xff] }
0x169f   :  { %1813 = vrot.lane.b32.xlu0 %v1811_v28, %s4616_s22  ;;  %v61_v28 = vld [vmem:[%s5536_s5 + $0x58] sm:$0xff] }
0x16a2   :  { %v1890_v30 = vld [vmem:[#allocation6] sm:$0xff] }
0x16a3   :  { %1892 = vrot.lane.b32.xlu1 %v1890_v30, %s4616_s22  ;;  %1791 = vrot.lane.b32.xlu0 %v1749_v13, %s4619_s12  ;;  %v53_v13 = vld [vmem:[%s5536_s5 + $0x18] sm:$0xff]  ;;  %v5213_v30 = vpack.c.bf16 %v61_v28, %v60_v27  ;;  %v2305_v28 = vld [vmem:[#allocation3 + $0x10] sm:$0xff] }
0x16a4   :  { %v5165_v33 = vpack.c.bf16 %v53_v13, %v52_v29 }
0x16a7   :  { %1801 = vrot.lane.b32.xlu1 %v1778_v17, %s4619_s12  ;;  %v55_v17 = vld [vmem:[%s5536_s5 + $0x28] sm:$0xff] }
0x16a8   :  { %v5177_v18 = vpack.c.bf16 %v55_v17, %v54_v16 }
0x1711   :  { %v1814_v32 = vpop.permute.xlu0 %1813 }
0x1712   :  { %v1816_v34 = vsel %vm115_vm2, %v3317_v31, %v1814_v32 }
0x1713   :  { %3803 = vmatmul.mubr.msk.f32.vlgmr.msra.gmra.mrb[14].mxu0 %vm117_vm3, %v1816_v34 }
0x1714   :  { %3844 = vmatprep.mubr.msk.f32.mxu0 %vm4615_vm1, %v4613_v0  ;;  %4228 = vmatpush3.bf16.msra.mxu0 %v5159_v12 }
0x1715   :  { %v1893_v36 = vpop.permute.xlu1 %1892  ;;  %v1792_v37 = vpop.permute.xlu0 %1791  ;;  %4229 = vmatprep.subr.bf16.mxu0 %v4614_v1 }
0x1716   :  { %v1895_v38 = vsel %vm115_vm2, %v1810_v35, %v1893_v36  ;;  %1794 = vst.msk [vmem:[#allocation5] sm:$0xff] %vm102_vm0, %v1792_v37  ;;  %v2052_v37 = vld [vmem:[#allocation2] sm:$0xff] }
0x1717   :  { %3818 = vmatmul.mubr.msk.f32.vlgmr.msra.gmra.mrb[14].mxu1 %vm117_vm3, %v1895_v38 }
0x1718   :  { %3871 = vmatprep.mubr.msk.f32.mxu1 %vm4615_vm1, %v4613_v0  ;;  %4246 = vmatpush3.bf16.msra.mxu1 %v5159_v12 }
0x1719   :  { %v1802_v39 = vpop.permute.xlu1 %1801  ;;  %4247 = vmatprep.subr.bf16.mxu1 %v4614_v1  ;;  %4231 = vmatpush3.bf16.msra.mxu0 %v5165_v33 }
0x171a   :  { %1804 = vst.msk [vmem:[#allocation7] sm:$0xff] %vm102_vm0, %v1802_v39  ;;  %4232 = vmatprep.subr.bf16.mxu0 %v4614_v1 }
0x171c   :  { %4249 = vmatpush3.bf16.msra.mxu1 %v5165_v33 }
0x171d   :  { %v1969_v48 = vld [vmem:[#allocation5] sm:$0xff]  ;;  %4250 = vmatprep.subr.bf16.mxu1 %v4614_v1  ;;  %4234 = vmatpush3.bf16.msra.mxu0 %v5177_v18 }
0x171e   :  { %4235 = vmatprep.subr.bf16.mxu0 %v4614_v1 }
0x1720   :  { %4252 = vmatpush3.bf16.msra.mxu1 %v5177_v18 }
0x1721   :  { %v1998_v49 = vld [vmem:[#allocation7] sm:$0xff]  ;;  %4253 = vmatprep.subr.bf16.mxu1 %v4614_v1  ;;  %4237 = vmatpush3.bf16.msra.mxu0 %v5189_v23 }
0x1722   :  { %4238 = vmatprep.subr.bf16.mxu0 %v4614_v1 }
0x1724   :  { %4255 = vmatpush3.bf16.msra.mxu1 %v5189_v23 }
0x1725   :  { %4256 = vmatprep.subr.bf16.mxu1 %v4614_v1  ;;  %4240 = vmatpush3.bf16.msra.mxu0 %v5201_v26 }
0x1726   :  { %4241 = vmatprep.subr.bf16.mxu0 %v4614_v1 }
0x1728   :  { %4258 = vmatpush3.bf16.msra.mxu1 %v5201_v26 }
0x1729   :  { %4259 = vmatprep.subr.bf16.mxu1 %v4614_v1  ;;  %4243 = vmatpush3.bf16.msra.mxu0 %v5213_v30 }
0x172a   :  { %4262 = vmatprep.subr.bf16.mxu0 %v4614_v1 }
0x172c   :  { %4261 = vmatpush3.bf16.msra.mxu1 %v5213_v30 }
0x172d   :  { %4280 = vmatprep.subr.bf16.mxu1 %v4614_v1 }
0x17e6   :  { %v1886_v40 = vpop.f32.mrb[14].mxu0 }
0x17e7   :  { %v1887_v41 = vadd.f32 %v5089_v9, %v1886_v40  ;;  %v3804_v42 = vpop.f32.mrb[15].mxu0 }
0x17e9   :  { %4519 = vtanh.f32 %v1887_v41  ;;  %v3320_v50 = vmul.f32 -1.442695, %v1887_v41 }
0x17ea   :  { %v1965_v43 = vpop.f32.mrb[14].mxu1 }
0x17eb   :  { %v1966_v44 = vadd.f32 %v5095_v15, %v1965_v43  ;;  %v3819_v45 = vpop.f32.mrb[15].mxu1  ;;  %v5256_v43 = vld [vmem:[%s5537_s6] ss:$0 sm:$0xff] }
0x17ed   :  { %4521 = vtanh.f32 %v1966_v44  ;;  %v3321_v14 = vmul.f32 -1.442695, %v1966_v44 }
0x17ee   :  { %4523 = vpow2.f32 %v3320_v50 }
0x17ef   :  { %4525 = vpow2.f32 %v3321_v14 }
0x17f3   :  { %v4520_v46 = vpop.eup %4519 }
0x17f4   :  { %1983 = vrot.lane.b32.xlu0 %v4520_v46, %s4618_s30 }
0x17f7   :  { %v4522_v47 = vpop.eup %4521 }
0x17f8   :  { %2012 = vrot.lane.b32.xlu1 %v4522_v47, %s4618_s30  ;;  %1978 = vrot.lane.b32.xlu0 %v1969_v48, %s4617_s1  ;;  %v4524_v5 = vpop.eup %4523 }
0x17f9   :  { %v1973_v9 = vadd.f32 1.0, %v4524_v5  ;;  %v4526_v11 = vpop.eup %4525 }
0x17fa   :  { %v2002_v10 = vadd.f32 1.0, %v4526_v11 }
0x17fb   :  { %4527 = vrcp.f32 %v1973_v9 }
0x17fc   :  { %2007 = vrot.lane.b32.xlu1 %v1998_v49, %s4617_s1  ;;  %4529 = vrcp.f32 %v2002_v10 }
0x1805   :  { %v4528_v19 = vpop.eup %4527 }
0x1806   :  { %v4530_v51 = vpop.eup %4529 }
0x1866   :  { %v1984_v15 = vpop.permute.xlu0 %1983 }
0x1867   :  { %v1986_v21 = vmul.f32 %v4528_v19, %v1984_v15 }
0x1869   :  { %1988 = vrot.lane.b32.xlu0 %v1986_v21, %s4617_s1 }
0x186a   :  { %v2013_v52 = vpop.permute.xlu1 %2012  ;;  %v1979_v54 = vpop.permute.xlu0 %1978 }
0x186b   :  { %v2015_v53 = vmul.f32 %v4530_v51, %v2013_v52  ;;  %v1981_v55 = vmul.f32 %v4528_v19, %v1979_v54 }
0x186d   :  { %2017 = vrot.lane.b32.xlu1 %v2015_v53, %s4617_s1 }
0x186e   :  { %v2008_v56 = vpop.permute.xlu1 %2007 }
0x186f   :  { %v2010_v6 = vmul.f32 %v4530_v51, %v2008_v56 }
0x18db   :  { %v1989_v57 = vpop.permute.xlu0 %1988 }
0x18dc   :  { %v5140_v58 = vadd.f32 %v1989_v57, %v1981_v55 }
0x18de   :  { %4531 = vtanh.f32 %v5140_v58 }
0x18df   :  { %v2018_v2 = vpop.permute.xlu1 %2017 }
0x18e0   :  { %v5143_v59 = vadd.f32 %v2018_v2, %v2010_v6  ;;  %v2179_v6 = vld [vmem:[#allocation2 + $0x8] sm:$0xff] }
0x18e2   :  { %4533 = vtanh.f32 %v5143_v59 }
0x18e8   :  { %v4532_v61 = vpop.eup %4531 }
0x18e9   :  { %1994 = vrot.lane.b32.xlu0 %v4532_v61, %s4618_s30 }
0x18ec   :  { %v4534_v62 = vpop.eup %4533 }
0x18ed   :  { %2023 = vrot.lane.b32.xlu1 %v4534_v62, %s4618_s30 }
0x195b   :  { %v1995_v3 = vpop.permute.xlu0 %1994 }
0x195c   :  { %v1997_v63 = vmul.f32 %v4528_v19, %v1995_v3 }
0x195e   :  { %2028 = vrot.lane.b32.xlu0 %v1997_v63, %s4617_s1 }
0x195f   :  { %v2024_v60 = vpop.permute.xlu1 %2023 }
0x1960   :  { %v2026_v4 = vmul.f32 %v4530_v51, %v2024_v60  ;;  %v2180_v51 = vld [vmem:[#allocation3 + $0x8] sm:$0xff] }
0x1962   :  { %2038 = vrot.lane.b32.xlu1 %v2026_v4, %s4617_s1 }
0x19d0   :  { %v2029_v31 = vpop.permute.xlu0 %2028 }
0x19d1   :  { %2031 = vst.msk [vmem:[#allocation4] sm:$0xff] %vm102_vm0, %v2029_v31  ;;  %2048 = vst.msk [vmem:[#allocation2 + $0x38] sm:$0xff] %vm102_vm0, %v2029_v31 }
0x19d2   :  { %2050 = vst.msk [vmem:[#allocation4] sm:$0xff] %vm102_vm0, %v4613_v0 }
0x19d4   :  { %v2039_v32 = vpop.permute.xlu1 %2038 }
0x19d5   :  { %2041 = vst.msk [vmem:[#allocation6] sm:$0xff] %vm102_vm0, %v2039_v32  ;;  %2049 = vst.msk [vmem:[#allocation3] sm:$0xff] %vm102_vm0, %v2039_v32 }
0x19d9   :  { %v2054_v34 = vld [vmem:[#allocation4] sm:$0xff] }
0x19da   :  { %2060 = vrot.lane.b32.xlu1 %v2054_v34, %s4618_s30 }
0x19dc   :  { %v2053_v35 = vld [vmem:[#allocation3] sm:$0xff] }
0x19dd   :  { %2056 = vrot.lane.b32.xlu0 %v2053_v35, %s4617_s1 }
0x19e1   :  { %2033 = vrot.lane.b32.xlu0 %v5140_v58, %s4619_s12 }
0x1a4c   :  { %v2061_v36 = vpop.permute.xlu1 %2060 }
0x1a4f   :  { %v2057_v38 = vpop.permute.xlu0 %2056 }
0x1a50   :  { %v2063_v39 = vsel %vm102_vm0, %v2052_v37, %v2057_v38 }
0x1a51   :  { %v2065_v40 = vsel %vm2064_vm4, %v2063_v39, %v2061_v36  ;;  %v2304_v39 = vld [vmem:[#allocation2 + $0x10] sm:$0xff] }
0x1a52   :  { %3845 = vmatmul.mubr.msk.f32.vlgmr.msra.gmra.mrb[16].mxu0 %vm2066_vm5, %v2065_v40 }
0x1a53   :  { %v2034_v41 = vpop.permute.xlu0 %2033  ;;  %4264 = vmatpush3.bf16.msra.mxu0 %v5159_v12  ;;  %3898 = vmatprep.mubr.msk.f32.mxu0 %vm4615_vm1, %v4613_v0 }
0x1a54   :  { %2036 = vst.msk [vmem:[#allocation5] sm:$0xff] %vm102_vm0, %v2034_v41  ;;  %4265 = vmatprep.subr.bf16.mxu0 %v4614_v1 }
0x1a55   :  { %2051 = vst.msk [vmem:[#allocation5] sm:$0xff] %vm102_vm0, %v4613_v0 }
0x1a57   :  { %4267 = vmatpush3.bf16.msra.mxu0 %v5165_v33 }
0x1a58   :  { %4268 = vmatprep.subr.bf16.mxu0 %v4614_v1 }
0x1a5b   :  { %4270 = vmatpush3.bf16.msra.mxu0 %v5177_v18 }
0x1a5c   :  { %v2140_v42 = vld [vmem:[#allocation5] sm:$0xff]  ;;  %4271 = vmatprep.subr.bf16.mxu0 %v4614_v1 }
0x1a5d   :  { %2149 = vrot.lane.b32.xlu0 %v2140_v42, %s4617_s1 }
0x1a5f   :  { %4273 = vmatpush3.bf16.msra.mxu0 %v5189_v23 }
0x1a60   :  { %4274 = vmatprep.subr.bf16.mxu0 %v4614_v1 }
0x1a63   :  { %4276 = vmatpush3.bf16.msra.mxu0 %v5201_v26 }
0x1a64   :  { %4277 = vmatprep.subr.bf16.mxu0 %v4614_v1 }
0x1a67   :  { %4279 = vmatpush3.bf16.msra.mxu0 %v5213_v30 }
0x1a68   :  { %4298 = vmatprep.subr.bf16.mxu0 %v4614_v1 }
0x1acf   :  { %v2150_v11 = vpop.permute.xlu0 %2149 }
0x1b25   :  { %v2136_v44 = vpop.f32.mrb[16].mxu0 }
0x1b26   :  { %v2137_v45 = vadd.f32 %v5256_v43, %v2136_v44  ;;  %v3846_v46 = vpop.f32.mrb[17].mxu0 }
0x1b28   :  { %4535 = vtanh.f32 %v2137_v45  ;;  %v3323_v48 = vmul.f32 -1.442695, %v2137_v45 }
0x1b2a   :  { %4537 = vpow2.f32 %v3323_v48 }
0x1b32   :  { %v4536_v47 = vpop.eup %4535 }
0x1b33   :  { %2154 = vrot.lane.b32.xlu1 %v4536_v47, %s4618_s30 }
0x1b34   :  { %v4538_v49 = vpop.eup %4537 }
0x1b35   :  { %v2144_v50 = vadd.f32 1.0, %v4538_v49 }
0x1b37   :  { %4539 = vrcp.f32 %v2144_v50 }
0x1b41   :  { %v4540_v14 = vpop.eup %4539 }
0x1b42   :  { %v2152_v10 = vmul.f32 %v4540_v14, %v2150_v11 }
0x1ba5   :  { %v2155_v5 = vpop.permute.xlu1 %2154 }
0x1ba6   :  { %v2157_v9 = vmul.f32 %v4540_v14, %v2155_v5 }
0x1ba8   :  { %2159 = vrot.lane.b32.xlu1 %v2157_v9, %s4617_s1 }
0x1c1a   :  { %v2160_v19 = vpop.permute.xlu1 %2159 }
0x1c1b   :  { %v2162_v15 = vadd.f32 %v2160_v19, %v2152_v10 }
0x1c1d   :  { %4541 = vtanh.f32 %v2162_v15 }
0x1c27   :  { %v4542_v21 = vpop.eup %4541 }
0x1c28   :  { %2165 = vrot.lane.b32.xlu0 %v4542_v21, %s4618_s30 }
0x1c2c   :  { %2183 = vrot.lane.b32.xlu0 %v2180_v51, %s4617_s1  ;;  %v2430_v51 = vld [vmem:[#allocation3 + $0x18] sm:$0xff] }
0x1c30   :  { %2175 = vrot.lane.b32.xlu0 %v2162_v15, %s4619_s12 }
0x1c9a   :  { %v2166_v52 = vpop.permute.xlu0 %2165 }
0x1c9b   :  { %v2168_v53 = vmul.f32 %v4540_v14, %v2166_v52 }
0x1c9d   :  { %2170 = vrot.lane.b32.xlu1 %v2168_v53, %s4617_s1 }
0x1c9e   :  { %v2184_v54 = vpop.permute.xlu0 %2183 }
0x1c9f   :  { %v2190_v2 = vsel %vm102_vm0, %v2179_v6, %v2184_v54  ;;  %v2429_v6 = vld [vmem:[#allocation2 + $0x18] sm:$0xff] }
0x1ca2   :  { %v2176_v55 = vpop.permute.xlu0 %2175 }
0x1ca3   :  { %2178 = vst.msk [vmem:[#allocation5] sm:$0xff] %vm102_vm0, %v2176_v55 }
0x1caa   :  { %v2265_v56 = vld [vmem:[#allocation5] sm:$0xff] }
0x1cab   :  { %2274 = vrot.lane.b32.xlu0 %v2265_v56, %s4617_s1 }
0x1d0f   :  { %v2171_v57 = vpop.permute.xlu1 %2170 }
0x1d10   :  { %2173 = vst.msk [vmem:[#allocation4] sm:$0xff] %vm102_vm0, %v2171_v57 }
0x1d17   :  { %v2181_v58 = vld [vmem:[#allocation4] sm:$0xff] }
0x1d18   :  { %2187 = vrot.lane.b32.xlu1 %v2181_v58, %s4618_s30 }
0x1d1d   :  { %v2275_v20 = vpop.permute.xlu0 %2274 }
0x1d8a   :  { %v2188_v61 = vpop.permute.xlu1 %2187 }
0x1d8b   :  { %v2191_v62 = vsel %vm2064_vm4, %v2190_v2, %v2188_v61 }
0x1d8c   :  { %3872 = vmatmul.mubr.msk.f32.vlgmr.msra.gmra.mrb[16].mxu1 %vm2066_vm5, %v2191_v62 }
0x1d8d   :  { %4282 = vmatpush3.bf16.msra.mxu1 %v5159_v12  ;;  %3925 = vmatprep.mubr.msk.f32.mxu1 %vm4615_vm1, %v4613_v0 }
0x1d8e   :  { %4283 = vmatprep.subr.bf16.mxu1 %v4614_v1 }
0x1d91   :  { %4285 = vmatpush3.bf16.msra.mxu1 %v5165_v33 }
0x1d92   :  { %4286 = vmatprep.subr.bf16.mxu1 %v4614_v1 }
0x1d95   :  { %4288 = vmatpush3.bf16.msra.mxu1 %v5177_v18 }
0x1d96   :  { %4289 = vmatprep.subr.bf16.mxu1 %v4614_v1 }
0x1d99   :  { %4291 = vmatpush3.bf16.msra.mxu1 %v5189_v23 }
0x1d9a   :  { %4292 = vmatprep.subr.bf16.mxu1 %v4614_v1 }
0x1d9d   :  { %4294 = vmatpush3.bf16.msra.mxu1 %v5201_v26 }
0x1d9e   :  { %4295 = vmatprep.subr.bf16.mxu1 %v4614_v1 }
0x1da1   :  { %4297 = vmatpush3.bf16.msra.mxu1 %v5213_v30 }
0x1da2   :  { %4316 = vmatprep.subr.bf16.mxu1 %v4614_v1 }
0x1e5f   :  { %v2261_v3 = vpop.f32.mrb[16].mxu1 }
0x1e60   :  { %v2262_v63 = vadd.f32 %v5256_v43, %v2261_v3  ;;  %v3873_v60 = vpop.f32.mrb[17].mxu1 }
0x1e62   :  { %4543 = vtanh.f32 %v2262_v63  ;;  %v3325_v7 = vmul.f32 -1.442695, %v2262_v63 }
0x1e64   :  { %4545 = vpow2.f32 %v3325_v7 }
0x1e6c   :  { %v4544_v4 = vpop.eup %4543 }
0x1e6d   :  { %2279 = vrot.lane.b32.xlu1 %v4544_v4, %s4618_s30 }
0x1e6e   :  { %v4546_v8 = vpop.eup %4545 }
0x1e6f   :  { %v2269_v29 = vadd.f32 1.0, %v4546_v8 }
0x1e71   :  { %4547 = vrcp.f32 %v2269_v29 }
0x1e7b   :  { %v4548_v13 = vpop.eup %4547 }
0x1e7c   :  { %v2277_v22 = vmul.f32 %v4548_v13, %v2275_v20 }
0x1edf   :  { %v2280_v16 = vpop.permute.xlu1 %2279 }
0x1ee0   :  { %v2282_v17 = vmul.f32 %v4548_v13, %v2280_v16 }
0x1ee2   :  { %2284 = vrot.lane.b32.xlu1 %v2282_v17, %s4617_s1 }
0x1f54   :  { %v2285_v24 = vpop.permute.xlu1 %2284 }
0x1f55   :  { %v2287_v25 = vadd.f32 %v2285_v24, %v2277_v22 }
0x1f57   :  { %4549 = vtanh.f32 %v2287_v25 }
0x1f61   :  { %v4550_v27 = vpop.eup %4549 }
0x1f62   :  { %2290 = vrot.lane.b32.xlu0 %v4550_v27, %s4618_s30 }
0x1f66   :  { %2308 = vrot.lane.b32.xlu0 %v2305_v28, %s4617_s1  ;;  %v2555_v28 = vld [vmem:[#allocation3 + $0x20] sm:$0xff] }
0x1f6a   :  { %2300 = vrot.lane.b32.xlu0 %v2287_v25, %s4619_s12 }
0x1fd4   :  { %v2291_v31 = vpop.permute.xlu0 %2290 }
0x1fd5   :  { %v2293_v32 = vmul.f32 %v4548_v13, %v2291_v31 }
0x1fd7   :  { %2295 = vrot.lane.b32.xlu1 %v2293_v32, %s4617_s1 }
0x1fd8   :  { %v2309_v34 = vpop.permute.xlu0 %2308 }
0x1fd9   :  { %v2315_v40 = vsel %vm102_vm0, %v2304_v39, %v2309_v34  ;;  %v2554_v39 = vld [vmem:[#allocation2 + $0x20] sm:$0xff] }
0x1fdc   :  { %v2301_v35 = vpop.permute.xlu0 %2300 }
0x1fdd   :  { %2303 = vst.msk [vmem:[#allocation5] sm:$0xff] %vm102_vm0, %v2301_v35 }
0x1fe4   :  { %v2390_v36 = vld [vmem:[#allocation5] sm:$0xff] }
0x1fe5   :  { %2399 = vrot.lane.b32.xlu0 %v2390_v36, %s4617_s1 }
0x2049   :  { %v2296_v37 = vpop.permute.xlu1 %2295 }
0x204a   :  { %2298 = vst.msk [vmem:[#allocation4] sm:$0xff] %vm102_vm0, %v2296_v37 }
0x2051   :  { %v2306_v38 = vld [vmem:[#allocation4] sm:$0xff] }
0x2052   :  { %2312 = vrot.lane.b32.xlu1 %v2306_v38, %s4618_s30 }
0x2057   :  { %v2400_v11 = vpop.permute.xlu0 %2399 }
0x20c4   :  { %v2313_v41 = vpop.permute.xlu1 %2312 }
0x20c5   :  { %v2316_v42 = vsel %vm2064_vm4, %v2315_v40, %v2313_v41 }
0x20c6   :  { %3899 = vmatmul.mubr.msk.f32.vlgmr.msra.gmra.mrb[18].mxu0 %vm2066_vm5, %v2316_v42 }
0x20c7   :  { %4300 = vmatpush3.bf16.msra.mxu0 %v5159_v12  ;;  %3952 = vmatprep.mubr.msk.f32.mxu0 %vm4615_vm1, %v4613_v0 }
0x20c8   :  { %4301 = vmatprep.subr.bf16.mxu0 %v4614_v1 }
0x20cb   :  { %4303 = vmatpush3.bf16.msra.mxu0 %v5165_v33 }
0x20cc   :  { %4304 = vmatprep.subr.bf16.mxu0 %v4614_v1 }
0x20cf   :  { %4306 = vmatpush3.bf16.msra.mxu0 %v5177_v18 }
0x20d0   :  { %4307 = vmatprep.subr.bf16.mxu0 %v4614_v1 }
0x20d3   :  { %4309 = vmatpush3.bf16.msra.mxu0 %v5189_v23 }
0x20d4   :  { %4310 = vmatprep.subr.bf16.mxu0 %v4614_v1 }
0x20d7   :  { %4312 = vmatpush3.bf16.msra.mxu0 %v5201_v26 }
0x20d8   :  { %4313 = vmatprep.subr.bf16.mxu0 %v4614_v1 }
0x20db   :  { %4315 = vmatpush3.bf16.msra.mxu0 %v5213_v30 }
0x20dc   :  { %4334 = vmatprep.subr.bf16.mxu0 %v4614_v1 }
0x2199   :  { %v2386_v44 = vpop.f32.mrb[18].mxu0 }
0x219a   :  { %v2387_v45 = vadd.f32 %v5256_v43, %v2386_v44  ;;  %v3900_v46 = vpop.f32.mrb[19].mxu0 }
0x219c   :  { %4551 = vtanh.f32 %v2387_v45  ;;  %v3327_v48 = vmul.f32 -1.442695, %v2387_v45 }
0x219e   :  { %4553 = vpow2.f32 %v3327_v48 }
0x21a6   :  { %v4552_v47 = vpop.eup %4551 }
0x21a7   :  { %2404 = vrot.lane.b32.xlu1 %v4552_v47, %s4618_s30 }
0x21a8   :  { %v4554_v49 = vpop.eup %4553 }
0x21a9   :  { %v2394_v50 = vadd.f32 1.0, %v4554_v49 }
0x21ab   :  { %4555 = vrcp.f32 %v2394_v50 }
0x21b5   :  { %v4556_v14 = vpop.eup %4555 }
0x21b6   :  { %v2402_v10 = vmul.f32 %v4556_v14, %v2400_v11 }
0x2219   :  { %v2405_v5 = vpop.permute.xlu1 %2404 }
0x221a   :  { %v2407_v9 = vmul.f32 %v4556_v14, %v2405_v5 }
0x221c   :  { %2409 = vrot.lane.b32.xlu1 %v2407_v9, %s4617_s1 }
0x228e   :  { %v2410_v19 = vpop.permute.xlu1 %2409 }
0x228f   :  { %v2412_v15 = vadd.f32 %v2410_v19, %v2402_v10 }
0x2291   :  { %4557 = vtanh.f32 %v2412_v15 }
0x229b   :  { %v4558_v21 = vpop.eup %4557 }
0x229c   :  { %2415 = vrot.lane.b32.xlu0 %v4558_v21, %s4618_s30 }
0x22a0   :  { %2433 = vrot.lane.b32.xlu0 %v2430_v51, %s4617_s1  ;;  %v2680_v51 = vld [vmem:[#allocation3 + $0x28] sm:$0xff] }
0x22a4   :  { %2425 = vrot.lane.b32.xlu0 %v2412_v15, %s4619_s12 }
0x230e   :  { %v2416_v52 = vpop.permute.xlu0 %2415 }
0x230f   :  { %v2418_v53 = vmul.f32 %v4556_v14, %v2416_v52 }
0x2311   :  { %2420 = vrot.lane.b32.xlu1 %v2418_v53, %s4617_s1 }
0x2312   :  { %v2434_v54 = vpop.permute.xlu0 %2433 }
0x2313   :  { %v2440_v2 = vsel %vm102_vm0, %v2429_v6, %v2434_v54  ;;  %v2679_v6 = vld [vmem:[#allocation2 + $0x28] sm:$0xff] }
0x2316   :  { %v2426_v55 = vpop.permute.xlu0 %2425 }
0x2317   :  { %2428 = vst.msk [vmem:[#allocation5] sm:$0xff] %vm102_vm0, %v2426_v55 }
0x231e   :  { %v2515_v56 = vld [vmem:[#allocation5] sm:$0xff] }
0x231f   :  { %2524 = vrot.lane.b32.xlu0 %v2515_v56, %s4617_s1 }
0x2383   :  { %v2421_v57 = vpop.permute.xlu1 %2420 }
0x2384   :  { %2423 = vst.msk [vmem:[#allocation4] sm:$0xff] %vm102_vm0, %v2421_v57 }
0x238b   :  { %v2431_v58 = vld [vmem:[#allocation4] sm:$0xff] }
0x238c   :  { %2437 = vrot.lane.b32.xlu1 %v2431_v58, %s4618_s30 }
0x2391   :  { %v2525_v20 = vpop.permute.xlu0 %2524 }
0x23fe   :  { %v2438_v61 = vpop.permute.xlu1 %2437 }
0x23ff   :  { %v2441_v62 = vsel %vm2064_vm4, %v2440_v2, %v2438_v61 }
0x2400   :  { %3926 = vmatmul.mubr.msk.f32.vlgmr.msra.gmra.mrb[18].mxu1 %vm2066_vm5, %v2441_v62 }
0x2401   :  { %4318 = vmatpush3.bf16.msra.mxu1 %v5159_v12  ;;  %3979 = vmatprep.mubr.msk.f32.mxu1 %vm4615_vm1, %v4613_v0 }
0x2402   :  { %4319 = vmatprep.subr.bf16.mxu1 %v4614_v1 }
0x2405   :  { %4321 = vmatpush3.bf16.msra.mxu1 %v5165_v33 }
0x2406   :  { %4322 = vmatprep.subr.bf16.mxu1 %v4614_v1 }
0x2409   :  { %4324 = vmatpush3.bf16.msra.mxu1 %v5177_v18 }
0x240a   :  { %4325 = vmatprep.subr.bf16.mxu1 %v4614_v1 }
0x240d   :  { %4327 = vmatpush3.bf16.msra.mxu1 %v5189_v23 }
0x240e   :  { %4328 = vmatprep.subr.bf16.mxu1 %v4614_v1 }
0x2411   :  { %4330 = vmatpush3.bf16.msra.mxu1 %v5201_v26 }
0x2412   :  { %4331 = vmatprep.subr.bf16.mxu1 %v4614_v1 }
0x2415   :  { %4333 = vmatpush3.bf16.msra.mxu1 %v5213_v30 }
0x2416   :  { %4352 = vmatprep.subr.bf16.mxu1 %v4614_v1 }
0x24d3   :  { %v2511_v3 = vpop.f32.mrb[18].mxu1 }
0x24d4   :  { %v2512_v63 = vadd.f32 %v5256_v43, %v2511_v3  ;;  %v3927_v60 = vpop.f32.mrb[19].mxu1 }
0x24d6   :  { %4559 = vtanh.f32 %v2512_v63  ;;  %v3329_v7 = vmul.f32 -1.442695, %v2512_v63 }
0x24d8   :  { %4561 = vpow2.f32 %v3329_v7 }
0x24e0   :  { %v4560_v4 = vpop.eup %4559 }
0x24e1   :  { %2529 = vrot.lane.b32.xlu1 %v4560_v4, %s4618_s30 }
0x24e2   :  { %v4562_v8 = vpop.eup %4561 }
0x24e3   :  { %v2519_v29 = vadd.f32 1.0, %v4562_v8 }
0x24e5   :  { %4563 = vrcp.f32 %v2519_v29 }
0x24ef   :  { %v4564_v13 = vpop.eup %4563 }
0x24f0   :  { %v2527_v22 = vmul.f32 %v4564_v13, %v2525_v20 }
0x2553   :  { %v2530_v16 = vpop.permute.xlu1 %2529 }
0x2554   :  { %v2532_v17 = vmul.f32 %v4564_v13, %v2530_v16 }
0x2556   :  { %2534 = vrot.lane.b32.xlu1 %v2532_v17, %s4617_s1  ;;  %v2805_v17 = vld [vmem:[#allocation3 + $0x30] sm:$0xff] }
0x25c8   :  { %v2535_v24 = vpop.permute.xlu1 %2534 }
0x25c9   :  { %v2537_v25 = vadd.f32 %v2535_v24, %v2527_v22 }
0x25cb   :  { %4565 = vtanh.f32 %v2537_v25 }
0x25d5   :  { %v4566_v27 = vpop.eup %4565 }
0x25d6   :  { %2540 = vrot.lane.b32.xlu0 %v4566_v27, %s4618_s30 }
0x25da   :  { %2558 = vrot.lane.b32.xlu0 %v2555_v28, %s4617_s1 }
0x25de   :  { %2550 = vrot.lane.b32.xlu0 %v2537_v25, %s4619_s12 }
0x2648   :  { %v2541_v31 = vpop.permute.xlu0 %2540 }
0x2649   :  { %v2543_v32 = vmul.f32 %v4564_v13, %v2541_v31 }
0x264b   :  { %2545 = vrot.lane.b32.xlu1 %v2543_v32, %s4617_s1  ;;  %v2804_v32 = vld [vmem:[#allocation2 + $0x30] sm:$0xff] }
0x264c   :  { %v2559_v34 = vpop.permute.xlu0 %2558 }
0x264d   :  { %v2565_v40 = vsel %vm102_vm0, %v2554_v39, %v2559_v34 }
0x2650   :  { %v2551_v35 = vpop.permute.xlu0 %2550 }
0x2651   :  { %2553 = vst.msk [vmem:[#allocation5] sm:$0xff] %vm102_vm0, %v2551_v35 }
0x2658   :  { %v2640_v36 = vld [vmem:[#allocation5] sm:$0xff] }
0x2659   :  { %2649 = vrot.lane.b32.xlu0 %v2640_v36, %s4617_s1 }
0x26bd   :  { %v2546_v37 = vpop.permute.xlu1 %2545 }
0x26be   :  { %2548 = vst.msk [vmem:[#allocation4] sm:$0xff] %vm102_vm0, %v2546_v37 }
0x26c5   :  { %v2556_v38 = vld [vmem:[#allocation4] sm:$0xff] }
0x26c6   :  { %2562 = vrot.lane.b32.xlu1 %v2556_v38, %s4618_s30 }
0x26cb   :  { %v2650_v11 = vpop.permute.xlu0 %2649 }
0x2738   :  { %v2563_v41 = vpop.permute.xlu1 %2562 }
0x2739   :  { %v2566_v42 = vsel %vm2064_vm4, %v2565_v40, %v2563_v41 }
0x273a   :  { %3953 = vmatmul.mubr.msk.f32.vlgmr.msra.gmra.mrb[20].mxu0 %vm2066_vm5, %v2566_v42 }
0x273b   :  { %4336 = vmatpush3.bf16.msra.mxu0 %v5159_v12  ;;  %4006 = vmatprep.mubr.msk.f32.mxu0 %vm4615_vm1, %v4613_v0 }
0x273c   :  { %4337 = vmatprep.subr.bf16.mxu0 %v4614_v1 }
0x273f   :  { %4339 = vmatpush3.bf16.msra.mxu0 %v5165_v33 }
0x2740   :  { %4340 = vmatprep.subr.bf16.mxu0 %v4614_v1 }
0x2743   :  { %4342 = vmatpush3.bf16.msra.mxu0 %v5177_v18 }
0x2744   :  { %4343 = vmatprep.subr.bf16.mxu0 %v4614_v1 }
0x2747   :  { %4345 = vmatpush3.bf16.msra.mxu0 %v5189_v23 }
0x2748   :  { %4346 = vmatprep.subr.bf16.mxu0 %v4614_v1 }
0x274b   :  { %4348 = vmatpush3.bf16.msra.mxu0 %v5201_v26 }
0x274c   :  { %4349 = vmatprep.subr.bf16.mxu0 %v4614_v1 }
0x274f   :  { %4351 = vmatpush3.bf16.msra.mxu0 %v5213_v30 }
0x2750   :  { %4370 = vmatprep.subr.bf16.mxu0 %v4614_v1 }
0x280d   :  { %v2636_v44 = vpop.f32.mrb[20].mxu0 }
0x280e   :  { %v2637_v45 = vadd.f32 %v5256_v43, %v2636_v44  ;;  %v3954_v46 = vpop.f32.mrb[21].mxu0 }
0x2810   :  { %4567 = vtanh.f32 %v2637_v45  ;;  %v3331_v48 = vmul.f32 -1.442695, %v2637_v45 }
0x2812   :  { %4569 = vpow2.f32 %v3331_v48  ;;  %v62_v48 = vld [vmem:[%s5538_s7] sm:$0xff] }
0x281a   :  { %v4568_v47 = vpop.eup %4567 }
0x281b   :  { %2654 = vrot.lane.b32.xlu1 %v4568_v47, %s4618_s30 }
0x281c   :  { %v4570_v49 = vpop.eup %4569 }
0x281d   :  { %v2644_v50 = vadd.f32 1.0, %v4570_v49  ;;  %v63_v49 = vld [vmem:[%s5538_s7 + $0x8] sm:$0xff] }
0x281f   :  { %4571 = vrcp.f32 %v2644_v50  ;;  %v64_v50 = vld [vmem:[%s5538_s7 + $0x10] sm:$0xff] }
0x2829   :  { %v4572_v14 = vpop.eup %4571 }
0x282a   :  { %v2652_v10 = vmul.f32 %v4572_v14, %v2650_v11  ;;  %v66_v11 = vld [vmem:[%s5538_s7 + $0x20] sm:$0xff] }
0x288d   :  { %v2655_v5 = vpop.permute.xlu1 %2654 }
0x288e   :  { %v2657_v9 = vmul.f32 %v4572_v14, %v2655_v5  ;;  %v65_v5 = vld [vmem:[%s5538_s7 + $0x18] sm:$0xff] }
0x2890   :  { %2659 = vrot.lane.b32.xlu1 %v2657_v9, %s4617_s1  ;;  %v4374_v9 = vpack.c.bf16 %v65_v5, %v64_v50 }
0x2902   :  { %v2660_v19 = vpop.permute.xlu1 %2659 }
0x2903   :  { %v2662_v15 = vadd.f32 %v2660_v19, %v2652_v10  ;;  %v67_v10 = vld [vmem:[%s5538_s7 + $0x28] sm:$0xff] }
0x2904   :  { %v4377_v19 = vpack.c.bf16 %v67_v10, %v66_v11  ;;  %v3166_v11 = vld [vmem:[%s5540_s9 + $0x8] sm:$0xff]  ;;  %v3167_v10 = vld [vmem:[%s5540_s9 + $0x10] sm:$0xff] }
0x2905   :  { %4573 = vtanh.f32 %v2662_v15 }
0x290f   :  { %v4574_v21 = vpop.eup %4573 }
0x2910   :  { %2665 = vrot.lane.b32.xlu0 %v4574_v21, %s4618_s30  ;;  %v69_v21 = vld [vmem:[%s5538_s7 + $0x38] sm:$0xff] }
0x2914   :  { %2683 = vrot.lane.b32.xlu0 %v2680_v51, %s4617_s1 }
0x2918   :  { %2675 = vrot.lane.b32.xlu0 %v2662_v15, %s4619_s12  ;;  %v68_v15 = vld [vmem:[%s5538_s7 + $0x30] sm:$0xff] }
0x2919   :  { %v4380_v51 = vpack.c.bf16 %v69_v21, %v68_v15  ;;  %v3168_v15 = vld [vmem:[%s5540_s9 + $0x18] sm:$0xff] }
0x291a   :  { %v4392_v21 = vpack.c.bf16 %v3168_v15, %v3167_v10 }
0x2982   :  { %v2666_v52 = vpop.permute.xlu0 %2665 }
0x2983   :  { %v2668_v53 = vmul.f32 %v4572_v14, %v2666_v52  ;;  %v4371_v14 = vpack.c.bf16 %v63_v49, %v62_v48 }
0x2985   :  { %2670 = vrot.lane.b32.xlu1 %v2668_v53, %s4617_s1 }
0x2986   :  { %v2684_v54 = vpop.permute.xlu0 %2683 }
0x2987   :  { %v2690_v2 = vsel %vm102_vm0, %v2679_v6, %v2684_v54  ;;  %v72_v6 = vld [vmem:[%s5538_s7 + $0x50] sm:$0xff] }
0x298a   :  { %v2676_v55 = vpop.permute.xlu0 %2675 }
0x298b   :  { %2678 = vst.msk [vmem:[#allocation5] sm:$0xff] %vm102_vm0, %v2676_v55 }
0x2992   :  { %v2765_v56 = vld [vmem:[#allocation5] sm:$0xff] }
0x2993   :  { %2774 = vrot.lane.b32.xlu0 %v2765_v56, %s4617_s1  ;;  %v70_v56 = vld [vmem:[%s5538_s7 + $0x40] sm:$0xff] }
0x29f7   :  { %v2671_v57 = vpop.permute.xlu1 %2670 }
0x29f8   :  { %2673 = vst.msk [vmem:[#allocation4] sm:$0xff] %vm102_vm0, %v2671_v57  ;;  %v71_v57 = vld [vmem:[%s5538_s7 + $0x48] sm:$0xff] }
0x29ff   :  { %v2681_v58 = vld [vmem:[#allocation4] sm:$0xff] }
0x2a00   :  { %2687 = vrot.lane.b32.xlu1 %v2681_v58, %s4618_s30  ;;  %v4383_v58 = vpack.c.bf16 %v71_v57, %v70_v56  ;;  %v3171_v57 = vld [vmem:[%s5540_s9 + $0x30] sm:$0xff] }
0x2a72   :  { %v2688_v61 = vpop.permute.xlu1 %2687 }
0x2a73   :  { %v2691_v62 = vsel %vm2064_vm4, %v2690_v2, %v2688_v61  ;;  %v73_v2 = vld [vmem:[%s5538_s7 + $0x58] sm:$0xff] }
0x2a74   :  { %3980 = vmatmul.mubr.msk.f32.vlgmr.msra.gmra.mrb[20].mxu1 %vm2066_vm5, %v2691_v62  ;;  %v4386_v61 = vpack.c.bf16 %v73_v2, %v72_v6 }
0x2a75   :  { %4354 = vmatpush3.bf16.msra.mxu1 %v5159_v12  ;;  %4033 = vmatprep.mubr.msk.f32.mxu1 %vm4615_vm1, %v4613_v0 }
0x2a76   :  { %4355 = vmatprep.subr.bf16.mxu1 %v4614_v1 }
0x2a79   :  { %4357 = vmatpush3.bf16.msra.mxu1 %v5165_v33 }
0x2a7a   :  { %4358 = vmatprep.subr.bf16.mxu1 %v4614_v1 }
0x2a7d   :  { %4360 = vmatpush3.bf16.msra.mxu1 %v5177_v18 }
0x2a7e   :  { %4361 = vmatprep.subr.bf16.mxu1 %v4614_v1 }
0x2a81   :  { %4363 = vmatpush3.bf16.msra.mxu1 %v5189_v23 }
0x2a82   :  { %4364 = vmatprep.subr.bf16.mxu1 %v4614_v1 }
0x2a85   :  { %4366 = vmatpush3.bf16.msra.mxu1 %v5201_v26 }
0x2a86   :  { %4367 = vmatprep.subr.bf16.mxu1 %v4614_v1 }
0x2a89   :  { %4369 = vmatpush3.bf16.msra.mxu1 %v5213_v30  ;;  %v2775_v30 = vpop.permute.xlu0 %2774 }
0x2a8a   :  { %4388 = vmatprep.subr.bf16.mxu1 %v4614_v1 }
0x2b47   :  { %v2761_v12 = vpop.f32.mrb[20].mxu1 }
0x2b48   :  { %v2762_v33 = vadd.f32 %v5256_v43, %v2761_v12  ;;  %v3981_v3 = vpop.f32.mrb[21].mxu1  ;;  %v2930_v12 = vld [vmem:[#allocation3 + $0x38] sm:$0xff] }
0x2b4a   :  { %4575 = vtanh.f32 %v2762_v33  ;;  %v3333_v63 = vmul.f32 -1.442695, %v2762_v33 }
0x2b4c   :  { %4577 = vpow2.f32 %v3333_v63 }
0x2b54   :  { %v4576_v18 = vpop.eup %4575 }
0x2b55   :  { %2779 = vrot.lane.b32.xlu1 %v4576_v18, %s4618_s30  ;;  %v2929_v18 = vld [vmem:[#allocation2 + $0x38] sm:$0xff] }
0x2b56   :  { %v4578_v23 = vpop.eup %4577 }
0x2b57   :  { %v2769_v60 = vadd.f32 1.0, %v4578_v23 }
0x2b59   :  { %4579 = vrcp.f32 %v2769_v60 }
0x2b63   :  { %v4580_v26 = vpop.eup %4579 }
0x2b64   :  { %v2777_v8 = vmul.f32 %v4580_v26, %v2775_v30 }
0x2bc7   :  { %v2780_v4 = vpop.permute.xlu1 %2779 }
0x2bc8   :  { %v2782_v7 = vmul.f32 %v4580_v26, %v2780_v4 }
0x2bca   :  { %2784 = vrot.lane.b32.xlu1 %v2782_v7, %s4617_s1 }
0x2c3c   :  { %v2785_v29 = vpop.permute.xlu1 %2784 }
0x2c3d   :  { %v2787_v13 = vadd.f32 %v2785_v29, %v2777_v8  ;;  %v3275_v8 = vld [vmem:[%s5539_s8] ss:$0 sm:$0xff] }
0x2c3f   :  { %4581 = vtanh.f32 %v2787_v13 }
0x2c49   :  { %v4582_v16 = vpop.eup %4581 }
0x2c4a   :  { %2790 = vrot.lane.b32.xlu0 %v4582_v16, %s4618_s30 }
0x2c4e   :  { %2808 = vrot.lane.b32.xlu0 %v2805_v17, %s4617_s1 }
0x2c52   :  { %2800 = vrot.lane.b32.xlu0 %v2787_v13, %s4619_s12 }
0x2cbc   :  { %v2791_v20 = vpop.permute.xlu0 %2790 }
0x2cbd   :  { %v2793_v22 = vmul.f32 %v4580_v26, %v2791_v20 }
0x2cbf   :  { %2795 = vrot.lane.b32.xlu1 %v2793_v22, %s4617_s1 }
0x2cc0   :  { %v2809_v24 = vpop.permute.xlu0 %2808 }
0x2cc1   :  { %v2815_v34 = vsel %vm102_vm0, %v2804_v32, %v2809_v24 }
0x2cc4   :  { %v2801_v25 = vpop.permute.xlu0 %2800 }
0x2cc5   :  { %2803 = vst.msk [vmem:[#allocation5] sm:$0xff] %vm102_vm0, %v2801_v25 }
0x2ccc   :  { %v2890_v27 = vld [vmem:[#allocation5] sm:$0xff] }
0x2ccd   :  { %2899 = vrot.lane.b32.xlu0 %v2890_v27, %s4617_s1 }
0x2d31   :  { %v2796_v28 = vpop.permute.xlu1 %2795 }
0x2d32   :  { %2798 = vst.msk [vmem:[#allocation4] sm:$0xff] %vm102_vm0, %v2796_v28 }
0x2d39   :  { %v2806_v31 = vld [vmem:[#allocation4] sm:$0xff] }
0x2d3a   :  { %2812 = vrot.lane.b32.xlu1 %v2806_v31, %s4618_s30 }
0x2d3f   :  { %v2900_v52 = vpop.permute.xlu0 %2899 }
0x2dac   :  { %v2813_v35 = vpop.permute.xlu1 %2812 }
0x2dad   :  { %v2816_v36 = vsel %vm2064_vm4, %v2815_v34, %v2813_v35 }
0x2dae   :  { %4007 = vmatmul.mubr.msk.f32.vlgmr.msra.gmra.mrb[22].mxu0 %vm2066_vm5, %v2816_v36 }
0x2daf   :  { %4060 = vmatprep.mubr.msk.f32.mxu0 %vm4615_vm1, %v4613_v0  ;;  %4372 = vmatpush3.bf16.msra.mxu0 %v4371_v14 }
0x2db0   :  { %4373 = vmatprep.subr.bf16.mxu0 %v4614_v1 }
0x2db3   :  { %4375 = vmatpush3.bf16.msra.mxu0 %v4374_v9  ;;  %v3165_v9 = vld [vmem:[%s5540_s9] sm:$0xff] }
0x2db4   :  { %4376 = vmatprep.subr.bf16.mxu0 %v4614_v1 }
0x2db7   :  { %4378 = vmatpush3.bf16.msra.mxu0 %v4377_v19  ;;  %v4389_v19 = vpack.c.bf16 %v3166_v11, %v3165_v9 }
0x2db8   :  { %4379 = vmatprep.subr.bf16.mxu0 %v4614_v1 }
0x2dbb   :  { %4381 = vmatpush3.bf16.msra.mxu0 %v4380_v51 }
0x2dbc   :  { %4382 = vmatprep.subr.bf16.mxu0 %v4614_v1 }
0x2dbf   :  { %4384 = vmatpush3.bf16.msra.mxu0 %v4383_v58  ;;  %v3172_v58 = vld [vmem:[%s5540_s9 + $0x38] sm:$0xff] }
0x2dc0   :  { %4385 = vmatprep.subr.bf16.mxu0 %v4614_v1  ;;  %v4398_v6 = vpack.c.bf16 %v3172_v58, %v3171_v57 }
0x2dc3   :  { %4387 = vmatpush3.bf16.msra.mxu0 %v4386_v61 }
0x2e81   :  { %v2886_v37 = vpop.f32.mrb[22].mxu0 }
0x2e82   :  { %v2887_v38 = vadd.f32 %v5256_v43, %v2886_v37  ;;  %v4008_v39 = vpop.f32.mrb[23].mxu0 }
0x2e84   :  { %4583 = vtanh.f32 %v2887_v38  ;;  %v3335_v41 = vmul.f32 -1.442695, %v2887_v38 }
0x2e86   :  { %4585 = vpow2.f32 %v3335_v41 }
0x2e8e   :  { %v4584_v40 = vpop.eup %4583 }
0x2e8f   :  { %2904 = vrot.lane.b32.xlu1 %v4584_v40, %s4618_s30 }
0x2e90   :  { %v4586_v42 = vpop.eup %4585 }
0x2e91   :  { %v2894_v44 = vadd.f32 1.0, %v4586_v42 }
0x2e93   :  { %4587 = vrcp.f32 %v2894_v44 }
0x2e9d   :  { %v4588_v45 = vpop.eup %4587 }
0x2e9e   :  { %v2902_v53 = vmul.f32 %v4588_v45, %v2900_v52 }
0x2f01   :  { %v2905_v46 = vpop.permute.xlu1 %2904 }
0x2f02   :  { %v2907_v47 = vmul.f32 %v4588_v45, %v2905_v46 }
0x2f04   :  { %2909 = vrot.lane.b32.xlu1 %v2907_v47, %s4617_s1 }
0x2f76   :  { %v2910_v54 = vpop.permute.xlu1 %2909 }
0x2f77   :  { %v2912_v55 = vadd.f32 %v2910_v54, %v2902_v53  ;;  %v3169_v54 = vld [vmem:[%s5540_s9 + $0x20] sm:$0xff] }
0x2f79   :  { %4589 = vtanh.f32 %v2912_v55 }
0x2f83   :  { %v4590_v62 = vpop.eup %4589 }
0x2f84   :  { %2915 = vrot.lane.b32.xlu0 %v4590_v62, %s4618_s30 }
0x2f88   :  { %2933 = vrot.lane.b32.xlu0 %v2930_v12, %s4617_s1 }
0x2f8c   :  { %3057 = vrot.lane.b32.xlu0 %v2930_v12, %s4617_s1 }
0x2ff6   :  { %v2916_v33 = vpop.permute.xlu0 %2915 }
0x2ff7   :  { %v2918_v3 = vmul.f32 %v4588_v45, %v2916_v33 }
0x2ff9   :  { %2920 = vrot.lane.b32.xlu1 %v2918_v3, %s4617_s1 }
0x2ffa   :  { %v2934_v63 = vpop.permute.xlu0 %2933 }
0x2ffb   :  { %v2940_v23 = vsel %vm102_vm0, %v2929_v18, %v2934_v63 }
0x2ffe   :  { %v3058_v60 = vpop.permute.xlu0 %3057 }
0x2fff   :  { %v3060_v26 = vsel %vm102_vm0, %v2929_v18, %v3058_v60  ;;  %v3340_v18 = vld [vmem:[%s5541_s10] ss:$0 sm:$0xff] }
0x3000   :  { %v3061_v4 = vsel %vm2064_vm4, %v3060_v26, 0.0 }
0x3001   :  { %4061 = vmatmul.mubr.msk.f32.vlgmr.msra.gmra.mrb[24].mxu0 %vm2066_vm5, %v3061_v4 }
0x306b   :  { %v2921_v7 = vpop.permute.xlu1 %2920 }
0x306c   :  { %2923 = vst.msk [vmem:[#allocation4] sm:$0xff] %vm102_vm0, %v2921_v7 }
0x3073   :  { %v2931_v30 = vld [vmem:[#allocation4] sm:$0xff] }
0x3074   :  { %2937 = vrot.lane.b32.xlu1 %v2931_v30, %s4618_s30 }
0x3078   :  { %2925 = vrot.lane.b32.xlu1 %v2912_v55, %s4619_s12  ;;  %v3170_v55 = vld [vmem:[%s5540_s9 + $0x28] sm:$0xff] }
0x3079   :  { %v4395_v56 = vpack.c.bf16 %v3170_v55, %v3169_v54 }
0x30d4   :  { %v3131_v29 = vpop.f32.mrb[24].mxu0 }
0x30d5   :  { %v3132_v13 = vadd.f32 %v3275_v8, %v3131_v29  ;;  %v4062_v16 = vpop.f32.mrb[25].mxu0 }
0x30d7   :  { %4591 = vtanh.f32 %v3132_v13  ;;  %v3339_v25 = vmul.f32 -1.442695, %v3132_v13 }
0x30d9   :  { %4593 = vpow2.f32 %v3339_v25 }
0x30e1   :  { %v4592_v17 = vpop.eup %4591 }
0x30e2   :  { %3144 = vrot.lane.b32.xlu1 %v4592_v17, %s4618_s30 }
0x30e3   :  { %v4594_v32 = vpop.eup %4593 }
0x30e4   :  { %v3138_v34 = vadd.f32 1.0, %v4594_v32 }
0x30e6   :  { %v2938_v20 = vpop.permute.xlu1 %2937 }
0x30e7   :  { %v2941_v22 = vsel %vm2064_vm4, %v2940_v23, %v2938_v20 }
0x30e8   :  { %4034 = vmatmul.mubr.msk.f32.vlgmr.msra.gmra.mrb[22].mxu1 %vm2066_vm5, %v2941_v22 }
0x30e9   :  { %4079 = vmatprep.mubr.msk.f32.mxu1 %vm4615_vm1, %v4613_v0  ;;  %4390 = vmatpush3.bf16.msra.mxu1 %v4389_v19 }
0x30ea   :  { %v2926_v24 = vpop.permute.xlu1 %2925  ;;  %4391 = vmatprep.subr.bf16.mxu1 %v4614_v1 }
0x30eb   :  { %2928 = vst.msk [vmem:[#allocation5] sm:$0xff] %vm102_vm0, %v2926_v24 }
0x30ed   :  { %4393 = vmatpush3.bf16.msra.mxu1 %v4392_v21 }
0x30ee   :  { %4394 = vmatprep.subr.bf16.mxu1 %v4614_v1 }
0x30f1   :  { %4396 = vmatpush3.bf16.msra.mxu1 %v4395_v56 }
0x30f2   :  { %v3015_v37 = vld [vmem:[#allocation5] sm:$0xff]  ;;  %4397 = vmatprep.subr.bf16.mxu1 %v4614_v1 }
0x30f5   :  { %4399 = vmatpush3.bf16.msra.mxu1 %v4398_v6 }
0x3154   :  { %v3145_v36 = vpop.permute.xlu1 %3144 }
0x31bb   :  { %v3011_v27 = vpop.f32.mrb[22].mxu1 }
0x31bc   :  { %v3012_v28 = vadd.f32 %v5256_v43, %v3011_v27  ;;  %v4035_v31 = vpop.f32.mrb[23].mxu1 }
0x31be   :  { %4595 = vtanh.f32 %v3012_v28  ;;  %v3337_v39 = vmul.f32 -1.442695, %v3012_v28 }
0x31bf   :  { %4597 = vrcp.f32 %v3138_v34 }
0x31c0   :  { %4599 = vpow2.f32 %v3337_v39 }
0x31c8   :  { %v4596_v35 = vpop.eup %4595 }
0x31c9   :  { %3029 = vrot.lane.b32.xlu0 %v4596_v35, %s4618_s30  ;;  %v4598_v0 = vpop.eup %4597 }
0x31ca   :  { %v3147_v38 = vmul.f32 %v4598_v0, %v3145_v36  ;;  %v4600_v40 = vpop.eup %4599  ;;  %v3142_v46 = vmul.f32 0.0, %v4598_v0 }
0x31cb   :  { %v3019_v43 = vadd.f32 1.0, %v4600_v40 }
0x31cd   :  { %3024 = vrot.lane.b32.xlu0 %v3015_v37, %s4617_s1  ;;  %4601 = vrcp.f32 %v3019_v43 }
0x31d1   :  { %3149 = vrot.lane.b32.xlu0 %v3147_v38, %s4617_s1 }
0x31d7   :  { %v4602_v41 = vpop.eup %4601 }
0x323b   :  { %v3030_v42 = vpop.permute.xlu0 %3029 }
0x323c   :  { %v3032_v44 = vmul.f32 %v4602_v41, %v3030_v42 }
0x323e   :  { %3034 = vrot.lane.b32.xlu1 %v3032_v44, %s4617_s1 }
0x323f   :  { %v3025_v45 = vpop.permute.xlu0 %3024 }
0x3240   :  { %v3027_v50 = vmul.f32 %v4602_v41, %v3025_v45 }
0x3243   :  { %v3150_v47 = vpop.permute.xlu0 %3149 }
0x3244   :  { %v3152_v48 = vadd.f32 %v3150_v47, %v3142_v46 }
0x3246   :  { %4603 = vtanh.f32 %v3152_v48 }
0x3250   :  { %v4604_v49 = vpop.eup %4603 }
0x3251   :  { %3155 = vrot.lane.b32.xlu0 %v4604_v49, %s4618_s30 }
0x32b0   :  { %v3035_v14 = vpop.permute.xlu1 %3034 }
0x32b1   :  { %v3037_v5 = vadd.f32 %v3035_v14, %v3027_v50 }
0x32b3   :  { %4605 = vtanh.f32 %v3037_v5 }
0x32bd   :  { %v4606_v51 = vpop.eup %4605 }
0x32be   :  { %3040 = vrot.lane.b32.xlu1 %v4606_v51, %s4618_s30 }
0x32c3   :  { %v3156_v52 = vpop.permute.xlu0 %3155 }
0x32c4   :  { %v3158_v53 = vmul.f32 %v4598_v0, %v3156_v52 }
0x32c6   :  { %3161 = vrot.lane.b32.xlu0 %v3158_v53, %s4618_s30 }
0x3330   :  { %v3041_v2 = vpop.permute.xlu1 %3040 }
0x3331   :  { %v3043_v61 = vmul.f32 %v4602_v41, %v3041_v2 }
0x3333   :  { %3045 = vrot.lane.b32.xlu1 %v3043_v61, %s4617_s1 }
0x3338   :  { %v3162_v12 = vpop.permute.xlu0 %3161 }
0x33a5   :  { %v3046_v62 = vpop.permute.xlu1 %3045 }
0x33a6   :  { %3048 = vst.msk [vmem:[#allocation4] sm:$0xff] %vm102_vm0, %v3046_v62 }
0x33ad   :  { %v3159_v33 = vld [vmem:[#allocation4] sm:$0xff] }
0x33ae   :  { %v3164_v3 = vsel %vm102_vm0, %v3159_v33, %v3162_v12 }
0x33af   :  { %4080 = vmatmul.mubr.msk.f32.vlgmr.msra.gmra.mrb[24].mxu1 %vm2064_vm4, %v3164_v3 }
0x3482   :  { %v3249_v63 = vpop.f32.mrb[24].mxu1 }
0x3483   :  { %v3250_v1 = vadd.f32 %v3340_v18, %v3249_v63  ;;  %v4081_v23 = vpop.f32.mrb[25].mxu1 }
0x3485   :  { %v3254_v60 = vsel %vm3253_vm6, %v3250_v1, -inf }
0x3486   :  { %3255 = vmax.xlane.f32.xlu1 %v3254_v60 }
0x3497   :  { %3050 = vrot.lane.b32.xlu1 %v3037_v5, %s4619_s12 }
0x3513   :  { %v3256_v26 = vpop.xlane.xlu1 %3255 }
0x3514   :  { %v3257_v4 = vsub.f32 %v3250_v1, %v3256_v26 }
0x3516   :  { %v3258_v7 = vmul.f32 1.442695, %v3257_v4 }
0x3517   :  { %v3051_v30 = vpop.permute.xlu1 %3050 }
0x3518   :  { %4607 = vpow2.f32 %v3258_v7  ;;  %3053 = vst.msk [vmem:[#allocation5] sm:$0xff] %vm102_vm0, %v3051_v30 }
0x3522   :  { %v4608_v8 = vpop.eup %4607 }
0x3523   :  { %v3260_v29 = vsel %vm3253_vm6, %v4608_v8, 0.0 }
0x3524   :  { %3261 = vadd.xlane.f32.xlu0 %v3260_v29 }
0x353a   :  { %2043 = vrot.lane.b32.xlu0 %v5143_v59, %s4619_s12 }
0x35b1   :  { %v3262_v13 = vpop.xlane.xlu0 %3261 }
0x35b2   :  { %4609 = vlog2.f32 %v3262_v13 }
0x35b5   :  { %v2044_v16 = vpop.permute.xlu0 %2043 }
0x35b6   :  { %2046 = vst.msk [vmem:[#allocation7] sm:$0xff] %vm102_vm0, %v2044_v16 }
0x35bc   :  { %v4610_v17 = vpop.eup %4609 }
0x35bd   :  { %v3264_v20 = vmul.f32 0.6931472, %v4610_v17 }
0x35bf   :  { %v3265_v22 = vadd.f32 %v3264_v20, %v3256_v26 }
0x35c1   :  { %v3266_v24 = vsub.f32 %v3250_v1, %v3265_v22 }
0x35c3   :  { %3267 = vst.msk [vmem:[%s5542_s11] sm:$0xff] %vm3253_vm6, %v3266_v24 }

</bundles_post_ra>
